<compile_context>
chip_gen: v6e
topology: v6e:2x2x1
jax: 0.10.0
libtpu: 0.0.40
codegen_flags: <defaults>
</compile_context>

<pallas_src>
import functools
import math

import numpy as np
import jax
import jax.numpy as jnp
from jax import lax
from jax.experimental import pallas as pl
from jax.experimental.pallas import tpu as pltpu


def _cdiv(a, b):
    return -(-a // b)


def _largest_divisor_leq(n, cap):
    cap = max(1, min(n, cap))
    for d in range(cap, 0, -1):
        if n % d == 0:
            return d
    return 1


def _choose_tl(L):
    # 256-wide N tiles feed the v6e/v7x 2x256 MXU fully (two N passes on v5e's 128-wide
    # MXU).  TODO(synk): TL=512 when L % 512 == 0 would halve the L loop on v6e.
    for tl in (256, 128):
        if L % tl == 0:
            return tl
    return L


def _choose_kc(K, TL, max_cols=1024):
    # Cap the per-dot f32 intermediate at (TM, max_cols) so the K-max never has to chew
    # through a spilled (TM, K*TL) slab; keep MXU N >= 256 where K allows it.
    kc = max(1, min(K, max_cols // TL))
    while K % kc:
        kc -= 1
    return kc


def _choose_batch_tile(B, HW, target_rows=256):
    # Whole images per row tile.  TB*HW must stay a multiple of 8 (sublane tile) so the
    # x row blocks remain legal when the batch is split into several tiles.
    step = 8 // math.gcd(HW, 8)
    tb = max(step, (max(1, target_rows // HW) // step) * step)
    if tb > B:                                   # don't tile past the (padded) batch
        tb = _cdiv(B, step) * step
    nbt = _cdiv(B, tb)
    # v7x megacore: the leading grid axis is "parallel"; prefer an even tile count when
    # halving TB keeps the MXU M-fill >= 128 rows (a no-op for the demo shapes and for
    # single-TC v5e/v6e-sized problems).
    if nbt % 2 == 1 and nbt > 1:
        tb_half = _cdiv(tb // 2, step) * step
        if tb_half >= step and tb_half * HW >= 128 and _cdiv(B, tb_half) % 2 == 0:
            tb = tb_half
    return tb


# ----------------------------------------------------------------------------
# Pallas kernel 1: fused MIML sub-concept head
#   conv1(1x1, C->512) -> [dropout = identity] -> conv2(1x1, 512->K*L)
#   -> max over K -> softmax over L -> max over HW
# Grid: (batch_tiles,).  Weights are grid-constant (w2 VMEM-resident, DMA'd once).
# ----------------------------------------------------------------------------
def _miml_kernel(x_ref, w1t_ref, b1_ref, w2_ref, b2_ref, attr_ref, m_sc,
                 *, K, KC, TL, TB, HW, L):
    # h1 = x @ W1^T + b1 (1x1 conv over channels); dropout1 is identity (eval mode).
    # h1 kept bf16 for the second dot, f32 accumulation throughout.
    # TODO(synk): keep h1 f32 if the attribute head turns out to be accuracy-critical.
    h1 = (jnp.dot(x_ref[...], w1t_ref[...], preferred_element_type=jnp.float32)
          + b1_ref[...]).astype(jnp.bfloat16)                       # (TM, 512)

    nlt, nkc = L // TL, K // KC
    for lt in range(nlt):
        m = None
        for kc in range(nkc):
            c0 = (lt * K + kc * KC) * TL
            # One MXU dot per k-chunk; the f32 intermediate stays <= (TM, KC*TL).
            wide = (jnp.dot(h1, w2_ref[:, c0:c0 + KC * TL],
                            preferred_element_type=jnp.float32)
                    + b2_ref[:, c0:c0 + KC * TL])                   # (TM, KC*TL)
            mk = wide[:, 0:TL]
            for k in range(1, KC):
                mk = jnp.maximum(mk, wide[:, k * TL:(k + 1) * TL])
            m = mk if m is None else jnp.maximum(m, mk)
        m_sc[:, lt * TL:(lt + 1) * TL] = m                          # max over K

    # softmax over L per spatial location, then max over the HW locations per image.
    mm = m_sc[...]                                                  # (TM, L)
    e = jnp.exp(mm - jnp.max(mm, axis=-1, keepdims=True))
    s = e * pl.reciprocal(jnp.sum(e, axis=-1, keepdims=True), approx=True)
    attr_ref[0] = jnp.max(s.reshape(TB, HW, L), axis=1)             # (TB, L)


def prepare_sub_concept(w1, b1, w2, b2, *, K, L):
    """One-time (hoisted out of the jitted forward) weight preprocessing."""
    Ch, C = w1.shape                                     # (512, 2048)
    TL = _choose_tl(L)
    nlt = L // TL
    w1t = jnp.transpose(w1).astype(jnp.bfloat16)         # (C, Ch)
    b1r = b1.reshape(1, Ch).astype(jnp.float32)
    # conv2 output channel c = l*K + k (matches torch .reshape(-1, L, K, H*W)).  Regroup
    # columns so each L tile holds K contiguous TL-wide slabs (k-major within the tile).
    w2w = (w2.reshape(nlt, TL, K, Ch)
             .transpose(3, 0, 2, 1)                      # (Ch, nlt, K, TL)
             .reshape(Ch, nlt * K * TL)
             .astype(jnp.bfloat16))
    b2w = (b2.reshape(nlt, TL, K)
             .transpose(0, 2, 1)                         # (nlt, K, TL)
             .reshape(1, nlt * K * TL)
             .astype(jnp.float32))
    return {'w1t': w1t, 'b1r': b1r, 'w2w': w2w, 'b2w': b2w}


def miml_attributes_pallas(x, prepped, *, K, L):
    """x: (B, HW, C) channels-last layer4 features.  Returns attributes (B, L)."""
    B, HW, C = x.shape
    Ch = prepped['w1t'].shape[1]
    TL = _choose_tl(L)
    KC = _choose_kc(K, TL)
    TB = _choose_batch_tile(B, HW)
    nbt = _cdiv(B, TB)
    Bpad = nbt * TB
    TM = TB * HW

    # bf16 activations (f32 accumulation in-kernel).  TODO(synk): verify this cast fuses
    # into the layer4 epilogue in the HLO; otherwise emit bf16 from the backbone.
    xb = x.reshape(B * HW, C).astype(jnp.bfloat16)
    if Bpad != B:
        xb = jnp.pad(xb, ((0, (Bpad - B) * HW), (0, 0)))   # pad rows; outputs separable

    w2_bytes = Ch * K * L * 2
    vmem_limit = int(min(64 * 1024 * 1024,
                         max(32 * 1024 * 1024, 3 * w2_bytes + 16 * 1024 * 1024)))

    kernel = functools.partial(_miml_kernel, K=K, KC=KC, TL=TL, TB=TB, HW=HW, L=L)
    out = pl.pallas_call(
        kernel,
        out_shape=jax.ShapeDtypeStruct((nbt, TB, L), jnp.float32),
        grid_spec=pltpu.PrefetchScalarGridSpec(
            num_scalar_prefetch=0,
            grid=(nbt,),
            in_specs=[
                pl.BlockSpec((TM, C), lambda bt: (bt, 0)),     # streamed per batch tile
                pl.BlockSpec((C, Ch), lambda bt: (0, 0)),      # grid-constant, DMA'd once
                pl.BlockSpec((1, Ch), lambda bt: (0, 0)),
                pl.BlockSpec((Ch, K * L), lambda bt: (0, 0)),  # w2 VMEM-resident
                pl.BlockSpec((1, K * L), lambda bt: (0, 0)),
            ],
            out_specs=pl.BlockSpec((1, TB, L), lambda bt: (bt, 0, 0)),
            scratch_shapes=[pltpu.VMEM((TM, L), jnp.float32)],
        ),
        compiler_params=pltpu.CompilerParams(
            dimension_semantics=("parallel",),
            vmem_limit_bytes=vmem_limit),
    )(xb, prepped['w1t'], prepped['b1r'], prepped['w2w'], prepped['b2w'])
    return out.reshape(Bpad, L)[:B]


# ----------------------------------------------------------------------------
# Pallas kernel 2: adaptive average pool (divisible bins) + NHWC flatten
#   (B, Hf, Wf, C) -> (B, E*E, C)   == adaptive_pool + permute(0,2,3,1).reshape
# Implemented as one small MXU matmul per block against a block-diagonal pooling
# matrix; output stored as a dense (Bb*E*E, C) slab.
# ----------------------------------------------------------------------------
def _adaptive_pool_kernel(p_ref, x_ref, o_ref):
    o_ref[...] = jnp.dot(p_ref[...], x_ref[...], preferred_element_type=jnp.float32)


def adaptive_pool_pallas(x_nhwc, E):
    B, Hf, Wf, C = x_nhwc.shape
    # TODO(synk): PyTorch adaptive pooling also supports non-divisible bins (e.g. the
    #             default encoded_image_size=14 on an 8x8 map); only divisible bins here.
    assert Hf % E == 0 and Wf % E == 0
    bh, bw = Hf // E, Wf // E
    HW, EE = Hf * Wf, E * E
    Bb = _largest_divisor_leq(B, 8)
    if (Bb * HW) % 8 != 0:            # keep the streamed input blocks sublane-aligned
        Bb = B

    # P[p, h] = 1/(bh*bw) iff flat spatial index h lies in output bin p (row-major bins).
    P = np.zeros((EE, HW), np.float32)
    for oi in range(E):
        for oj in range(E):
            for di in range(bh):
                for dj in range(bw):
                    P[oi * E + oj, (oi * bh + di) * Wf + (oj * bw + dj)] = 1.0 / (bh * bw)
    p_blk = jnp.asarray(np.kron(np.eye(Bb, dtype=np.float32), P), dtype=jnp.bfloat16)

    xf = x_nhwc.reshape(B * HW, C).astype(jnp.bfloat16)   # bf16 reads, f32 accumulation
    out = pl.pallas_call(
        _adaptive_pool_kernel,
        out_shape=jax.ShapeDtypeStruct((B * EE, C), jnp.float32),
        grid=(B // Bb,),
        in_specs=[pl.BlockSpec((Bb * EE, Bb * HW), lambda i: (0, 0)),
                  pl.BlockSpec((Bb * HW, C), lambda i: (i, 0))],
        out_specs=pl.BlockSpec((Bb * EE, C), lambda i: (i, 0)),
        compiler_params=pltpu.CompilerParams(dimension_semantics=("parallel",)),
    )(p_blk, xf)
    return out.reshape(B, EE, C)


# ----------------------------------------------------------------------------
# Plain-JAX references for the two kernels (used only for verification).
# ----------------------------------------------------------------------------
def _miml_attributes_ref(x, w1, b1, w2, b2, K, L):
    h1 = jnp.einsum('bnc,oc->bno', x, w1) + b1
    h2 = jnp.einsum('bno,ko->bnk', h1, w2) + b2
    B, HW, _ = x.shape
    m = jnp.max(h2.reshape(B, HW, L, K), axis=-1)     # max over K
    s = jax.nn.softmax(m, axis=-1)                    # softmax over L
    return jnp.max(s, axis=1)                         # max over HW


def _adaptive_pool_ref(x_nhwc, E):
    B, H, W, C = x_nhwc.shape
    bh, bw = H // E, W // E
    y = x_nhwc.reshape(B, E, bh, E, bw, C).mean(axis=(2, 4))
    return y.reshape(B, E * E, C)


# ----------------------------------------------------------------------------
# Synthetic ResNet-101-style backbone (plain JAX glue, NHWC, eval-mode BN).
# ----------------------------------------------------------------------------
BLOCKS = (1, 1, 1, 1)   # TODO(synk): resnet101 is (3, 4, 23, 3); reduced for small demo


def _conv(x, w, stride=1, padding=0):
    return lax.conv_general_dilated(
        x, w, window_strides=(stride, stride),
        padding=[(padding, padding), (padding, padding)],
        dimension_numbers=('NHWC', 'HWIO', 'NHWC'))


def _bn(x, p):
    g, b, m, v = p
    inv = g / jnp.sqrt(v + 1e-5)
    return x * inv + (b - m * inv)          # broadcast over channels (last dim)


def _maxpool_3x3_s2(x):
    return lax.reduce_window(x, -jnp.inf, lax.max,
                             window_dimensions=(1, 3, 3, 1),
                             window_strides=(1, 2, 2, 1),
                             padding=((0, 0), (1, 1), (1, 1), (0, 0)))


def _conv_w(key, cout, cin, k):
    std = (2.0 / (cin * k * k)) ** 0.5
    return std * jax.random.normal(key, (k, k, cin, cout), jnp.float32)   # HWIO


def _bn_p(c):
    return (jnp.ones((c,), jnp.float32), jnp.zeros((c,), jnp.float32),
            jnp.zeros((c,), jnp.float32), jnp.ones((c,), jnp.float32))


def _make_bottleneck(key, cin, planes, stride):
    k1, k2, k3, k4 = jax.random.split(key, 4)
    p = {'conv1': _conv_w(k1, planes, cin, 1), 'bn1': _bn_p(planes),
         'conv2': _conv_w(k2, planes, planes, 3), 'bn2': _bn_p(planes),
         'conv3': _conv_w(k3, 4 * planes, planes, 1), 'bn3': _bn_p(4 * planes)}
    if stride != 1 or cin != 4 * planes:
        p['down_w'] = _conv_w(k4, 4 * planes, cin, 1)
        p['down_bn'] = _bn_p(4 * planes)
    return p


def _bottleneck_fwd(x, p, stride):
    out = jax.nn.relu(_bn(_conv(x, p['conv1']), p['bn1']))
    out = jax.nn.relu(_bn(_conv(out, p['conv2'], stride=stride, padding=1), p['bn2']))
    out = _bn(_conv(out, p['conv3']), p['bn3'])
    if 'down_w' in p:
        idn = _bn(_conv(x, p['down_w'], stride=stride), p['down_bn'])
    else:
        idn = x
    return jax.nn.relu(out + idn)


def _make_layer(key, cin, planes, nblocks, stride):
    keys = jax.random.split(key, nblocks)
    blocks, c = [], cin
    for i in range(nblocks):
        s = stride if i == 0 else 1
        blocks.append(_make_bottleneck(keys[i], c, planes, s))
        c = 4 * planes
    return blocks


def _layer_fwd(x, blocks, first_stride):
    for i, p in enumerate(blocks):
        x = _bottleneck_fwd(x, p, first_stride if i == 0 else 1)
    return x


def _head_fwd(x, p):
    x = jax.nn.relu(_bn(_conv(x, p['conv1'], stride=2, padding=3), p['bn1']))
    x = _maxpool_3x3_s2(x)
    return _layer_fwd(x, p['layer1'], 1)


def init_extract_params(key, K, L):
    ks = jax.random.split(key, 12)
    head = {'conv1': _conv_w(ks[0], 64, 3, 7), 'bn1': _bn_p(64),
            'layer1': _make_layer(ks[1], 64, 64, BLOCKS[0], 1)}
    feat = {'layer2': _make_layer(ks[2], 256, 128, BLOCKS[1], 2),
            'layer3': _make_layer(ks[3], 512, 256, BLOCKS[2], 2),
            'layer4': _make_layer(ks[4], 1024, 512, BLOCKS[3], 2)}
    miml = {'layer2': _make_layer(ks[5], 256, 128, BLOCKS[1], 2),
            'layer3': _make_layer(ks[6], 512, 256, BLOCKS[2], 2),
            'layer4': _make_layer(ks[7], 1024, 512, BLOCKS[3], 2)}
    dim = 2048  # hard-coded in the PyTorch module (resnet layer4 output channels)
    sub = {'w1': 1e-3 * jax.random.normal(ks[8], (512, dim), jnp.float32),
           'b1': 1e-2 * jax.random.normal(ks[9], (512,), jnp.float32),
           'w2': 1e-2 * jax.random.normal(ks[10], (K * L, 512), jnp.float32),
           'b2': 1e-2 * jax.random.normal(ks[11], (K * L,), jnp.float32)}
    # Hoisted one-time preprocessing for the Pallas MIML head (perf-review item).
    prepped = prepare_sub_concept(sub['w1'], sub['b1'], sub['w2'], sub['b2'], K=K, L=L)
    return {'head': head, 'features_model': feat, 'miml': miml,
            'sub_concept': sub, 'sub_prepped': prepped}


# ----------------------------------------------------------------------------
# Extract.forward
# ----------------------------------------------------------------------------
def extract_forward(images, params, *, K, L, E):
    x = jnp.transpose(images, (0, 2, 3, 1))                           # NCHW -> NHWC once
    head_out = _head_fwd(x, params['head'])                           # (B, H/4, W/4, 256)

    m = _layer_fwd(head_out, params['miml']['layer2'], 2)
    m = _layer_fwd(m, params['miml']['layer3'], 2)
    miml_feat = _layer_fwd(m, params['miml']['layer4'], 2)            # (B, Hf, Wf, 2048)
    B, Hf, Wf, C = miml_feat.shape
    x_hwc = miml_feat.reshape(B, Hf * Wf, C)                          # free NHWC reshape
    attributes = miml_attributes_pallas(x_hwc, params['sub_prepped'], K=K, L=L)  # (B, L)

    f = _layer_fwd(head_out, params['features_model']['layer2'], 2)
    f = _layer_fwd(f, params['features_model']['layer3'], 2)
    feats = _layer_fwd(f, params['features_model']['layer4'], 2)      # (B, Hf, Wf, 2048)
    imgs_features = adaptive_pool_pallas(feats, E)                    # (B, E*E, 2048)
    return attributes, imgs_features


# ----------------------------------------------------------------------------
if __name__ == "__main__":
    # Small config consistent with the module: Extract(encoded_image_size=E, K=K, L=L)
    # (PyTorch defaults are 14 / 20 / 1024).
    K, L, E = 4, 512, 2
    B, IMG = 2, 128      # 128x128 -> head 32x32 -> layer4 4x4 -> HW=16

    root = jax.random.PRNGKey(0)
    k_img, k_par, k_t1, k_t2 = jax.random.split(root, 4)
    images = jax.random.normal(k_img, (B, 3, IMG, IMG), jnp.float32)
    params = init_extract_params(k_par, K, L)

    # Unit-check both Pallas kernels against plain-JAX references.
    sub = params['sub_concept']
    prepped = params['sub_prepped']
    x_test = jax.random.normal(k_t1, (B, 16, 2048), jnp.float32)
    attr_k = miml_attributes_pallas(x_test, prepped, K=K, L=L)
    attr_r = _miml_attributes_ref(x_test, sub['w1'], sub['b1'], sub['w2'], sub['b2'], K, L)
    np.testing.assert_allclose(np.asarray(attr_k), np.asarray(attr_r), rtol=2e-2, atol=2e-4)

    f_test = jax.random.normal(k_t2, (B, 4, 4, 2048), jnp.float32)
    pool_k = adaptive_pool_pallas(f_test, E)
    pool_r = _adaptive_pool_ref(f_test, E)
    np.testing.assert_allclose(np.asarray(pool_k), np.asarray(pool_r), rtol=2e-2, atol=1e-2)

    # Full forward pass.
    fwd = jax.jit(functools.partial(extract_forward, K=K, L=L, E=E))
    attributes, imgs_features = fwd(images, params)
    jax.block_until_ready((attributes, imgs_features))
    assert attributes.shape == (B, L)
    assert imgs_features.shape == (B, E * E, 2048)
    print("KERNEL_OK")
</pallas_src>

<mosaic_0001>
module attributes {stable_mosaic.version = 11 : i64} {
  func.func @_miml_kernel(%arg0: i32, %arg1: memref<32x2048xbf16, #tpu.memory_space<vmem>>, %arg2: memref<2048x512xbf16, #tpu.memory_space<vmem>>, %arg3: memref<1x512xf32, #tpu.memory_space<vmem>>, %arg4: memref<512x2048xbf16, #tpu.memory_space<vmem>>, %arg5: memref<1x2048xf32, #tpu.memory_space<vmem>>, %arg6: memref<1x2x512xf32, #tpu.memory_space<vmem>>, %arg7: memref<32x512xf32, #tpu.memory_space<vmem>>) attributes {dimension_semantics = [#tpu.dimension_semantics<parallel>], iteration_bounds = array<i64: 1>, scalar_prefetch = 0 : i64, scratch_operands = 1 : i64, tpu.core_type = #tpu.core_type<tc>, window_params = [{transform_indices = @transform_0, window_bounds = array<i64: 32, 2048>}, {pipeline_mode = #tpu.pipeline_mode<synchronous>, transform_indices = @transform_1, window_bounds = array<i64: 2048, 512>}, {pipeline_mode = #tpu.pipeline_mode<synchronous>, transform_indices = @transform_2, window_bounds = array<i64: 1, 512>}, {pipeline_mode = #tpu.pipeline_mode<synchronous>, transform_indices = @transform_3, window_bounds = array<i64: 512, 2048>}, {pipeline_mode = #tpu.pipeline_mode<synchronous>, transform_indices = @transform_4, window_bounds = array<i64: 1, 2048>}, {transform_indices = @transform_5, window_bounds = array<i64: 1, 2, 512>}]} {
    %c0 = arith.constant 0 : index
    %c0_0 = arith.constant 0 : index
    %0 = vector.load %arg1[%c0, %c0_0] : memref<32x2048xbf16, #tpu.memory_space<vmem>>, vector<32x2048xbf16>
    %c0_1 = arith.constant 0 : index
    %c0_2 = arith.constant 0 : index
    %1 = vector.load %arg2[%c0_1, %c0_2] : memref<2048x512xbf16, #tpu.memory_space<vmem>>, vector<2048x512xbf16>
    %cst = arith.constant dense<0.000000e+00> : vector<32x512xf32>
    %2 = tpu.matmul %0, %1, %cst {dimension_numbers = #tpu.dot_dimension_numbers<[1], [0], [0], [1], [0, 0, 1, 1], [], []>} : vector<32x2048xbf16>, vector<2048x512xbf16>, vector<32x512xf32> -> vector<32x512xf32>
    %c0_3 = arith.constant 0 : index
    %c0_4 = arith.constant 0 : index
    %3 = vector.load %arg3[%c0_3, %c0_4] : memref<1x512xf32, #tpu.memory_space<vmem>>, vector<1x512xf32>
    %4 = vector.broadcast %3 : vector<1x512xf32> to vector<32x512xf32>
    %5 = arith.addf %2, %4 : vector<32x512xf32>
    %6 = arith.truncf %5 : vector<32x512xf32> to vector<32x512xbf16>
    %c0_5 = arith.constant 0 : index
    %c0_6 = arith.constant 0 : index
    %7 = vector.load %arg4[%c0_5, %c0_6] : memref<512x2048xbf16, #tpu.memory_space<vmem>>, vector<512x1024xbf16>
    %cst_7 = arith.constant dense<0.000000e+00> : vector<32x1024xf32>
    %8 = tpu.matmul %6, %7, %cst_7 {dimension_numbers = #tpu.dot_dimension_numbers<[1], [0], [0], [1], [0, 0, 1, 1], [], []>} : vector<32x512xbf16>, vector<512x1024xbf16>, vector<32x1024xf32> -> vector<32x1024xf32>
    %c0_8 = arith.constant 0 : index
    %c0_9 = arith.constant 0 : index
    %9 = vector.load %arg5[%c0_8, %c0_9] : memref<1x2048xf32, #tpu.memory_space<vmem>>, vector<1x1024xf32>
    %10 = vector.broadcast %9 : vector<1x1024xf32> to vector<32x1024xf32>
    %11 = arith.addf %8, %10 : vector<32x1024xf32>
    %12 = vector.extract_strided_slice %11 {offsets = [0, 0], sizes = [32, 256], strides = [1, 1]} : vector<32x1024xf32> to vector<32x256xf32>
    %13 = vector.extract_strided_slice %11 {offsets = [0, 256], sizes = [32, 256], strides = [1, 1]} : vector<32x1024xf32> to vector<32x256xf32>
    %14 = arith.maximumf %12, %13 : vector<32x256xf32>
    %15 = vector.extract_strided_slice %11 {offsets = [0, 512], sizes = [32, 256], strides = [1, 1]} : vector<32x1024xf32> to vector<32x256xf32>
    %16 = arith.maximumf %14, %15 : vector<32x256xf32>
    %17 = vector.extract_strided_slice %11 {offsets = [0, 768], sizes = [32, 256], strides = [1, 1]} : vector<32x1024xf32> to vector<32x256xf32>
    %18 = arith.maximumf %16, %17 : vector<32x256xf32>
    %c0_10 = arith.constant 0 : index
    %c0_11 = arith.constant 0 : index
    %19 = vector.load %arg7[%c0_10, %c0_11] : memref<32x512xf32, #tpu.memory_space<vmem>>, vector<32x256xf32>
    tpu.vector_store %arg7[%c0_10, %c0_11], %18 {strides = array<i32>} : memref<32x512xf32, #tpu.memory_space<vmem>>, vector<32x256xf32>,
    %c0_12 = arith.constant 0 : index
    %c1024 = arith.constant 1024 : index
    %20 = vector.load %arg4[%c0_12, %c1024] : memref<512x2048xbf16, #tpu.memory_space<vmem>>, vector<512x1024xbf16>
    %cst_13 = arith.constant dense<0.000000e+00> : vector<32x1024xf32>
    %21 = tpu.matmul %6, %20, %cst_13 {dimension_numbers = #tpu.dot_dimension_numbers<[1], [0], [0], [1], [0, 0, 1, 1], [], []>} : vector<32x512xbf16>, vector<512x1024xbf16>, vector<32x1024xf32> -> vector<32x1024xf32>
    %c0_14 = arith.constant 0 : index
    %c1024_15 = arith.constant 1024 : index
    %22 = vector.load %arg5[%c0_14, %c1024_15] : memref<1x2048xf32, #tpu.memory_space<vmem>>, vector<1x1024xf32>
    %23 = vector.broadcast %22 : vector<1x1024xf32> to vector<32x1024xf32>
    %24 = arith.addf %21, %23 : vector<32x1024xf32>
    %25 = vector.extract_strided_slice %24 {offsets = [0, 0], sizes = [32, 256], strides = [1, 1]} : vector<32x1024xf32> to vector<32x256xf32>
    %26 = vector.extract_strided_slice %24 {offsets = [0, 256], sizes = [32, 256], strides = [1, 1]} : vector<32x1024xf32> to vector<32x256xf32>
    %27 = arith.maximumf %25, %26 : vector<32x256xf32>
    %28 = vector.extract_strided_slice %24 {offsets = [0, 512], sizes = [32, 256], strides = [1, 1]} : vector<32x1024xf32> to vector<32x256xf32>
    %29 = arith.maximumf %27, %28 : vector<32x256xf32>
    %30 = vector.extract_strided_slice %24 {offsets = [0, 768], sizes = [32, 256], strides = [1, 1]} : vector<32x1024xf32> to vector<32x256xf32>
    %31 = arith.maximumf %29, %30 : vector<32x256xf32>
    %c0_16 = arith.constant 0 : index
    %c256 = arith.constant 256 : index
    %32 = vector.load %arg7[%c0_16, %c256] : memref<32x512xf32, #tpu.memory_space<vmem>>, vector<32x256xf32>
    tpu.vector_store %arg7[%c0_16, %c256], %31 {strides = array<i32>} : memref<32x512xf32, #tpu.memory_space<vmem>>, vector<32x256xf32>,
    %c0_17 = arith.constant 0 : index
    %c0_18 = arith.constant 0 : index
    %33 = vector.load %arg7[%c0_17, %c0_18] : memref<32x512xf32, #tpu.memory_space<vmem>>, vector<32x512xf32>
    %cst_19 = arith.constant dense<0xFF800000> : vector<32xf32>
    %34 = vector.multi_reduction <maximumf>, %33, %cst_19 [1] : vector<32x512xf32> to vector<32xf32>
    %35 = vector.shape_cast %34 : vector<32xf32> to vector<32x1xf32>
    %36 = vector.broadcast %35 : vector<32x1xf32> to vector<32x512xf32>
    %37 = arith.subf %33, %36 : vector<32x512xf32>
    %38 = math.exp %37 : vector<32x512xf32>
    %cst_20 = arith.constant dense<0.000000e+00> : vector<32xf32>
    %39 = vector.multi_reduction <add>, %38, %cst_20 [1] : vector<32x512xf32> to vector<32xf32>
    %40 = vector.shape_cast %39 : vector<32xf32> to vector<32x1xf32>
    %41 = tpu.reciprocal %40 {approx = true} : vector<32x1xf32> -> vector<32x1xf32>
    %42 = vector.broadcast %41 : vector<32x1xf32> to vector<32x512xf32>
    %43 = arith.mulf %38, %42 : vector<32x512xf32>
    %44 = vector.shape_cast %43 : vector<32x512xf32> to vector<2x16x512xf32>
    %cst_21 = arith.constant dense<0xFF800000> : vector<2x512xf32>
    %45 = vector.multi_reduction <maximumf>, %44, %cst_21 [1] : vector<2x16x512xf32> to vector<2x512xf32>
    %c0_22 = arith.constant 0 : index
    %c0_23 = arith.constant 0 : index
    %c0_24 = arith.constant 0 : index
    %46 = vector.load %arg6[%c0_22, %c0_23, %c0_24] : memref<1x2x512xf32, #tpu.memory_space<vmem>>, vector<1x2x512xf32>
    %47 = vector.shape_cast %46 : vector<1x2x512xf32> to vector<2x512xf32>
    %48 = vector.shape_cast %45 : vector<2x512xf32> to vector<1x2x512xf32>
    tpu.vector_store %arg6[%c0_22, %c0_23, %c0_24], %48 {strides = array<i32>} : memref<1x2x512xf32, #tpu.memory_space<vmem>>, vector<1x2x512xf32>,
    return
  }
  func.func @transform_0(%arg0: i32) -> (i32, i32) {
    %c0_i32 = arith.constant 0 : i32
    %c0_i32_0 = arith.constant 0 : i32
    return %arg0, %c0_i32 : i32, i32
  }
  func.func @transform_1(%arg0: i32) -> (i32, i32) {
    %c0_i32 = arith.constant 0 : i32
    %c0_i32_0 = arith.constant 0 : i32
    %c0_i32_1 = arith.constant 0 : i32
    return %c0_i32, %c0_i32_0 : i32, i32
  }
  func.func @transform_2(%arg0: i32) -> (i32, i32) {
    %c0_i32 = arith.constant 0 : i32
    %c0_i32_0 = arith.constant 0 : i32
    %c0_i32_1 = arith.constant 0 : i32
    return %c0_i32, %c0_i32_0 : i32, i32
  }
  func.func @transform_3(%arg0: i32) -> (i32, i32) {
    %c0_i32 = arith.constant 0 : i32
    %c0_i32_0 = arith.constant 0 : i32
    %c0_i32_1 = arith.constant 0 : i32
    return %c0_i32, %c0_i32_0 : i32, i32
  }
  func.func @transform_4(%arg0: i32) -> (i32, i32) {
    %c0_i32 = arith.constant 0 : i32
    %c0_i32_0 = arith.constant 0 : i32
    %c0_i32_1 = arith.constant 0 : i32
    return %c0_i32, %c0_i32_0 : i32, i32
  }
  func.func @transform_5(%arg0: i32) -> (i32, i32, i32) {
    %c0_i32 = arith.constant 0 : i32
    %c0_i32_0 = arith.constant 0 : i32
    %c0_i32_1 = arith.constant 0 : i32
    return %arg0, %c0_i32, %c0_i32_0 : i32, i32, i32
  }
}

</mosaic_0001>

<bundles_post_ra>
// kernel: tpu_custom_call.1
= control target key start
LH: loop header
LB: loop body
LE: loop exit
PB: predicated region body
PF: predicated region fallthrough
CT: control target
= control target key end

     0   :  { %10 = vsyncpa [#allocation4], 0  ;;  %s11596_s0 = inlined_call_operand.hbm [shape: bf16[32,2048], index: 0, kind: input, shape index: {}]   ;;  %s11597_s1 = inlined_call_operand.hbm [shape: bf16[2048,512], index: 1, kind: input, shape index: {}]   ;;  %s11598_s2 = inlined_call_operand.hbm [shape: f32[1,512], index: 2, kind: input, shape index: {}]   ;;  %s11599_s3 = inlined_call_operand.hbm [shape: bf16[512,2048], index: 3, kind: input, shape index: {}]   ;;  %s11600_s4 = inlined_call_operand.hbm [shape: f32[1,2048], index: 4, kind: input, shape index: {}]   ;;  %s11601_s5 = inlined_call_operand.hbm [shape: f32[1,2,512], index: 5, kind: output, shape index: {}]  }
   0x1   :  { %11 = vsyncpa [#allocation7], 0 }
   0x2   :  { %12 = vsyncpa [#allocation10], 0 }
   0x3   :  { %13 = vsyncpa [#allocation5], 0  ;;  %s10554_s18 = smov [#allocation6]  }
   0x4   :  { %s31_s19 = sshll.u32 %s10554_s18, 4  ;;  %s32_s19 = int_to_ptr.vmem [resolvable:$true] %s31_s19 }
   0x5   :  { %s10434_s20 = scalar_lea.vmem %s32_s19, 65536  ;;  %p10439_p1 = scmp.lt.s32.totalorder %s32_s19, %s32_s19 }
   0x6   :  { %p10435_p0 = scmp.ne.s32.totalorder %s32_s19, %s10434_s20  ;;  %p10440_p2 = scmp.lt.s32.totalorder %s10434_s20, %s10434_s20 }
   0x8   :  { %p10441_p3 = por %p10440_p2, %p10439_p1 }
   0xa   :  { %p10442_p4 = pnand %p10441_p3, %p10435_p0 }
   0xc   :  { %10445 = shalt.err (!%p10442_p4)
}
   0xd   :  { %s10555_s21 = smov 256   ;;  %s10556_s22 = smov 16  }
   0xe   :  { %37 = dma.hbm_to_vmem [thread:$0]  %s11597_s1, 65536, %s32_s19, [#allocation7], %s10555_s21, %s10555_s21, %s10556_s22  }
   0xf   :  { %s10557_s25 = smov [#allocation9]   ;;  %s10558_s27 = smov [#allocation3]  }
  0x10   :  { %s53_s26 = sshll.u32 %s10557_s25, 4  ;;  %s19_s28 = sshll.u32 %s10558_s27, 4  ;;  %s54_s26 = int_to_ptr.vmem [resolvable:$true] %s53_s26  ;;  %s20_s28 = int_to_ptr.vmem [resolvable:$true] %s19_s28 }
  0x11   :  { %s10454_s29 = scalar_lea.vmem %s54_s26, 65536  ;;  %p10459_p6 = scmp.lt.s32.totalorder %s54_s26, %s54_s26 }
  0x12   :  { %p10455_p5 = scmp.ne.s32.totalorder %s54_s26, %s10454_s29  ;;  %p10460_p7 = scmp.lt.s32.totalorder %s10454_s29, %s10454_s29 }
  0x14   :  { %p10461_p8 = por %p10460_p7, %p10459_p6 }
  0x16   :  { %p10462_p9 = pnand %p10461_p8, %p10455_p5 }
  0x18   :  { %10465 = shalt.err (!%p10462_p9)
}
  0x19   :  { %s10559_s30 = smov 1024   ;;  %s10560_s6 = smov 64  }
  0x1a   :  { %59 = dma.hbm_to_vmem [thread:$0]  %s11599_s3, 65536, %s54_s26, [#allocation10], %s10559_s30, %s10559_s30, %s10560_s6  }
  0x1b   :  { %s10474_s1 = scalar_lea.vmem %s20_s28, 4096  ;;  %p10479_p11 = scmp.lt.s32.totalorder %s20_s28, %s20_s28 }
  0x1c   :  { %p10475_p10 = scmp.ne.s32.totalorder %s20_s28, %s10474_s1  ;;  %p10480_p12 = scmp.lt.s32.totalorder %s10474_s1, %s10474_s1 }
  0x1e   :  { %p10481_p13 = por %p10480_p12, %p10479_p11 }
  0x20   :  { %p10482_p0 = pnand %p10481_p13, %p10475_p10 }
  0x22   :  { %10485 = shalt.err (!%p10482_p0)
}
  0x23   :  { %25 = dma.hbm_to_vmem [thread:$0]  %s11596_s0, 4096, %s20_s28, [#allocation4], %s10559_s30, %s10559_s30, %s10560_s6  }
  0x24   :  { %s10561_s11 = smov [#allocation8]   ;;  %s10562_s13 = smov [#allocation11]  }
  0x25   :  { %s44_s12 = sshll.u32 %s10561_s11, 4  ;;  %s66_s14 = sshll.u32 %s10562_s13, 4  ;;  %s45_s12 = int_to_ptr.vmem [resolvable:$true] %s44_s12  ;;  %s67_s14 = int_to_ptr.vmem [resolvable:$true] %s66_s14 }
  0x26   :  { %s10494_s15 = scalar_lea.vmem %s45_s12, 64  ;;  %p10499_p2 = scmp.lt.s32.totalorder %s45_s12, %s45_s12 }
  0x27   :  { %p10495_p1 = scmp.ne.s32.totalorder %s45_s12, %s10494_s15  ;;  %p10500_p3 = scmp.lt.s32.totalorder %s10494_s15, %s10494_s15 }
  0x29   :  { %p10501_p4 = por %p10500_p3, %p10499_p2 }
  0x2b   :  { %p10502_p5 = pnand %p10501_p4, %p10495_p1 }
  0x2d   :  { %10505 = shalt.err (!%p10502_p5)
}
  0x2e   :  { %47 = dma.hbm_to_vmem [thread:$0]  %s11598_s2, 64, %s45_s12, [#allocation7]  }
  0x2f   :  { %s10514_s17 = scalar_lea.vmem %s67_s14, 256  ;;  %p10519_p7 = scmp.lt.s32.totalorder %s67_s14, %s67_s14 }
  0x30   :  { %p10515_p6 = scmp.ne.s32.totalorder %s67_s14, %s10514_s17  ;;  %p10520_p8 = scmp.lt.s32.totalorder %s10514_s17, %s10514_s17 }
  0x32   :  { %p10521_p9 = por %p10520_p8, %p10519_p7 }
  0x34   :  { %p10522_p10 = pnand %p10521_p9, %p10515_p6 }
  0x36   :  { %10525 = shalt.err (!%p10522_p10)
}
  0x37   :  { %69 = dma.hbm_to_vmem [thread:$0]  %s11600_s4, 256, %s67_s14, [#allocation10]  }
  0x38   :  { %10546 = dma.done.wait [#allocation4], 4096  }
  0x39   :  { %10547 = vsyncadd [#allocation4], 4294963200 }
  0x3a   :  { %10548 = dma.done.wait [#allocation7], 65600  }
  0x3b   :  { %10549 = vsyncadd [#allocation7], 4294901696 }
  0x3c   :  { %10550 = dma.done.wait [#allocation10], 65792  }
  0x3d   :  { %10551 = vsyncadd [#allocation10], 4294901504  ;;  %v9616_v0 = vld [vmem:[#allocation6 + $0xe4] ss:$16 sps:$4 sm:$0xff]   ;;  %v9620_v2 = vld [vmem:[#allocation6 + $0xe0] ss:$16 sps:$4 sm:$0xff]  }
  0x3e   :  { %v9618_v1 = vld [vmem:[#allocation6 + $0x2e4] ss:$16 sps:$4 sm:$0xff]   ;;  %3371 = vmatprep.subr.bf16.mxu0 %v9616_v0  ;;  %v9621_v3 = vld [vmem:[#allocation6 + $0x2e0] ss:$16 sps:$4 sm:$0xff]   ;;  %v86_v50 = vld [vmem:[#allocation3 + $0x8] sm:$0xff]  ;;  %vm8522_vm0 = vcmask 1041409  }
  0x3f   :  { %3424 = vmatprep.subr.bf16.mxu1 %v9618_v1  ;;  %v9622_v4 = vld [vmem:[#allocation6 + $0xc4] ss:$16 sps:$4 sm:$0xff]   ;;  %3372 = vmatpush1.bf16.msra.mxu0 %v9620_v2  ;;  %v9626_v6 = vld [vmem:[#allocation6 + $0xc0] ss:$16 sps:$4 sm:$0xff]   ;;  %v94_v51 = vld [vmem:[#allocation3 + $0x48] sm:$0xff]  ;;  %vm8524_vm1 = vcmask 1043459  }
  0x40   :  { %3425 = vmatpush1.bf16.msra.mxu1 %v9621_v3  ;;  %v9624_v5 = vld [vmem:[#allocation6 + $0x2c4] ss:$16 sps:$4 sm:$0xff]   ;;  %3373 = vmatprep.subr.bf16.mxu0 %v9622_v4  ;;  %v9627_v7 = vld [vmem:[#allocation6 + $0x2c0] ss:$16 sps:$4 sm:$0xff]   ;;  %v10612_v55 = vcombine.high %v86_v50, %v94_v51  ;;  %vm8526_vm2 = vcmask 1045509   ;;  %s10564_s2 = smov [#allocation12]  }
  0x41   :  { %3426 = vmatprep.subr.bf16.mxu1 %v9624_v5  ;;  %v9628_v8 = vld [vmem:[#allocation6 + $0xa4] ss:$16 sps:$4 sm:$0xff]   ;;  %v9632_v10 = vld [vmem:[#allocation6 + $0xa0] ss:$16 sps:$4 sm:$0xff]   ;;  %s8538_s4 = sshll.u32 %s10564_s2, 4  ;;  %vm8528_vm3 = vcmask 1047559   ;;  %s8539_s4 = int_to_ptr.vmem [resolvable:$true] %s8538_s4 }
  0x42   :  { %v9630_v9 = vld [vmem:[#allocation6 + $0x2a4] ss:$16 sps:$4 sm:$0xff]   ;;  %v9633_v11 = vld [vmem:[#allocation6 + $0x2a0] ss:$16 sps:$4 sm:$0xff]   ;;  %3456 = vmatprep.mubr.bf16.mxu1 %v10612_v55  ;;  %s10526_s19 = scalar_lea.vmem %s8539_s4, 128  ;;  %p10531_p12 = scmp.lt.s32.totalorder %s8539_s4, %s8539_s4 }
  0x43   :  { %3374 = vmatpush1.bf16.msra.mxu0 %v9626_v6  ;;  %v9634_v12 = vld [vmem:[#allocation6 + $0x84] ss:$16 sps:$4 sm:$0xff]   ;;  %v9638_v14 = vld [vmem:[#allocation6 + $0x80] ss:$16 sps:$4 sm:$0xff]   ;;  %p10527_p11 = scmp.ne.s32.totalorder %s8539_s4, %s10526_s19  ;;  %p10532_p13 = scmp.lt.s32.totalorder %s10526_s19, %s10526_s19 }
  0x44   :  { %3427 = vmatpush1.bf16.msra.mxu1 %v9627_v7  ;;  %3375 = vmatprep.subr.bf16.mxu0 %v9628_v8  ;;  %v9636_v13 = vld [vmem:[#allocation6 + $0x284] ss:$16 sps:$4 sm:$0xff]   ;;  %v9639_v15 = vld [vmem:[#allocation6 + $0x280] ss:$16 sps:$4 sm:$0xff]  }
  0x45   :  { %3428 = vmatprep.subr.bf16.mxu1 %v9630_v9  ;;  %v9640_v16 = vld [vmem:[#allocation6 + $0x64] ss:$16 sps:$4 sm:$0xff]   ;;  %v9644_v18 = vld [vmem:[#allocation6 + $0x60] ss:$16 sps:$4 sm:$0xff]   ;;  %v10618_v9 = vcombine.low %v86_v50, %v94_v51  ;;  %v10644_v50 = vld [vmem:[#allocation3 + $0x58] sm:$0xff]  ;;  %p10533_p0 = por %p10532_p13, %p10531_p12 }
  0x46   :  { %v9642_v17 = vld [vmem:[#allocation6 + $0x264] ss:$16 sps:$4 sm:$0xff]   ;;  %v9645_v19 = vld [vmem:[#allocation6 + $0x260] ss:$16 sps:$4 sm:$0xff]  }
  0x47   :  { %3376 = vmatpush1.bf16.msra.mxu0 %v9632_v10  ;;  %v9646_v20 = vld [vmem:[#allocation6 + $0x44] ss:$16 sps:$4 sm:$0xff]   ;;  %v9650_v22 = vld [vmem:[#allocation6 + $0x40] ss:$16 sps:$4 sm:$0xff]   ;;  %p10534_p1 = pnand %p10533_p0, %p10527_p11 }
  0x48   :  { %3429 = vmatpush1.bf16.msra.mxu1 %v9633_v11  ;;  %3377 = vmatprep.subr.bf16.mxu0 %v9634_v12  ;;  %v9648_v21 = vld [vmem:[#allocation6 + $0x244] ss:$16 sps:$4 sm:$0xff]   ;;  %v9651_v23 = vld [vmem:[#allocation6 + $0x240] ss:$16 sps:$4 sm:$0xff]  }
  0x49   :  { %3430 = vmatprep.subr.bf16.mxu1 %v9636_v13  ;;  %v9652_v24 = vld [vmem:[#allocation6 + $0x24] ss:$16 sps:$4 sm:$0xff]   ;;  %v9656_v26 = vld [vmem:[#allocation6 + $0x20] ss:$16 sps:$4 sm:$0xff]  }
  0x4a   :  { %v9654_v25 = vld [vmem:[#allocation6 + $0x224] ss:$16 sps:$4 sm:$0xff]   ;;  %v9657_v27 = vld [vmem:[#allocation6 + $0x220] ss:$16 sps:$4 sm:$0xff]  }
  0x4b   :  { %3378 = vmatpush1.bf16.msra.mxu0 %v9638_v14  ;;  %v9658_v28 = vld [vmem:[#allocation6 + $0x4] ss:$16 sps:$4 sm:$0xff]   ;;  %v9662_v30 = vld [vmem:[#allocation6] ss:$16 sps:$4 sm:$0xff]  }
  0x4c   :  { %3431 = vmatpush1.bf16.msra.mxu1 %v9639_v15  ;;  %3379 = vmatprep.subr.bf16.mxu0 %v9640_v16  ;;  %v9660_v29 = vld [vmem:[#allocation6 + $0x204] ss:$16 sps:$4 sm:$0xff]   ;;  %v9663_v31 = vld [vmem:[#allocation6 + $0x200] ss:$16 sps:$4 sm:$0xff]  }
  0x4d   :  { %3432 = vmatprep.subr.bf16.mxu1 %v9642_v17  ;;  %v9664_v32 = vld [vmem:[#allocation6 + $0x1e4] ss:$16 sps:$4 sm:$0xff]   ;;  %v9668_v34 = vld [vmem:[#allocation6 + $0x1e0] ss:$16 sps:$4 sm:$0xff]  }
  0x4e   :  { %v9666_v33 = vld [vmem:[#allocation6 + $0x3e4] ss:$16 sps:$4 sm:$0xff]   ;;  %v9669_v35 = vld [vmem:[#allocation6 + $0x3e0] ss:$16 sps:$4 sm:$0xff]  }
  0x4f   :  { %3380 = vmatpush1.bf16.msra.mxu0 %v9644_v18  ;;  %v9670_v36 = vld [vmem:[#allocation6 + $0x1c4] ss:$16 sps:$4 sm:$0xff]   ;;  %v9674_v38 = vld [vmem:[#allocation6 + $0x1c0] ss:$16 sps:$4 sm:$0xff]  }
  0x50   :  { %3433 = vmatpush1.bf16.msra.mxu1 %v9645_v19  ;;  %3381 = vmatprep.subr.bf16.mxu0 %v9646_v20  ;;  %v9672_v37 = vld [vmem:[#allocation6 + $0x3c4] ss:$16 sps:$4 sm:$0xff]   ;;  %v9675_v39 = vld [vmem:[#allocation6 + $0x3c0] ss:$16 sps:$4 sm:$0xff]  }
  0x51   :  { %3434 = vmatprep.subr.bf16.mxu1 %v9648_v21  ;;  %v9676_v40 = vld [vmem:[#allocation6 + $0x1a4] ss:$16 sps:$4 sm:$0xff]   ;;  %v9680_v42 = vld [vmem:[#allocation6 + $0x1a0] ss:$16 sps:$4 sm:$0xff]  }
  0x52   :  { %v9678_v41 = vld [vmem:[#allocation6 + $0x3a4] ss:$16 sps:$4 sm:$0xff]   ;;  %v9681_v43 = vld [vmem:[#allocation6 + $0x3a0] ss:$16 sps:$4 sm:$0xff]  }
  0x53   :  { %3382 = vmatpush1.bf16.msra.mxu0 %v9650_v22  ;;  %v9682_v44 = vld [vmem:[#allocation6 + $0x184] ss:$16 sps:$4 sm:$0xff]   ;;  %v9686_v46 = vld [vmem:[#allocation6 + $0x180] ss:$16 sps:$4 sm:$0xff]  }
  0x54   :  { %3435 = vmatpush1.bf16.msra.mxu1 %v9651_v23  ;;  %3383 = vmatprep.subr.bf16.mxu0 %v9652_v24  ;;  %v9684_v45 = vld [vmem:[#allocation6 + $0x384] ss:$16 sps:$4 sm:$0xff]   ;;  %v9687_v47 = vld [vmem:[#allocation6 + $0x380] ss:$16 sps:$4 sm:$0xff]  }
  0x55   :  { %3436 = vmatprep.subr.bf16.mxu1 %v9654_v25  ;;  %v85_v48 = vld [vmem:[#allocation3] sm:$0xff] }
  0x56   :  { %v93_v49 = vld [vmem:[#allocation3 + $0x40] sm:$0xff] }
  0x57   :  { %3384 = vmatpush1.bf16.msra.mxu0 %v9656_v26  ;;  %v9688_v52 = vld [vmem:[#allocation6 + $0x164] ss:$16 sps:$4 sm:$0xff]   ;;  %v10610_v53 = vcombine.high %v85_v48, %v93_v49  ;;  %v9692_v56 = vld [vmem:[#allocation6 + $0x160] ss:$16 sps:$4 sm:$0xff]   ;;  %v10616_v8 = vcombine.low %v85_v48, %v93_v49  ;;  %v10638_v48 = vld [vmem:[#allocation3 + $0x18] sm:$0xff] }
  0x58   :  { %3437 = vmatpush1.bf16.msra.mxu1 %v9657_v27  ;;  %3385 = vmatprep.subr.bf16.mxu0 %v9658_v28  ;;  %v9690_v54 = vld [vmem:[#allocation6 + $0x364] ss:$16 sps:$4 sm:$0xff]   ;;  %v9693_v57 = vld [vmem:[#allocation6 + $0x360] ss:$16 sps:$4 sm:$0xff]   ;;  %v10648_v51 = vcombine.high %v10638_v48, %v10644_v50 }
  0x59   :  { %3438 = vmatprep.subr.bf16.mxu1 %v9660_v29  ;;  %3403 = vmatprep.mubr.bf16.mxu0 %v10610_v53  ;;  %v9694_v58 = vld [vmem:[#allocation6 + $0x144] ss:$16 sps:$4 sm:$0xff]   ;;  %v9698_v60 = vld [vmem:[#allocation6 + $0x140] ss:$16 sps:$4 sm:$0xff]  }
  0x5a   :  { %v9696_v59 = vld [vmem:[#allocation6 + $0x344] ss:$16 sps:$4 sm:$0xff]   ;;  %v9699_v61 = vld [vmem:[#allocation6 + $0x340] ss:$16 sps:$4 sm:$0xff]  }
  0x5b   :  { %3386 = vmatpush1.bf16.msra.mxu0 %v9662_v30  ;;  %v9700_v62 = vld [vmem:[#allocation6 + $0x124] ss:$16 sps:$4 sm:$0xff]   ;;  %v9704_v0 = vld [vmem:[#allocation6 + $0x120] ss:$16 sps:$4 sm:$0xff]   ;;  %v102_v30 = vld [vmem:[#allocation3 + $0x88] sm:$0xff] }
  0x5c   :  { %3439 = vmatpush1.bf16.msra.mxu1 %v9663_v31  ;;  %3387 = vmatprep.subr.bf16.mxu0 %v9664_v32  ;;  %v9702_v63 = vld [vmem:[#allocation6 + $0x324] ss:$16 sps:$4 sm:$0xff]   ;;  %v9705_v1 = vld [vmem:[#allocation6 + $0x320] ss:$16 sps:$4 sm:$0xff]   ;;  %v110_v31 = vld [vmem:[#allocation3 + $0xc8] sm:$0xff] }
  0x5d   :  { %3440 = vmatprep.subr.bf16.mxu1 %v9666_v33  ;;  %v9706_v2 = vld [vmem:[#allocation6 + $0x104] ss:$16 sps:$4 sm:$0xff]   ;;  %v9710_v4 = vld [vmem:[#allocation6 + $0x100] ss:$16 sps:$4 sm:$0xff]  }
  0x5e   :  { %v9708_v3 = vld [vmem:[#allocation6 + $0x304] ss:$16 sps:$4 sm:$0xff]   ;;  %v9711_v5 = vld [vmem:[#allocation6 + $0x300] ss:$16 sps:$4 sm:$0xff]  }
  0x5f   :  { %3388 = vmatpush2.bf16.msra.mxu0 %v9668_v34  ;;  %v9714_v6 = vld [vmem:[#allocation6 + $0x4e4] ss:$16 sps:$4 sm:$0xff]   ;;  %v9712_v10 = vld [vmem:[#allocation6 + $0x4e0] ss:$16 sps:$4 sm:$0xff]  }
  0x60   :  { %3441 = vmatpush2.bf16.msra.mxu1 %v9669_v35  ;;  %3389 = vmatprep.subr.bf16.mxu0 %v9670_v36  ;;  %v9717_v7 = vld [vmem:[#allocation6 + $0x6e4] ss:$16 sps:$4 sm:$0xff]   ;;  %v9715_v11 = vld [vmem:[#allocation6 + $0x6e0] ss:$16 sps:$4 sm:$0xff]   ;;  %v10626_v35 = vcombine.high %v102_v30, %v110_v31 }
  0x61   :  { %3442 = vmatprep.subr.bf16.mxu1 %v9672_v37  ;;  %v9720_v12 = vld [vmem:[#allocation6 + $0x4c4] ss:$16 sps:$4 sm:$0xff]   ;;  %v9718_v14 = vld [vmem:[#allocation6 + $0x4c0] ss:$16 sps:$4 sm:$0xff]   ;;  %v10628_v37 = vcombine.low %v102_v30, %v110_v31 }
  0x62   :  { %v9723_v13 = vld [vmem:[#allocation6 + $0x6c4] ss:$16 sps:$4 sm:$0xff]   ;;  %v9721_v15 = vld [vmem:[#allocation6 + $0x6c0] ss:$16 sps:$4 sm:$0xff]  }
  0x63   :  { %3390 = vmatpush2.bf16.msra.mxu0 %v9674_v38  ;;  %v9726_v16 = vld [vmem:[#allocation6 + $0x4a4] ss:$16 sps:$4 sm:$0xff]   ;;  %v9724_v18 = vld [vmem:[#allocation6 + $0x4a0] ss:$16 sps:$4 sm:$0xff]  }
  0x64   :  { %3443 = vmatpush2.bf16.msra.mxu1 %v9675_v39  ;;  %3391 = vmatprep.subr.bf16.mxu0 %v9676_v40  ;;  %v9729_v17 = vld [vmem:[#allocation6 + $0x6a4] ss:$16 sps:$4 sm:$0xff]   ;;  %v9727_v19 = vld [vmem:[#allocation6 + $0x6a0] ss:$16 sps:$4 sm:$0xff]  }
  0x65   :  { %3444 = vmatprep.subr.bf16.mxu1 %v9678_v41  ;;  %v9732_v20 = vld [vmem:[#allocation6 + $0x484] ss:$16 sps:$4 sm:$0xff]   ;;  %v9730_v22 = vld [vmem:[#allocation6 + $0x480] ss:$16 sps:$4 sm:$0xff]  }
  0x66   :  { %v9735_v21 = vld [vmem:[#allocation6 + $0x684] ss:$16 sps:$4 sm:$0xff]   ;;  %v9733_v23 = vld [vmem:[#allocation6 + $0x680] ss:$16 sps:$4 sm:$0xff]  }
  0x67   :  { %3392 = vmatpush2.bf16.msra.mxu0 %v9680_v42  ;;  %v9738_v24 = vld [vmem:[#allocation6 + $0x464] ss:$16 sps:$4 sm:$0xff]   ;;  %v9736_v26 = vld [vmem:[#allocation6 + $0x460] ss:$16 sps:$4 sm:$0xff]  }
  0x68   :  { %3445 = vmatpush2.bf16.msra.mxu1 %v9681_v43  ;;  %3393 = vmatprep.subr.bf16.mxu0 %v9682_v44  ;;  %v9741_v25 = vld [vmem:[#allocation6 + $0x664] ss:$16 sps:$4 sm:$0xff]   ;;  %v9739_v27 = vld [vmem:[#allocation6 + $0x660] ss:$16 sps:$4 sm:$0xff]  }
  0x69   :  { %3446 = vmatprep.subr.bf16.mxu1 %v9684_v45  ;;  %v101_v28 = vld [vmem:[#allocation3 + $0x80] sm:$0xff]  ;;  %v103_v30 = vld [vmem:[#allocation3 + $0x90] sm:$0xff] }
  0x6a   :  { %v109_v29 = vld [vmem:[#allocation3 + $0xc0] sm:$0xff]  ;;  %v111_v31 = vld [vmem:[#allocation3 + $0xd0] sm:$0xff] }
  0x6b   :  { %3394 = vmatpush2.bf16.msra.mxu0 %v9686_v46  ;;  %v9744_v32 = vld [vmem:[#allocation6 + $0x444] ss:$16 sps:$4 sm:$0xff]   ;;  %v10622_v33 = vcombine.high %v101_v28, %v109_v29  ;;  %v10624_v34 = vcombine.low %v101_v28, %v109_v29  ;;  %v9742_v38 = vld [vmem:[#allocation6 + $0x440] ss:$16 sps:$4 sm:$0xff]  }
  0x6c   :  { %3447 = vmatpush2.bf16.msra.mxu1 %v9687_v47  ;;  %3395 = vmatprep.subr.bf16.mxu0 %v9688_v52  ;;  %v9747_v36 = vld [vmem:[#allocation6 + $0x644] ss:$16 sps:$4 sm:$0xff]   ;;  %v9745_v39 = vld [vmem:[#allocation6 + $0x640] ss:$16 sps:$4 sm:$0xff]  }
  0x6d   :  { %3448 = vmatprep.subr.bf16.mxu1 %v9690_v54  ;;  %v9750_v40 = vld [vmem:[#allocation6 + $0x424] ss:$16 sps:$4 sm:$0xff]   ;;  %v9748_v42 = vld [vmem:[#allocation6 + $0x420] ss:$16 sps:$4 sm:$0xff]  }
  0x6e   :  { %v9753_v41 = vld [vmem:[#allocation6 + $0x624] ss:$16 sps:$4 sm:$0xff]   ;;  %v9751_v43 = vld [vmem:[#allocation6 + $0x620] ss:$16 sps:$4 sm:$0xff]  }
  0x6f   :  { %3396 = vmatpush2.bf16.msra.mxu0 %v9692_v56  ;;  %v9756_v44 = vld [vmem:[#allocation6 + $0x404] ss:$16 sps:$4 sm:$0xff]   ;;  %v9754_v52 = vld [vmem:[#allocation6 + $0x400] ss:$16 sps:$4 sm:$0xff]  }
  0x70   :  { %3449 = vmatpush2.bf16.msra.mxu1 %v9693_v57  ;;  %3397 = vmatprep.subr.bf16.mxu0 %v9694_v58  ;;  %v9759_v45 = vld [vmem:[#allocation6 + $0x604] ss:$16 sps:$4 sm:$0xff]   ;;  %v9757_v54 = vld [vmem:[#allocation6 + $0x600] ss:$16 sps:$4 sm:$0xff]  }
  0x71   :  { %3450 = vmatprep.subr.bf16.mxu1 %v9696_v59  ;;  %v10634_v46 = vld [vmem:[#allocation3 + $0x10] sm:$0xff] }
  0x72   :  { %v10636_v47 = vld [vmem:[#allocation3 + $0x50] sm:$0xff] }
  0x73   :  { %3398 = vmatpush2.bf16.msra.mxu0 %v9698_v60  ;;  %v10642_v49 = vcombine.high %v10634_v46, %v10636_v47  ;;  %v9762_v56 = vld [vmem:[#allocation6 + $0x5e4] ss:$16 sps:$4 sm:$0xff]   ;;  %v9760_v58 = vld [vmem:[#allocation6 + $0x5e0] ss:$16 sps:$4 sm:$0xff]  }
  0x74   :  { %3451 = vmatpush2.bf16.msra.mxu1 %v9699_v61  ;;  %3399 = vmatprep.subr.bf16.mxu0 %v9700_v62  ;;  %v9765_v57 = vld [vmem:[#allocation6 + $0x7e4] ss:$16 sps:$4 sm:$0xff]   ;;  %v9763_v59 = vld [vmem:[#allocation6 + $0x7e0] ss:$16 sps:$4 sm:$0xff]  }
  0x75   :  { %3452 = vmatprep.subr.bf16.mxu1 %v9702_v63  ;;  %v9768_v60 = vld [vmem:[#allocation6 + $0x5c4] ss:$16 sps:$4 sm:$0xff]   ;;  %v9766_v62 = vld [vmem:[#allocation6 + $0x5c0] ss:$16 sps:$4 sm:$0xff]  }
  0x76   :  { %v9771_v61 = vld [vmem:[#allocation6 + $0x7c4] ss:$16 sps:$4 sm:$0xff]   ;;  %v9769_v63 = vld [vmem:[#allocation6 + $0x7c0] ss:$16 sps:$4 sm:$0xff]  }
  0x77   :  { %3400 = vmatpush2.bf16.msra.mxu0 %v9704_v0  ;;  %v9774_v0 = vld [vmem:[#allocation6 + $0x5a4] ss:$16 sps:$4 sm:$0xff]   ;;  %v9808_v28 = vld [vmem:[#allocation6 + $0x8e0] ss:$16 sps:$4 sm:$0xff]  }
  0x78   :  { %3453 = vmatpush2.bf16.msra.mxu1 %v9705_v1  ;;  %3401 = vmatprep.subr.bf16.mxu0 %v9706_v2  ;;  %v9777_v1 = vld [vmem:[#allocation6 + $0x7a4] ss:$16 sps:$4 sm:$0xff]   ;;  %v9772_v2 = vld [vmem:[#allocation6 + $0x5a0] ss:$16 sps:$4 sm:$0xff]  }
  0x79   :  { %3454 = vmatprep.subr.bf16.mxu1 %v9708_v3  ;;  %v9775_v3 = vld [vmem:[#allocation6 + $0x7a0] ss:$16 sps:$4 sm:$0xff]  }
  0x7a   :  { %v9811_v29 = vld [vmem:[#allocation6 + $0xae0] ss:$16 sps:$4 sm:$0xff]  }
  0x7b   :  { %3402 = vmatpush2.bf16.msra.mxu0 %v9710_v4  ;;  %v9780_v4 = vld [vmem:[#allocation6 + $0x584] ss:$16 sps:$4 sm:$0xff]  }
  0x7c   :  { %3455 = vmatpush2.bf16.msra.mxu1 %v9711_v5  ;;  %3477 = vmatprep.subr.bf16.mxu0 %v9714_v6  ;;  %v9783_v5 = vld [vmem:[#allocation6 + $0x784] ss:$16 sps:$4 sm:$0xff]   ;;  %v9778_v6 = vld [vmem:[#allocation6 + $0x580] ss:$16 sps:$4 sm:$0xff]  }
  0x7d   :  { %3530 = vmatprep.subr.bf16.mxu1 %v9717_v7  ;;  %v9781_v7 = vld [vmem:[#allocation6 + $0x780] ss:$16 sps:$4 sm:$0xff]  }
  0x7e   :  { %3404 = vmatmul.mubr.bf16.vlgmr.msra.gmra.mxu0 %v10616_v8 }
  0x7f   :  { %3457 = vmatmul.mubr.bf16.vlgmr.msra.gmra.mxu1 %v10618_v9  ;;  %3478 = vmatpush1.bf16.msra.mxu0 %v9712_v10  ;;  %v9786_v10 = vld [vmem:[#allocation6 + $0x564] ss:$16 sps:$4 sm:$0xff]  }
  0x80   :  { %3531 = vmatpush1.bf16.msra.mxu1 %v9715_v11  ;;  %3479 = vmatprep.subr.bf16.mxu0 %v9720_v12  ;;  %v9789_v11 = vld [vmem:[#allocation6 + $0x764] ss:$16 sps:$4 sm:$0xff]   ;;  %v9784_v12 = vld [vmem:[#allocation6 + $0x560] ss:$16 sps:$4 sm:$0xff]  }
  0x81   :  { %3532 = vmatprep.subr.bf16.mxu1 %v9723_v13  ;;  %3413 = vmatprep.mubr.bf16.mxu0 %v10622_v33  ;;  %v9787_v13 = vld [vmem:[#allocation6 + $0x760] ss:$16 sps:$4 sm:$0xff]  }
  0x82   :  { %3466 = vmatprep.mubr.bf16.mxu1 %v10626_v35 }
  0x83   :  { %3480 = vmatpush1.bf16.msra.mxu0 %v9718_v14  ;;  %v9792_v14 = vld [vmem:[#allocation6 + $0x544] ss:$16 sps:$4 sm:$0xff]  }
  0x84   :  { %3533 = vmatpush1.bf16.msra.mxu1 %v9721_v15  ;;  %3481 = vmatprep.subr.bf16.mxu0 %v9726_v16  ;;  %v9795_v15 = vld [vmem:[#allocation6 + $0x744] ss:$16 sps:$4 sm:$0xff]   ;;  %v9790_v16 = vld [vmem:[#allocation6 + $0x540] ss:$16 sps:$4 sm:$0xff]  }
  0x85   :  { %3534 = vmatprep.subr.bf16.mxu1 %v9729_v17  ;;  %v9793_v17 = vld [vmem:[#allocation6 + $0x740] ss:$16 sps:$4 sm:$0xff]  }
  0x86   :  { %3414 = vmatmul.mubr.bf16.gmra.mxu0 %v10624_v34 }
  0x87   :  { %3482 = vmatpush1.bf16.msra.mxu0 %v9724_v18  ;;  %3467 = vmatmul.mubr.bf16.gmra.mxu1 %v10628_v37  ;;  %v9798_v18 = vld [vmem:[#allocation6 + $0x524] ss:$16 sps:$4 sm:$0xff]  }
  0x88   :  { %3535 = vmatpush1.bf16.msra.mxu1 %v9727_v19  ;;  %3483 = vmatprep.subr.bf16.mxu0 %v9732_v20  ;;  %v9801_v19 = vld [vmem:[#allocation6 + $0x724] ss:$16 sps:$4 sm:$0xff]   ;;  %v9796_v20 = vld [vmem:[#allocation6 + $0x520] ss:$16 sps:$4 sm:$0xff]  }
  0x89   :  { %3536 = vmatprep.subr.bf16.mxu1 %v9735_v21  ;;  %3509 = vmatprep.mubr.bf16.mxu0 %v10642_v49  ;;  %v9799_v21 = vld [vmem:[#allocation6 + $0x720] ss:$16 sps:$4 sm:$0xff]  }
  0x8a   :  { %3562 = vmatprep.mubr.bf16.mxu1 %v10648_v51 }
  0x8b   :  { %3484 = vmatpush1.bf16.msra.mxu0 %v9730_v22  ;;  %v9804_v22 = vld [vmem:[#allocation6 + $0x504] ss:$16 sps:$4 sm:$0xff]  }
  0x8c   :  { %3537 = vmatpush1.bf16.msra.mxu1 %v9733_v23  ;;  %3485 = vmatprep.subr.bf16.mxu0 %v9738_v24  ;;  %v9807_v23 = vld [vmem:[#allocation6 + $0x704] ss:$16 sps:$4 sm:$0xff]   ;;  %v9802_v24 = vld [vmem:[#allocation6 + $0x500] ss:$16 sps:$4 sm:$0xff]  }
  0x8d   :  { %3538 = vmatprep.subr.bf16.mxu1 %v9741_v25  ;;  %v9805_v25 = vld [vmem:[#allocation6 + $0x700] ss:$16 sps:$4 sm:$0xff]  }
  0x8f   :  { %3486 = vmatpush1.bf16.msra.mxu0 %v9736_v26  ;;  %v9810_v26 = vld [vmem:[#allocation6 + $0x8e4] ss:$16 sps:$4 sm:$0xff]  }
  0x90   :  { %3539 = vmatpush1.bf16.msra.mxu1 %v9739_v27  ;;  %3487 = vmatprep.subr.bf16.mxu0 %v9744_v32  ;;  %v9813_v27 = vld [vmem:[#allocation6 + $0xae4] ss:$16 sps:$4 sm:$0xff]   ;;  %v10654_v32 = vcombine.low %v10634_v46, %v10636_v47 }
  0x91   :  { %3540 = vmatprep.subr.bf16.mxu1 %v9747_v36  ;;  %v10658_v36 = vcombine.low %v10638_v48, %v10644_v50  ;;  %v9822_v46 = vld [vmem:[#allocation6 + $0x8a4] ss:$16 sps:$4 sm:$0xff]   ;;  %v9820_v48 = vld [vmem:[#allocation6 + $0x8a0] ss:$16 sps:$4 sm:$0xff]  }
  0x92   :  { %v9825_v47 = vld [vmem:[#allocation6 + $0xaa4] ss:$16 sps:$4 sm:$0xff]   ;;  %v9823_v50 = vld [vmem:[#allocation6 + $0xaa0] ss:$16 sps:$4 sm:$0xff]  }
  0x93   :  { %3488 = vmatpush1.bf16.msra.mxu0 %v9742_v38  ;;  %v104_v38 = vld [vmem:[#allocation3 + $0x98] sm:$0xff] }
  0x94   :  { %3541 = vmatpush1.bf16.msra.mxu1 %v9745_v39  ;;  %3489 = vmatprep.subr.bf16.mxu0 %v9750_v40  ;;  %v112_v39 = vld [vmem:[#allocation3 + $0xd8] sm:$0xff]  ;;  %v9816_v40 = vld [vmem:[#allocation6 + $0x8c4] ss:$16 sps:$4 sm:$0xff]  }
  0x95   :  { %3542 = vmatprep.subr.bf16.mxu1 %v9753_v41  ;;  %v9819_v41 = vld [vmem:[#allocation6 + $0xac4] ss:$16 sps:$4 sm:$0xff]  }
  0x97   :  { %3490 = vmatpush1.bf16.msra.mxu0 %v9748_v42  ;;  %v10660_v42 = vcombine.high %v103_v30, %v111_v31 }
  0x98   :  { %3543 = vmatpush1.bf16.msra.mxu1 %v9751_v43  ;;  %3491 = vmatprep.subr.bf16.mxu0 %v9756_v44  ;;  %v10662_v43 = vcombine.high %v104_v38, %v112_v39  ;;  %v9814_v44 = vld [vmem:[#allocation6 + $0x8c0] ss:$16 sps:$4 sm:$0xff]  }
  0x99   :  { %3544 = vmatprep.subr.bf16.mxu1 %v9759_v45  ;;  %v9817_v45 = vld [vmem:[#allocation6 + $0xac0] ss:$16 sps:$4 sm:$0xff]  }
  0x9b   :  { %3492 = vmatpush1.bf16.msra.mxu0 %v9754_v52  ;;  %v10668_v52 = vld [vmem:[#allocation3 + $0x20] sm:$0xff] }
  0x9c   :  { %3545 = vmatpush1.bf16.msra.mxu1 %v9757_v54  ;;  %3493 = vmatprep.subr.bf16.mxu0 %v9762_v56  ;;  %v10670_v54 = vld [vmem:[#allocation3 + $0x60] sm:$0xff]  ;;  %v10672_v56 = vcombine.low %v103_v30, %v111_v31 }
  0x9d   :  { %3546 = vmatprep.subr.bf16.mxu1 %v9765_v57  ;;  %v10674_v57 = vcombine.low %v104_v38, %v112_v39  ;;  %v9868_v30 = vld [vmem:[#allocation6 + $0x9a0] ss:$16 sps:$4 sm:$0xff]   ;;  %v9876_v38 = vld [vmem:[#allocation6 + $0x984] ss:$16 sps:$4 sm:$0xff]  }
  0x9e   :  { %v9871_v31 = vld [vmem:[#allocation6 + $0xba0] ss:$16 sps:$4 sm:$0xff]   ;;  %v9879_v39 = vld [vmem:[#allocation6 + $0xb84] ss:$16 sps:$4 sm:$0xff]  }
  0x9f   :  { %3494 = vmatpush2.bf16.msra.mxu0 %v9760_v58  ;;  %v10676_v58 = vld [vmem:[#allocation3 + $0x28] sm:$0xff] }
  0xa0   :  { %3547 = vmatpush2.bf16.msra.mxu1 %v9763_v59  ;;  %3495 = vmatprep.subr.bf16.mxu0 %v9768_v60  ;;  %v10678_v59 = vld [vmem:[#allocation3 + $0x68] sm:$0xff]  ;;  %v9828_v60 = vld [vmem:[#allocation6 + $0x884] ss:$16 sps:$4 sm:$0xff]  }
  0xa1   :  { %3548 = vmatprep.subr.bf16.mxu1 %v9771_v61  ;;  %v9831_v61 = vld [vmem:[#allocation6 + $0xa84] ss:$16 sps:$4 sm:$0xff]  }
  0xa3   :  { %3496 = vmatpush2.bf16.msra.mxu0 %v9766_v62  ;;  %v10682_v62 = vcombine.high %v10668_v52, %v10670_v54 }
  0xa4   :  { %3549 = vmatpush2.bf16.msra.mxu1 %v9769_v63  ;;  %3497 = vmatprep.subr.bf16.mxu0 %v9774_v0  ;;  %v10686_v63 = vcombine.high %v10676_v58, %v10678_v59  ;;  %v9826_v0 = vld [vmem:[#allocation6 + $0x880] ss:$16 sps:$4 sm:$0xff]  }
  0xa5   :  { %3550 = vmatprep.subr.bf16.mxu1 %v9777_v1  ;;  %v9829_v1 = vld [vmem:[#allocation6 + $0xa80] ss:$16 sps:$4 sm:$0xff]  }
  0xa7   :  { %3498 = vmatpush2.bf16.msra.mxu0 %v9772_v2  ;;  %v9834_v2 = vld [vmem:[#allocation6 + $0x864] ss:$16 sps:$4 sm:$0xff]  }
  0xa8   :  { %3551 = vmatpush2.bf16.msra.mxu1 %v9775_v3  ;;  %3499 = vmatprep.subr.bf16.mxu0 %v9780_v4  ;;  %v9837_v3 = vld [vmem:[#allocation6 + $0xa64] ss:$16 sps:$4 sm:$0xff]   ;;  %v9832_v4 = vld [vmem:[#allocation6 + $0x860] ss:$16 sps:$4 sm:$0xff]  }
  0xa9   :  { %3552 = vmatprep.subr.bf16.mxu1 %v9783_v5  ;;  %v9835_v5 = vld [vmem:[#allocation6 + $0xa60] ss:$16 sps:$4 sm:$0xff]  }
  0xab   :  { %3500 = vmatpush2.bf16.msra.mxu0 %v9778_v6  ;;  %v9840_v6 = vld [vmem:[#allocation6 + $0x844] ss:$16 sps:$4 sm:$0xff]  }
  0xac   :  { %3553 = vmatpush2.bf16.msra.mxu1 %v9781_v7  ;;  %3501 = vmatprep.subr.bf16.mxu0 %v9786_v10  ;;  %v9843_v7 = vld [vmem:[#allocation6 + $0xa44] ss:$16 sps:$4 sm:$0xff]   ;;  %v9838_v10 = vld [vmem:[#allocation6 + $0x840] ss:$16 sps:$4 sm:$0xff]  }
  0xad   :  { %3554 = vmatprep.subr.bf16.mxu1 %v9789_v11  ;;  %v9841_v11 = vld [vmem:[#allocation6 + $0xa40] ss:$16 sps:$4 sm:$0xff]  }
  0xaf   :  { %3502 = vmatpush2.bf16.msra.mxu0 %v9784_v12  ;;  %v9846_v12 = vld [vmem:[#allocation6 + $0x824] ss:$16 sps:$4 sm:$0xff]  }
  0xb0   :  { %3555 = vmatpush2.bf16.msra.mxu1 %v9787_v13  ;;  %3503 = vmatprep.subr.bf16.mxu0 %v9792_v14  ;;  %v9849_v13 = vld [vmem:[#allocation6 + $0xa24] ss:$16 sps:$4 sm:$0xff]   ;;  %v9844_v14 = vld [vmem:[#allocation6 + $0x820] ss:$16 sps:$4 sm:$0xff]  }
  0xb1   :  { %3556 = vmatprep.subr.bf16.mxu1 %v9795_v15  ;;  %v9847_v15 = vld [vmem:[#allocation6 + $0xa20] ss:$16 sps:$4 sm:$0xff]  }
  0xb3   :  { %3504 = vmatpush2.bf16.msra.mxu0 %v9790_v16  ;;  %v9852_v16 = vld [vmem:[#allocation6 + $0x804] ss:$16 sps:$4 sm:$0xff]  }
  0xb4   :  { %3557 = vmatpush2.bf16.msra.mxu1 %v9793_v17  ;;  %3505 = vmatprep.subr.bf16.mxu0 %v9798_v18  ;;  %v9855_v17 = vld [vmem:[#allocation6 + $0xa04] ss:$16 sps:$4 sm:$0xff]   ;;  %v9850_v18 = vld [vmem:[#allocation6 + $0x800] ss:$16 sps:$4 sm:$0xff]  }
  0xb5   :  { %3558 = vmatprep.subr.bf16.mxu1 %v9801_v19  ;;  %v9853_v19 = vld [vmem:[#allocation6 + $0xa00] ss:$16 sps:$4 sm:$0xff]  }
  0xb7   :  { %3506 = vmatpush2.bf16.msra.mxu0 %v9796_v20  ;;  %v9858_v20 = vld [vmem:[#allocation6 + $0x9e4] ss:$16 sps:$4 sm:$0xff]  }
  0xb8   :  { %3559 = vmatpush2.bf16.msra.mxu1 %v9799_v21  ;;  %3507 = vmatprep.subr.bf16.mxu0 %v9804_v22  ;;  %v9861_v21 = vld [vmem:[#allocation6 + $0xbe4] ss:$16 sps:$4 sm:$0xff]   ;;  %v9856_v22 = vld [vmem:[#allocation6 + $0x9e0] ss:$16 sps:$4 sm:$0xff]  }
  0xb9   :  { %3560 = vmatprep.subr.bf16.mxu1 %v9807_v23  ;;  %v9859_v23 = vld [vmem:[#allocation6 + $0xbe0] ss:$16 sps:$4 sm:$0xff]  }
  0xbb   :  { %3508 = vmatpush2.bf16.msra.mxu0 %v9802_v24  ;;  %v9864_v24 = vld [vmem:[#allocation6 + $0x9c4] ss:$16 sps:$4 sm:$0xff]  }
  0xbc   :  { %3561 = vmatpush2.bf16.msra.mxu1 %v9805_v25  ;;  %3583 = vmatprep.subr.bf16.mxu0 %v9810_v26  ;;  %v9867_v25 = vld [vmem:[#allocation6 + $0xbc4] ss:$16 sps:$4 sm:$0xff]   ;;  %v9862_v26 = vld [vmem:[#allocation6 + $0x9c0] ss:$16 sps:$4 sm:$0xff]  }
  0xbd   :  { %3636 = vmatprep.subr.bf16.mxu1 %v9813_v27  ;;  %v9865_v27 = vld [vmem:[#allocation6 + $0xbc0] ss:$16 sps:$4 sm:$0xff]  }
  0xbe   :  { %3510 = vmatmul.mubr.bf16.vlgmr.msra.gmra.mxu0 %v10654_v32 }
  0xbf   :  { %3563 = vmatmul.mubr.bf16.vlgmr.msra.gmra.mxu1 %v10658_v36  ;;  %3584 = vmatpush1.bf16.msra.mxu0 %v9808_v28  ;;  %v9870_v28 = vld [vmem:[#allocation6 + $0x9a4] ss:$16 sps:$4 sm:$0xff]  }
  0xc0   :  { %3637 = vmatpush1.bf16.msra.mxu1 %v9811_v29  ;;  %3585 = vmatprep.subr.bf16.mxu0 %v9816_v40  ;;  %v9873_v29 = vld [vmem:[#allocation6 + $0xba4] ss:$16 sps:$4 sm:$0xff]   ;;  %v9874_v40 = vld [vmem:[#allocation6 + $0x980] ss:$16 sps:$4 sm:$0xff]  }
  0xc1   :  { %3638 = vmatprep.subr.bf16.mxu1 %v9819_v41  ;;  %3519 = vmatprep.mubr.bf16.mxu0 %v10660_v42  ;;  %v9877_v41 = vld [vmem:[#allocation6 + $0xb80] ss:$16 sps:$4 sm:$0xff]  }
  0xc2   :  { %3572 = vmatprep.mubr.bf16.mxu1 %v10662_v43 }
  0xc3   :  { %3586 = vmatpush1.bf16.msra.mxu0 %v9814_v44  ;;  %v9882_v44 = vld [vmem:[#allocation6 + $0x964] ss:$16 sps:$4 sm:$0xff]  }
  0xc4   :  { %3639 = vmatpush1.bf16.msra.mxu1 %v9817_v45  ;;  %3587 = vmatprep.subr.bf16.mxu0 %v9822_v46  ;;  %v9885_v45 = vld [vmem:[#allocation6 + $0xb64] ss:$16 sps:$4 sm:$0xff]   ;;  %v9880_v46 = vld [vmem:[#allocation6 + $0x960] ss:$16 sps:$4 sm:$0xff]  }
  0xc5   :  { %3640 = vmatprep.subr.bf16.mxu1 %v9825_v47  ;;  %v9883_v47 = vld [vmem:[#allocation6 + $0xb60] ss:$16 sps:$4 sm:$0xff]  }
  0xc6   :  { %3520 = vmatmul.mubr.bf16.gmra.mxu0 %v10672_v56 }
  0xc7   :  { %3573 = vmatmul.mubr.bf16.gmra.mxu1 %v10674_v57  ;;  %3588 = vmatpush1.bf16.msra.mxu0 %v9820_v48  ;;  %v9888_v48 = vld [vmem:[#allocation6 + $0x944] ss:$16 sps:$4 sm:$0xff]  }
  0xc8   :  { %3641 = vmatpush1.bf16.msra.mxu1 %v9823_v50  ;;  %3589 = vmatprep.subr.bf16.mxu0 %v9828_v60  ;;  %v9891_v50 = vld [vmem:[#allocation6 + $0xb44] ss:$16 sps:$4 sm:$0xff]   ;;  %v9886_v60 = vld [vmem:[#allocation6 + $0x940] ss:$16 sps:$4 sm:$0xff]  }
  0xc9   :  { %3642 = vmatprep.subr.bf16.mxu1 %v9831_v61  ;;  %3615 = vmatprep.mubr.bf16.mxu0 %v10682_v62  ;;  %v9889_v61 = vld [vmem:[#allocation6 + $0xb40] ss:$16 sps:$4 sm:$0xff]  }
  0xca   :  { %3668 = vmatprep.mubr.bf16.mxu1 %v10686_v63 }
  0xcb   :  { %3590 = vmatpush1.bf16.msra.mxu0 %v9826_v0  ;;  %v9894_v0 = vld [vmem:[#allocation6 + $0x924] ss:$16 sps:$4 sm:$0xff]  }
  0xcc   :  { %3643 = vmatpush1.bf16.msra.mxu1 %v9829_v1  ;;  %3591 = vmatprep.subr.bf16.mxu0 %v9834_v2  ;;  %v9897_v1 = vld [vmem:[#allocation6 + $0xb24] ss:$16 sps:$4 sm:$0xff]   ;;  %v9892_v2 = vld [vmem:[#allocation6 + $0x920] ss:$16 sps:$4 sm:$0xff]  }
  0xcd   :  { %3644 = vmatprep.subr.bf16.mxu1 %v9837_v3  ;;  %v9895_v3 = vld [vmem:[#allocation6 + $0xb20] ss:$16 sps:$4 sm:$0xff]  }
  0xcf   :  { %3592 = vmatpush1.bf16.msra.mxu0 %v9832_v4  ;;  %v9900_v4 = vld [vmem:[#allocation6 + $0x904] ss:$16 sps:$4 sm:$0xff]  }
  0xd0   :  { %3645 = vmatpush1.bf16.msra.mxu1 %v9835_v5  ;;  %3593 = vmatprep.subr.bf16.mxu0 %v9840_v6  ;;  %v9903_v5 = vld [vmem:[#allocation6 + $0xb04] ss:$16 sps:$4 sm:$0xff]   ;;  %v9898_v6 = vld [vmem:[#allocation6 + $0x900] ss:$16 sps:$4 sm:$0xff]  }
  0xd1   :  { %3646 = vmatprep.subr.bf16.mxu1 %v9843_v7  ;;  %v9901_v7 = vld [vmem:[#allocation6 + $0xb00] ss:$16 sps:$4 sm:$0xff]  }
  0xd3   :  { %3594 = vmatpush1.bf16.msra.mxu0 %v9838_v10  ;;  %v9906_v10 = vld [vmem:[#allocation6 + $0xce4] ss:$16 sps:$4 sm:$0xff]  }
  0xd4   :  { %3647 = vmatpush1.bf16.msra.mxu1 %v9841_v11  ;;  %3595 = vmatprep.subr.bf16.mxu0 %v9846_v12  ;;  %v9909_v11 = vld [vmem:[#allocation6 + $0xee4] ss:$16 sps:$4 sm:$0xff]  }
  0xd5   :  { %3648 = vmatprep.subr.bf16.mxu1 %v9849_v13  ;;  %v105_v12 = vld [vmem:[#allocation3 + $0xa0] sm:$0xff] }
  0xd6   :  { %v9904_v13 = vld [vmem:[#allocation6 + $0xce0] ss:$16 sps:$4 sm:$0xff]  }
  0xd7   :  { %3596 = vmatpush1.bf16.msra.mxu0 %v9844_v14  ;;  %v113_v14 = vld [vmem:[#allocation3 + $0xe0] sm:$0xff] }
  0xd8   :  { %3649 = vmatpush1.bf16.msra.mxu1 %v9847_v15  ;;  %3597 = vmatprep.subr.bf16.mxu0 %v9852_v16  ;;  %v106_v15 = vld [vmem:[#allocation3 + $0xa8] sm:$0xff]  ;;  %v10694_v16 = vcombine.low %v10668_v52, %v10670_v54  ;;  %v9913_v52 = vld [vmem:[#allocation6 + $0xec0] ss:$16 sps:$4 sm:$0xff]   ;;  %v9918_v54 = vld [vmem:[#allocation6 + $0xca4] ss:$16 sps:$4 sm:$0xff]  }
  0xd9   :  { %3650 = vmatprep.subr.bf16.mxu1 %v9855_v17  ;;  %v10698_v17 = vcombine.low %v10676_v58, %v10678_v59  ;;  %v9921_v58 = vld [vmem:[#allocation6 + $0xea4] ss:$16 sps:$4 sm:$0xff]  }
  0xda   :  { %v10706_v59 = vld [vmem:[#allocation3 + $0x30] sm:$0xff] }
  0xdb   :  { %3598 = vmatpush1.bf16.msra.mxu0 %v9850_v18  ;;  %v114_v18 = vld [vmem:[#allocation3 + $0xe8] sm:$0xff] }
  0xdc   :  { %3651 = vmatpush1.bf16.msra.mxu1 %v9853_v19  ;;  %3599 = vmatprep.subr.bf16.mxu0 %v9858_v20  ;;  %v9907_v19 = vld [vmem:[#allocation6 + $0xee0] ss:$16 sps:$4 sm:$0xff]   ;;  %v9912_v20 = vld [vmem:[#allocation6 + $0xcc4] ss:$16 sps:$4 sm:$0xff]  }
  0xdd   :  { %3652 = vmatprep.subr.bf16.mxu1 %v9861_v21  ;;  %v9915_v21 = vld [vmem:[#allocation6 + $0xec4] ss:$16 sps:$4 sm:$0xff]  }
  0xdf   :  { %3600 = vmatpush2.bf16.msra.mxu0 %v9856_v22  ;;  %v9910_v22 = vld [vmem:[#allocation6 + $0xcc0] ss:$16 sps:$4 sm:$0xff]  }
  0xe0   :  { %3653 = vmatpush2.bf16.msra.mxu1 %v9859_v23  ;;  %3601 = vmatprep.subr.bf16.mxu0 %v9864_v24  ;;  %v10700_v23 = vcombine.high %v105_v12, %v113_v14  ;;  %v10702_v24 = vcombine.high %v106_v15, %v114_v18 }
  0xe1   :  { %3654 = vmatprep.subr.bf16.mxu1 %v9867_v25  ;;  %v9916_v25 = vld [vmem:[#allocation6 + $0xca0] ss:$16 sps:$4 sm:$0xff]  }
  0xe3   :  { %3602 = vmatpush2.bf16.msra.mxu0 %v9862_v26  ;;  %v10710_v26 = vld [vmem:[#allocation3 + $0x70] sm:$0xff] }
  0xe4   :  { %3655 = vmatpush2.bf16.msra.mxu1 %v9865_v27  ;;  %3603 = vmatprep.subr.bf16.mxu0 %v9870_v28  ;;  %v10712_v27 = vld [vmem:[#allocation3 + $0x38] sm:$0xff]  ;;  %v10714_v28 = vcombine.low %v105_v12, %v113_v14  ;;  %v9954_v12 = vld [vmem:[#allocation6 + $0xde4] ss:$16 sps:$4 sm:$0xff]   ;;  %v9952_v14 = vld [vmem:[#allocation6 + $0xde0] ss:$16 sps:$4 sm:$0xff]  }
  0xe5   :  { %3656 = vmatprep.subr.bf16.mxu1 %v9873_v29  ;;  %v10716_v29 = vcombine.low %v106_v15, %v114_v18  ;;  %v9955_v15 = vld [vmem:[#allocation6 + $0xfe0] ss:$16 sps:$4 sm:$0xff]   ;;  %v9960_v18 = vld [vmem:[#allocation6 + $0xdc4] ss:$16 sps:$4 sm:$0xff]  }
  0xe7   :  { %3604 = vmatpush2.bf16.msra.mxu0 %v9868_v30  ;;  %v10718_v30 = vld [vmem:[#allocation3 + $0x78] sm:$0xff] }
  0xe8   :  { %3657 = vmatpush2.bf16.msra.mxu1 %v9871_v31  ;;  %3605 = vmatprep.subr.bf16.mxu0 %v9876_v38  ;;  %v9919_v31 = vld [vmem:[#allocation6 + $0xea0] ss:$16 sps:$4 sm:$0xff]   ;;  %v9924_v38 = vld [vmem:[#allocation6 + $0xc84] ss:$16 sps:$4 sm:$0xff]  }
  0xe9   :  { %3658 = vmatprep.subr.bf16.mxu1 %v9879_v39  ;;  %v9927_v39 = vld [vmem:[#allocation6 + $0xe84] ss:$16 sps:$4 sm:$0xff]  }
  0xeb   :  { %3606 = vmatpush2.bf16.msra.mxu0 %v9874_v40  ;;  %v10722_v40 = vcombine.high %v10706_v59, %v10710_v26 }
  0xec   :  { %3659 = vmatpush2.bf16.msra.mxu1 %v9877_v41  ;;  %3607 = vmatprep.subr.bf16.mxu0 %v9882_v44  ;;  %v10726_v41 = vcombine.high %v10712_v27, %v10718_v30  ;;  %v9922_v44 = vld [vmem:[#allocation6 + $0xc80] ss:$16 sps:$4 sm:$0xff]  }
  0xed   :  { %3660 = vmatprep.subr.bf16.mxu1 %v9885_v45  ;;  %v9925_v45 = vld [vmem:[#allocation6 + $0xe80] ss:$16 sps:$4 sm:$0xff]  }
  0xef   :  { %3608 = vmatpush2.bf16.msra.mxu0 %v9880_v46  ;;  %v9930_v46 = vld [vmem:[#allocation6 + $0xc64] ss:$16 sps:$4 sm:$0xff]  }
  0xf0   :  { %3661 = vmatpush2.bf16.msra.mxu1 %v9883_v47  ;;  %3609 = vmatprep.subr.bf16.mxu0 %v9888_v48  ;;  %v9933_v47 = vld [vmem:[#allocation6 + $0xe64] ss:$16 sps:$4 sm:$0xff]   ;;  %v9928_v48 = vld [vmem:[#allocation6 + $0xc60] ss:$16 sps:$4 sm:$0xff]  }
  0xf1   :  { %3662 = vmatprep.subr.bf16.mxu1 %v9891_v50  ;;  %v9931_v50 = vld [vmem:[#allocation6 + $0xe60] ss:$16 sps:$4 sm:$0xff]  }
  0xf3   :  { %3610 = vmatpush2.bf16.msra.mxu0 %v9886_v60  ;;  %v9936_v60 = vld [vmem:[#allocation6 + $0xc44] ss:$16 sps:$4 sm:$0xff]  }
  0xf4   :  { %3663 = vmatpush2.bf16.msra.mxu1 %v9889_v61  ;;  %3611 = vmatprep.subr.bf16.mxu0 %v9894_v0  ;;  %v9939_v61 = vld [vmem:[#allocation6 + $0xe44] ss:$16 sps:$4 sm:$0xff]   ;;  %v9934_v0 = vld [vmem:[#allocation6 + $0xc40] ss:$16 sps:$4 sm:$0xff]  }
  0xf5   :  { %3664 = vmatprep.subr.bf16.mxu1 %v9897_v1  ;;  %v9937_v1 = vld [vmem:[#allocation6 + $0xe40] ss:$16 sps:$4 sm:$0xff]  }
  0xf7   :  { %3612 = vmatpush2.bf16.msra.mxu0 %v9892_v2  ;;  %v9942_v2 = vld [vmem:[#allocation6 + $0xc24] ss:$16 sps:$4 sm:$0xff]  }
  0xf8   :  { %3665 = vmatpush2.bf16.msra.mxu1 %v9895_v3  ;;  %3613 = vmatprep.subr.bf16.mxu0 %v9900_v4  ;;  %v9945_v3 = vld [vmem:[#allocation6 + $0xe24] ss:$16 sps:$4 sm:$0xff]   ;;  %v9940_v4 = vld [vmem:[#allocation6 + $0xc20] ss:$16 sps:$4 sm:$0xff]  }
  0xf9   :  { %3666 = vmatprep.subr.bf16.mxu1 %v9903_v5  ;;  %v9943_v5 = vld [vmem:[#allocation6 + $0xe20] ss:$16 sps:$4 sm:$0xff]  }
  0xfb   :  { %3614 = vmatpush2.bf16.msra.mxu0 %v9898_v6  ;;  %v9948_v6 = vld [vmem:[#allocation6 + $0xc04] ss:$16 sps:$4 sm:$0xff]  }
  0xfc   :  { %3667 = vmatpush2.bf16.msra.mxu1 %v9901_v7  ;;  %3689 = vmatprep.subr.bf16.mxu0 %v9906_v10  ;;  %v9951_v7 = vld [vmem:[#allocation6 + $0xe04] ss:$16 sps:$4 sm:$0xff]   ;;  %v9946_v10 = vld [vmem:[#allocation6 + $0xc00] ss:$16 sps:$4 sm:$0xff]  }
  0xfd   :  { %3742 = vmatprep.subr.bf16.mxu1 %v9909_v11  ;;  %v9949_v11 = vld [vmem:[#allocation6 + $0xe00] ss:$16 sps:$4 sm:$0xff]  }
  0xfe   :  { %3616 = vmatmul.mubr.bf16.vlgmr.msra.gmra.mxu0 %v10694_v16 }
  0xff   :  { %3669 = vmatmul.mubr.bf16.vlgmr.msra.gmra.mxu1 %v10698_v17  ;;  %3690 = vmatpush1.bf16.msra.mxu0 %v9904_v13  ;;  %v9957_v13 = vld [vmem:[#allocation6 + $0xfe4] ss:$16 sps:$4 sm:$0xff]  }
 0x100   :  { %3743 = vmatpush1.bf16.msra.mxu1 %v9907_v19  ;;  %3691 = vmatprep.subr.bf16.mxu0 %v9912_v20  ;;  %v9963_v19 = vld [vmem:[#allocation6 + $0xfc4] ss:$16 sps:$4 sm:$0xff]   ;;  %v9958_v20 = vld [vmem:[#allocation6 + $0xdc0] ss:$16 sps:$4 sm:$0xff]  }
 0x101   :  { %3744 = vmatprep.subr.bf16.mxu1 %v9915_v21  ;;  %3625 = vmatprep.mubr.bf16.mxu0 %v10700_v23  ;;  %v9961_v21 = vld [vmem:[#allocation6 + $0xfc0] ss:$16 sps:$4 sm:$0xff]  }
 0x102   :  { %3678 = vmatprep.mubr.bf16.mxu1 %v10702_v24 }
 0x103   :  { %3692 = vmatpush1.bf16.msra.mxu0 %v9910_v22  ;;  %v9966_v22 = vld [vmem:[#allocation6 + $0xda4] ss:$16 sps:$4 sm:$0xff]  }
 0x104   :  { %3745 = vmatpush1.bf16.msra.mxu1 %v9913_v52  ;;  %3693 = vmatprep.subr.bf16.mxu0 %v9918_v54  ;;  %v9969_v52 = vld [vmem:[#allocation6 + $0xfa4] ss:$16 sps:$4 sm:$0xff]   ;;  %v9964_v54 = vld [vmem:[#allocation6 + $0xda0] ss:$16 sps:$4 sm:$0xff]  }
 0x105   :  { %3746 = vmatprep.subr.bf16.mxu1 %v9921_v58  ;;  %v9967_v58 = vld [vmem:[#allocation6 + $0xfa0] ss:$16 sps:$4 sm:$0xff]  }
 0x106   :  { %3626 = vmatmul.mubr.bf16.gmra.mxu0 %v10714_v28 }
 0x107   :  { %3679 = vmatmul.mubr.bf16.gmra.mxu1 %v10716_v29  ;;  %3694 = vmatpush1.bf16.msra.mxu0 %v9916_v25  ;;  %v9972_v25 = vld [vmem:[#allocation6 + $0xd84] ss:$16 sps:$4 sm:$0xff]  }
 0x108   :  { %3747 = vmatpush1.bf16.msra.mxu1 %v9919_v31  ;;  %3695 = vmatprep.subr.bf16.mxu0 %v9924_v38  ;;  %v9975_v31 = vld [vmem:[#allocation6 + $0xf84] ss:$16 sps:$4 sm:$0xff]   ;;  %v9970_v38 = vld [vmem:[#allocation6 + $0xd80] ss:$16 sps:$4 sm:$0xff]  }
 0x109   :  { %3748 = vmatprep.subr.bf16.mxu1 %v9927_v39  ;;  %3721 = vmatprep.mubr.bf16.mxu0 %v10722_v40  ;;  %v9973_v39 = vld [vmem:[#allocation6 + $0xf80] ss:$16 sps:$4 sm:$0xff]  }
 0x10a   :  { %3774 = vmatprep.mubr.bf16.mxu1 %v10726_v41 }
 0x10b   :  { %3696 = vmatpush1.bf16.msra.mxu0 %v9922_v44  ;;  %v9978_v44 = vld [vmem:[#allocation6 + $0xd64] ss:$16 sps:$4 sm:$0xff]  }
 0x10c   :  { %3749 = vmatpush1.bf16.msra.mxu1 %v9925_v45  ;;  %3697 = vmatprep.subr.bf16.mxu0 %v9930_v46  ;;  %v9981_v45 = vld [vmem:[#allocation6 + $0xf64] ss:$16 sps:$4 sm:$0xff]   ;;  %v9976_v46 = vld [vmem:[#allocation6 + $0xd60] ss:$16 sps:$4 sm:$0xff]  }
 0x10d   :  { %3750 = vmatprep.subr.bf16.mxu1 %v9933_v47  ;;  %v9979_v47 = vld [vmem:[#allocation6 + $0xf60] ss:$16 sps:$4 sm:$0xff]  }
 0x10f   :  { %3698 = vmatpush1.bf16.msra.mxu0 %v9928_v48  ;;  %v9984_v48 = vld [vmem:[#allocation6 + $0xd44] ss:$16 sps:$4 sm:$0xff]  }
 0x110   :  { %3751 = vmatpush1.bf16.msra.mxu1 %v9931_v50  ;;  %3699 = vmatprep.subr.bf16.mxu0 %v9936_v60  ;;  %v9987_v50 = vld [vmem:[#allocation6 + $0xf44] ss:$16 sps:$4 sm:$0xff]   ;;  %v9982_v60 = vld [vmem:[#allocation6 + $0xd40] ss:$16 sps:$4 sm:$0xff]  }
 0x111   :  { %3752 = vmatprep.subr.bf16.mxu1 %v9939_v61  ;;  %v9985_v61 = vld [vmem:[#allocation6 + $0xf40] ss:$16 sps:$4 sm:$0xff]  }
 0x113   :  { %3700 = vmatpush1.bf16.msra.mxu0 %v9934_v0  ;;  %v631_v0 = vlaneseq }
 0x114   :  { %3753 = vmatpush1.bf16.msra.mxu1 %v9937_v1  ;;  %3701 = vmatprep.subr.bf16.mxu0 %v9942_v2  ;;  %v9990_v1 = vld [vmem:[#allocation6 + $0xd24] ss:$16 sps:$4 sm:$0xff]  }
 0x115   :  { %3754 = vmatprep.subr.bf16.mxu1 %v9945_v3  ;;  %v9993_v2 = vld [vmem:[#allocation6 + $0xf24] ss:$16 sps:$4 sm:$0xff]   ;;  %v9988_v3 = vld [vmem:[#allocation6 + $0xd20] ss:$16 sps:$4 sm:$0xff]  }
 0x117   :  { %3702 = vmatpush1.bf16.msra.mxu0 %v9940_v4  ;;  %v9991_v4 = vld [vmem:[#allocation6 + $0xf20] ss:$16 sps:$4 sm:$0xff]  }
 0x118   :  { %3755 = vmatpush1.bf16.msra.mxu1 %v9943_v5  ;;  %3703 = vmatprep.subr.bf16.mxu0 %v9948_v6  ;;  %v10732_v5 = vshrl.u32 %v631_v0, 7  ;;  %v9996_v6 = vld [vmem:[#allocation6 + $0xd04] ss:$16 sps:$4 sm:$0xff]  }
 0x119   :  { %3756 = vmatprep.subr.bf16.mxu1 %v9951_v7  ;;  %v9999_v7 = vld [vmem:[#allocation6 + $0xf04] ss:$16 sps:$4 sm:$0xff]  }
 0x11a   :  { %11616 = vst [vmem:[#allocation17_spill] sm:$0xff] %v10732_v5 }
 0x11b   :  { %3704 = vmatpush1.bf16.msra.mxu0 %v9946_v10  ;;  %v9994_v10 = vld [vmem:[#allocation6 + $0xd00] ss:$16 sps:$4 sm:$0xff]  }
 0x11c   :  { %3757 = vmatpush1.bf16.msra.mxu1 %v9949_v11  ;;  %3705 = vmatprep.subr.bf16.mxu0 %v9954_v12  ;;  %v9997_v11 = vld [vmem:[#allocation6 + $0xf00] ss:$16 sps:$4 sm:$0xff]  }
 0x11d   :  { %3758 = vmatprep.subr.bf16.mxu1 %v9957_v13  ;;  %v10734_v12 = vld [vmem:[#allocation8] sm:$0xf]  ;;  %v10737_v13 = vsub.s32 0, %v10732_v5 }
 0x11f   :  { %3706 = vmatpush2.bf16.msra.mxu0 %v9952_v14  ;;  %11617 = vst [vmem:[#allocation18_spill] sm:$0xff] %v10737_v13  ;;  %v10002_v14 = vld [vmem:[#allocation6 + $0xec] ss:$16 sps:$4 sm:$0xff]  }
 0x120   :  { %3759 = vmatpush2.bf16.msra.mxu1 %v9955_v15  ;;  %3707 = vmatprep.subr.bf16.mxu0 %v9960_v18  ;;  %v10005_v15 = vld [vmem:[#allocation6 + $0x2ec] ss:$16 sps:$4 sm:$0xff]   ;;  %v107_v18 = vld [vmem:[#allocation3 + $0xb0] sm:$0xff] }
 0x121   :  { %3760 = vmatprep.subr.bf16.mxu1 %v9963_v19  ;;  %v10000_v19 = vld [vmem:[#allocation6 + $0xe8] ss:$16 sps:$4 sm:$0xff]  }
 0x123   :  { %3708 = vmatpush2.bf16.msra.mxu0 %v9958_v20  ;;  %v115_v20 = vld [vmem:[#allocation3 + $0xf0] sm:$0xff] }
 0x124   :  { %3761 = vmatpush2.bf16.msra.mxu1 %v9961_v21  ;;  %3709 = vmatprep.subr.bf16.mxu0 %v9966_v22  ;;  %v108_v21 = vld [vmem:[#allocation3 + $0xb8] sm:$0xff]  ;;  %v10741_v22 = vcombine.low %v10706_v59, %v10710_v26  ;;  %v10766_v0 = vcombine.low %v107_v18, %v115_v20 }
 0x125   :  { %3762 = vmatprep.subr.bf16.mxu1 %v9969_v52  ;;  %v10745_v52 = vcombine.low %v10712_v27, %v10718_v30  ;;  %v10006_v27 = vld [vmem:[#allocation6 + $0xc8] ss:$16 sps:$4 sm:$0xff]  }
 0x127   :  { %3710 = vmatpush2.bf16.msra.mxu0 %v9964_v54  ;;  %v116_v54 = vld [vmem:[#allocation3 + $0xf8] sm:$0xff] }
 0x128   :  { %3763 = vmatpush2.bf16.msra.mxu1 %v9967_v58  ;;  %3711 = vmatprep.subr.bf16.mxu0 %v9972_v25  ;;  %v10749_v58 = vrot.slane %v10734_v12, %v10737_v13  ;;  %v10003_v25 = vld [vmem:[#allocation6 + $0x2e8] ss:$16 sps:$4 sm:$0xff]   ;;  %v10753_v59 = vcombine.high %v108_v21, %v116_v54 }
 0x129   :  { %3764 = vmatprep.subr.bf16.mxu1 %v9975_v31  ;;  %v10008_v31 = vld [vmem:[#allocation6 + $0xcc] ss:$16 sps:$4 sm:$0xff]  }
 0x12b   :  { %3712 = vmatpush2.bf16.msra.mxu0 %v9970_v38  ;;  %v10011_v38 = vld [vmem:[#allocation6 + $0x2cc] ss:$16 sps:$4 sm:$0xff]  }
 0x12c   :  { %3765 = vmatpush2.bf16.msra.mxu1 %v9973_v39  ;;  %3713 = vmatprep.subr.bf16.mxu0 %v9978_v44  ;;  %v10751_v39 = vcombine.high %v107_v18, %v115_v20  ;;  %v10026_v18 = vld [vmem:[#allocation6 + $0x6c] ss:$16 sps:$4 sm:$0xff]   ;;  %v10024_v20 = vld [vmem:[#allocation6 + $0x68] ss:$16 sps:$4 sm:$0xff]  }
 0x12d   :  { %3766 = vmatprep.subr.bf16.mxu1 %v9981_v45  ;;  %v10009_v45 = vld [vmem:[#allocation6 + $0x2c8] ss:$16 sps:$4 sm:$0xff]  }
 0x12f   :  { %3714 = vmatpush2.bf16.msra.mxu0 %v9976_v46 }
 0x130   :  { %3767 = vmatpush2.bf16.msra.mxu1 %v9979_v47  ;;  %3715 = vmatprep.subr.bf16.mxu0 %v9984_v48  ;;  %v10014_v48 = vld [vmem:[#allocation6 + $0xac] ss:$16 sps:$4 sm:$0xff]  }
 0x131   :  { %3768 = vmatprep.subr.bf16.mxu1 %v9987_v50  ;;  %v10017_v50 = vld [vmem:[#allocation6 + $0x2ac] ss:$16 sps:$4 sm:$0xff]  }
 0x133   :  { %3716 = vmatpush2.bf16.msra.mxu0 %v9982_v60 }
 0x134   :  { %3769 = vmatpush2.bf16.msra.mxu1 %v9985_v61  ;;  %3717 = vmatprep.subr.bf16.mxu0 %v9990_v1  ;;  %v10012_v1 = vld [vmem:[#allocation6 + $0xa8] ss:$16 sps:$4 sm:$0xff]  }
 0x135   :  { %3770 = vmatprep.subr.bf16.mxu1 %v9993_v2  ;;  %v10768_v2 = vcombine.low %v108_v21, %v116_v54  ;;  %v10778_v21 = vsub.s32 1, %v10732_v5  ;;  %v10027_v54 = vld [vmem:[#allocation6 + $0x268] ss:$16 sps:$4 sm:$0xff]  }
 0x137   :  { %3718 = vmatpush2.bf16.msra.mxu0 %v9988_v3  ;;  %11618 = vst [vmem:[#allocation19_spill] sm:$0xff] %v10778_v21 }
 0x138   :  { %3771 = vmatpush2.bf16.msra.mxu1 %v9991_v4  ;;  %3719 = vmatprep.subr.bf16.mxu0 %v9996_v6  ;;  %v10015_v4 = vld [vmem:[#allocation6 + $0x2a8] ss:$16 sps:$4 sm:$0xff]  }
 0x139   :  { %3772 = vmatprep.subr.bf16.mxu1 %v9999_v7  ;;  %v10020_v7 = vld [vmem:[#allocation6 + $0x8c] ss:$16 sps:$4 sm:$0xff]  }
 0x13b   :  { %3720 = vmatpush2.bf16.msra.mxu0 %v9994_v10  ;;  %v10023_v10 = vld [vmem:[#allocation6 + $0x28c] ss:$16 sps:$4 sm:$0xff]  }
 0x13c   :  { %3773 = vmatpush2.bf16.msra.mxu1 %v9997_v11  ;;  %3795 = vmatprep.subr.bf16.mxu0 %v10002_v14  ;;  %v10018_v14 = vld [vmem:[#allocation6 + $0x88] ss:$16 sps:$4 sm:$0xff]  }
 0x13d   :  { %3848 = vmatprep.subr.bf16.mxu1 %v10005_v15  ;;  %v10021_v15 = vld [vmem:[#allocation6 + $0x288] ss:$16 sps:$4 sm:$0xff]  }
 0x13e   :  { %v3405_v26 = vpop.f32.mrf.mxu0  ;;  %3722 = vmatmul.mubr.bf16.vlgmr.msra.gmra.mxu0 %v10741_v22 }
 0x13f   :  { %v3458_v44 = vpop.f32.mrf.mxu1  ;;  %3775 = vmatmul.mubr.bf16.vlgmr.msra.gmra.mxu1 %v10745_v52  ;;  %v3406_v30 = vadd.f32 %v3405_v26, %v10749_v58  ;;  %3796 = vmatpush1.bf16.msra.mxu0 %v10000_v19  ;;  %v10029_v19 = vld [vmem:[#allocation6 + $0x26c] ss:$16 sps:$4 sm:$0xff]  }
 0x140   :  { %3849 = vmatpush1.bf16.msra.mxu1 %v10003_v25  ;;  %v10758_v46 = vpop.f32.mrf.mxu0  ;;  %3797 = vmatprep.subr.bf16.mxu0 %v10008_v31  ;;  %v10035_v26 = vld [vmem:[#allocation6 + $0x24c] ss:$16 sps:$4 sm:$0xff]  }
 0x141   :  { %v10760_v47 = vpop.f32.mrf.mxu1  ;;  %3850 = vmatprep.subr.bf16.mxu1 %v10011_v38  ;;  %v10762_v60 = vadd.f32 %v3458_v44, %v3406_v30  ;;  %3731 = vmatprep.mubr.bf16.mxu0 %v10751_v39  ;;  %v10032_v38 = vld [vmem:[#allocation6 + $0x4c] ss:$16 sps:$4 sm:$0xff]   ;;  %v10030_v44 = vld [vmem:[#allocation6 + $0x48] ss:$16 sps:$4 sm:$0xff]  }
 0x142   :  { %3784 = vmatprep.mubr.bf16.mxu1 %v10753_v59  ;;  %v3409_v61 = vpop.f32.mrf.mxu0  ;;  %v10033_v30 = vld [vmem:[#allocation6 + $0x248] ss:$16 sps:$4 sm:$0xff]  }
 0x143   :  { %v3410_v3 = vadd.f32 %v3409_v61, %v10749_v58  ;;  %3798 = vmatpush1.bf16.msra.mxu0 %v10006_v27  ;;  %v3462_v6 = vpop.f32.mrf.mxu1 }
 0x144   :  { %3851 = vmatpush1.bf16.msra.mxu1 %v10009_v45  ;;  %3799 = vmatprep.subr.bf16.mxu0 %v10014_v48  ;;  %v10780_v25 = vpop.f32.mrf.mxu0  ;;  %v10038_v48 = vld [vmem:[#allocation6 + $0x2c] ss:$16 sps:$4 sm:$0xff]  }
 0x145   :  { %3852 = vmatprep.subr.bf16.mxu1 %v10017_v50  ;;  %v10771_v11 = vadd.f32 %v3462_v6, %v3410_v3  ;;  %v10782_v31 = vpop.f32.mrf.mxu1  ;;  %v10041_v50 = vld [vmem:[#allocation6 + $0x22c] ss:$16 sps:$4 sm:$0xff]   ;;  %v10036_v6 = vld [vmem:[#allocation6 + $0x28] ss:$16 sps:$4 sm:$0xff]  }
 0x146   :  { %3732 = vmatmul.mubr.bf16.gmra.mxu0 %v10766_v0  ;;  %v3415_v27 = vpop.f32.mrf.mxu0 }
 0x147   :  { %3785 = vmatmul.mubr.bf16.gmra.mxu1 %v10768_v2  ;;  %3800 = vmatpush1.bf16.msra.mxu0 %v10012_v1  ;;  %v3416_v45 = vadd.f32 %v3415_v27, %v10749_v58  ;;  %v10048_v27 = vld [vmem:[#allocation6 + $0x1e8] ss:$16 sps:$4 sm:$0xff]  }
 0x148   :  { %3853 = vmatpush1.bf16.msra.mxu1 %v10015_v4  ;;  %3801 = vmatprep.subr.bf16.mxu0 %v10020_v7  ;;  %v3417_v61 = vpop.f32.mrf.mxu0 }
 0x149   :  { %3854 = vmatprep.subr.bf16.mxu1 %v10023_v10  ;;  %3827 = vmatprep.mubr.bf16.mxu0 %v10610_v53  ;;  %v3468_v53 = vpop.f32.mrf.mxu1 }
 0x14a   :  { %3880 = vmatprep.mubr.bf16.mxu1 %v10612_v55  ;;  %v10786_v55 = vrot.slane %v10734_v12, %v10778_v21  ;;  %v10790_v4 = vadd.f32 %v3468_v53, %v3416_v45  ;;  %v3419_v7 = vpop.f32.mrf.mxu0  ;;  %v10039_v12 = vld [vmem:[#allocation6 + $0x228] ss:$16 sps:$4 sm:$0xff]   ;;  %v10056_v53 = vld [vmem:[#allocation6 + $0x1cc] ss:$16 sps:$4 sm:$0xff]  }
 0x14b   :  { %3802 = vmatpush1.bf16.msra.mxu0 %v10018_v14  ;;  %v3470_v1 = vpop.f32.mrf.mxu1  ;;  %v3420_v10 = vadd.f32 %v3419_v7, %v10749_v58  ;;  %v10051_v58 = vld [vmem:[#allocation6 + $0x3e8] ss:$16 sps:$4 sm:$0xff]   ;;  %v10071_v7 = vld [vmem:[#allocation6 + $0x38c] ss:$16 sps:$4 sm:$0xff]  }
 0x14c   :  { %3855 = vmatpush1.bf16.msra.mxu1 %v10021_v15  ;;  %3803 = vmatprep.subr.bf16.mxu0 %v10026_v18  ;;  %v3418_v3 = vadd.f32 %v3417_v61, %v10786_v55  ;;  %v10044_v15 = vld [vmem:[#allocation6 + $0xc] ss:$16 sps:$4 sm:$0xff]   ;;  %v10054_v45 = vld [vmem:[#allocation6 + $0x1c8] ss:$16 sps:$4 sm:$0xff]  }
 0x14d   :  { %3856 = vmatprep.subr.bf16.mxu1 %v10029_v19  ;;  %v10047_v18 = vld [vmem:[#allocation6 + $0x20c] ss:$16 sps:$4 sm:$0xff]   ;;  %v3472_v19 = vpop.f32.mrf.mxu1 }
 0x14e   :  { %v10793_v14 = vadd.f32 %v3470_v1, %v3418_v3  ;;  %v10065_v61 = vld [vmem:[#allocation6 + $0x3ac] ss:$16 sps:$4 sm:$0xff]   ;;  %v10060_v1 = vld [vmem:[#allocation6 + $0x1a8] ss:$16 sps:$4 sm:$0xff]  }
 0x14f   :  { %3804 = vmatpush1.bf16.msra.mxu0 %v10024_v20  ;;  %v10795_v20 = vadd.f32 %v3472_v19, %v3420_v10  ;;  %v10063_v3 = vld [vmem:[#allocation6 + $0x3a8] ss:$16 sps:$4 sm:$0xff]  }
 0x150   :  { %3857 = vmatpush1.bf16.msra.mxu1 %v10027_v54  ;;  %3805 = vmatprep.subr.bf16.mxu0 %v10032_v38  ;;  %v10042_v54 = vld [vmem:[#allocation6 + $0x8] ss:$16 sps:$4 sm:$0xff]  }
 0x151   :  { %3858 = vmatprep.subr.bf16.mxu1 %v10035_v26  ;;  %v10045_v38 = vld [vmem:[#allocation6 + $0x208] ss:$16 sps:$4 sm:$0xff]   ;;  %v10050_v26 = vld [vmem:[#allocation6 + $0x1ec] ss:$16 sps:$4 sm:$0xff]  }
 0x152   :  { %v10069_v10 = vld [vmem:[#allocation6 + $0x388] ss:$16 sps:$4 sm:$0xff]  }
 0x153   :  { %3806 = vmatpush1.bf16.msra.mxu0 %v10030_v44  ;;  %v10053_v44 = vld [vmem:[#allocation6 + $0x3ec] ss:$16 sps:$4 sm:$0xff]   ;;  %v10072_v19 = vld [vmem:[#allocation6 + $0x168] ss:$16 sps:$4 sm:$0xff]  }
 0x154   :  { %3859 = vmatpush1.bf16.msra.mxu1 %v10033_v30  ;;  %3807 = vmatprep.subr.bf16.mxu0 %v10038_v48  ;;  %v10059_v30 = vld [vmem:[#allocation6 + $0x3cc] ss:$16 sps:$4 sm:$0xff]   ;;  %v10057_v48 = vld [vmem:[#allocation6 + $0x3c8] ss:$16 sps:$4 sm:$0xff]  }
 0x155   :  { %3860 = vmatprep.subr.bf16.mxu1 %v10041_v50  ;;  %v10062_v50 = vld [vmem:[#allocation6 + $0x1ac] ss:$16 sps:$4 sm:$0xff]  }
 0x157   :  { %3808 = vmatpush1.bf16.msra.mxu0 %v10036_v6  ;;  %v10068_v6 = vld [vmem:[#allocation6 + $0x18c] ss:$16 sps:$4 sm:$0xff]  }
 0x158   :  { %3861 = vmatpush1.bf16.msra.mxu1 %v10039_v12  ;;  %3809 = vmatprep.subr.bf16.mxu0 %v10044_v15  ;;  %v10066_v12 = vld [vmem:[#allocation6 + $0x188] ss:$16 sps:$4 sm:$0xff]   ;;  %v10074_v15 = vld [vmem:[#allocation6 + $0x16c] ss:$16 sps:$4 sm:$0xff]  }
 0x159   :  { %3862 = vmatprep.subr.bf16.mxu1 %v10047_v18  ;;  %v10077_v18 = vld [vmem:[#allocation6 + $0x36c] ss:$16 sps:$4 sm:$0xff]  }
 0x15b   :  { %3810 = vmatpush1.bf16.msra.mxu0 %v10042_v54  ;;  %v10075_v54 = vld [vmem:[#allocation6 + $0x368] ss:$16 sps:$4 sm:$0xff]  }
 0x15c   :  { %3863 = vmatpush1.bf16.msra.mxu1 %v10045_v38  ;;  %3811 = vmatprep.subr.bf16.mxu0 %v10050_v26  ;;  %v10080_v38 = vld [vmem:[#allocation6 + $0x14c] ss:$16 sps:$4 sm:$0xff]  }
 0x15d   :  { %3864 = vmatprep.subr.bf16.mxu1 %v10053_v44  ;;  %v10083_v26 = vld [vmem:[#allocation6 + $0x34c] ss:$16 sps:$4 sm:$0xff]   ;;  %v10078_v44 = vld [vmem:[#allocation6 + $0x148] ss:$16 sps:$4 sm:$0xff]  }
 0x15f   :  { %3812 = vmatpush2.bf16.msra.mxu0 %v10048_v27  ;;  %v10081_v27 = vld [vmem:[#allocation6 + $0x348] ss:$16 sps:$4 sm:$0xff]  }
 0x160   :  { %3865 = vmatpush2.bf16.msra.mxu1 %v10051_v58  ;;  %3813 = vmatprep.subr.bf16.mxu0 %v10056_v53  ;;  %v10086_v58 = vld [vmem:[#allocation6 + $0x12c] ss:$16 sps:$4 sm:$0xff]  }
 0x161   :  { %3866 = vmatprep.subr.bf16.mxu1 %v10059_v30  ;;  %v10089_v53 = vld [vmem:[#allocation6 + $0x32c] ss:$16 sps:$4 sm:$0xff]   ;;  %v10084_v30 = vld [vmem:[#allocation6 + $0x128] ss:$16 sps:$4 sm:$0xff]  }
 0x163   :  { %3814 = vmatpush2.bf16.msra.mxu0 %v10054_v45  ;;  %v10087_v45 = vld [vmem:[#allocation6 + $0x328] ss:$16 sps:$4 sm:$0xff]  }
 0x164   :  { %3867 = vmatpush2.bf16.msra.mxu1 %v10057_v48  ;;  %3815 = vmatprep.subr.bf16.mxu0 %v10062_v50  ;;  %v10092_v48 = vld [vmem:[#allocation6 + $0x10c] ss:$16 sps:$4 sm:$0xff]  }
 0x165   :  { %3868 = vmatprep.subr.bf16.mxu1 %v10065_v61  ;;  %v10095_v50 = vld [vmem:[#allocation6 + $0x30c] ss:$16 sps:$4 sm:$0xff]   ;;  %v10090_v61 = vld [vmem:[#allocation6 + $0x108] ss:$16 sps:$4 sm:$0xff]  }
 0x167   :  { %3816 = vmatpush2.bf16.msra.mxu0 %v10060_v1  ;;  %v10093_v1 = vld [vmem:[#allocation6 + $0x308] ss:$16 sps:$4 sm:$0xff]  }
 0x168   :  { %3869 = vmatpush2.bf16.msra.mxu1 %v10063_v3  ;;  %3817 = vmatprep.subr.bf16.mxu0 %v10068_v6  ;;  %v10098_v3 = vld [vmem:[#allocation6 + $0x4ec] ss:$16 sps:$4 sm:$0xff]  }
 0x169   :  { %3870 = vmatprep.subr.bf16.mxu1 %v10071_v7  ;;  %v10101_v6 = vld [vmem:[#allocation6 + $0x6ec] ss:$16 sps:$4 sm:$0xff]   ;;  %v10096_v7 = vld [vmem:[#allocation6 + $0x4e8] ss:$16 sps:$4 sm:$0xff]  }
 0x16b   :  { %3818 = vmatpush2.bf16.msra.mxu0 %v10066_v12  ;;  %v10099_v12 = vld [vmem:[#allocation6 + $0x6e8] ss:$16 sps:$4 sm:$0xff]  }
 0x16c   :  { %3871 = vmatpush2.bf16.msra.mxu1 %v10069_v10  ;;  %3819 = vmatprep.subr.bf16.mxu0 %v10074_v15  ;;  %v10797_v10 = vpop.f32.mrf.mxu0  ;;  %v10799_v15 = vpop.f32.mrf.mxu1 }
 0x16d   :  { %3872 = vmatprep.subr.bf16.mxu1 %v10077_v18  ;;  %v10104_v18 = vld [vmem:[#allocation6 + $0x4cc] ss:$16 sps:$4 sm:$0xff]  }
 0x16f   :  { %3820 = vmatpush2.bf16.msra.mxu0 %v10072_v19  ;;  %v10107_v19 = vld [vmem:[#allocation6 + $0x6cc] ss:$16 sps:$4 sm:$0xff]  }
 0x170   :  { %3873 = vmatpush2.bf16.msra.mxu1 %v10075_v54  ;;  %3821 = vmatprep.subr.bf16.mxu0 %v10080_v38  ;;  %v10102_v54 = vld [vmem:[#allocation6 + $0x4c8] ss:$16 sps:$4 sm:$0xff]  }
 0x171   :  { %3874 = vmatprep.subr.bf16.mxu1 %v10083_v26  ;;  %v10105_v38 = vld [vmem:[#allocation6 + $0x6c8] ss:$16 sps:$4 sm:$0xff]  }
 0x173   :  { %3822 = vmatpush2.bf16.msra.mxu0 %v10078_v44 }
 0x174   :  { %3875 = vmatpush2.bf16.msra.mxu1 %v10081_v27  ;;  %3823 = vmatprep.subr.bf16.mxu0 %v10086_v58 }
 0x175   :  { %3876 = vmatprep.subr.bf16.mxu1 %v10089_v53 }
 0x177   :  { %3824 = vmatpush2.bf16.msra.mxu0 %v10084_v30  ;;  %v10110_v30 = vld [vmem:[#allocation6 + $0x4ac] ss:$16 sps:$4 sm:$0xff]  }
 0x178   :  { %3877 = vmatpush2.bf16.msra.mxu1 %v10087_v45  ;;  %3825 = vmatprep.subr.bf16.mxu0 %v10092_v48  ;;  %v10113_v45 = vld [vmem:[#allocation6 + $0x6ac] ss:$16 sps:$4 sm:$0xff]  }
 0x179   :  { %3878 = vmatprep.subr.bf16.mxu1 %v10095_v50  ;;  %v10108_v50 = vld [vmem:[#allocation6 + $0x4a8] ss:$16 sps:$4 sm:$0xff]  }
 0x17b   :  { %3826 = vmatpush2.bf16.msra.mxu0 %v10090_v61  ;;  %v10111_v61 = vld [vmem:[#allocation6 + $0x6a8] ss:$16 sps:$4 sm:$0xff]  }
 0x17c   :  { %3879 = vmatpush2.bf16.msra.mxu1 %v10093_v1  ;;  %3901 = vmatprep.subr.bf16.mxu0 %v10098_v3 }
 0x17d   :  { %3954 = vmatprep.subr.bf16.mxu1 %v10101_v6  ;;  %v10116_v6 = vld [vmem:[#allocation6 + $0x48c] ss:$16 sps:$4 sm:$0xff]  }
 0x17e   :  { %v3511_v26 = vpop.f32.mrf.mxu0  ;;  %3828 = vmatmul.mubr.bf16.vlgmr.msra.gmra.mxu0 %v10616_v8 }
 0x17f   :  { %v3564_v44 = vpop.f32.mrf.mxu1  ;;  %3881 = vmatmul.mubr.bf16.vlgmr.msra.gmra.mxu1 %v10618_v9  ;;  %v3512_v27 = vadd.f32 %v3511_v26, %v10762_v60  ;;  %3902 = vmatpush1.bf16.msra.mxu0 %v10096_v7  ;;  %v10119_v7 = vld [vmem:[#allocation6 + $0x68c] ss:$16 sps:$4 sm:$0xff]  }
 0x180   :  { %3955 = vmatpush1.bf16.msra.mxu1 %v10099_v12  ;;  %v10804_v58 = vpop.f32.mrf.mxu0  ;;  %3903 = vmatprep.subr.bf16.mxu0 %v10104_v18  ;;  %v10114_v18 = vld [vmem:[#allocation6 + $0x488] ss:$16 sps:$4 sm:$0xff]   ;;  %v10122_v26 = vld [vmem:[#allocation6 + $0x46c] ss:$16 sps:$4 sm:$0xff]  }
 0x181   :  { %v10806_v53 = vpop.f32.mrf.mxu1  ;;  %3956 = vmatprep.subr.bf16.mxu1 %v10107_v19  ;;  %v10808_v48 = vadd.f32 %v3564_v44, %v3512_v27  ;;  %3837 = vmatprep.mubr.bf16.mxu0 %v10622_v33  ;;  %v10117_v33 = vld [vmem:[#allocation6 + $0x688] ss:$16 sps:$4 sm:$0xff]   ;;  %v10125_v44 = vld [vmem:[#allocation6 + $0x66c] ss:$16 sps:$4 sm:$0xff]  }
 0x182   :  { %3890 = vmatprep.mubr.bf16.mxu1 %v10626_v35  ;;  %v3515_v8 = vpop.f32.mrf.mxu0 }
 0x183   :  { %v3568_v9 = vpop.f32.mrf.mxu1  ;;  %v3516_v60 = vadd.f32 %v3515_v8, %v10771_v11  ;;  %3904 = vmatpush1.bf16.msra.mxu0 %v10102_v54  ;;  %v10128_v8 = vld [vmem:[#allocation6 + $0x44c] ss:$16 sps:$4 sm:$0xff]  }
 0x184   :  { %3957 = vmatpush1.bf16.msra.mxu1 %v10105_v38  ;;  %v10813_v1 = vpop.f32.mrf.mxu0  ;;  %3905 = vmatprep.subr.bf16.mxu0 %v10110_v30 }
 0x185   :  { %v10815_v3 = vpop.f32.mrf.mxu1  ;;  %3958 = vmatprep.subr.bf16.mxu1 %v10113_v45  ;;  %v10817_v12 = vadd.f32 %v3568_v9, %v3516_v60  ;;  %v10134_v60 = vld [vmem:[#allocation6 + $0x42c] ss:$16 sps:$4 sm:$0xff]  }
 0x186   :  { %v3521_v19 = vpop.f32.mrf.mxu0  ;;  %3838 = vmatmul.mubr.bf16.gmra.mxu0 %v10624_v34 }
 0x187   :  { %v3574_v35 = vpop.f32.mrf.mxu1  ;;  %3891 = vmatmul.mubr.bf16.gmra.mxu1 %v10628_v37  ;;  %v3522_v11 = vadd.f32 %v3521_v19, %v10790_v4  ;;  %3906 = vmatpush1.bf16.msra.mxu0 %v10108_v50  ;;  %v10120_v50 = vld [vmem:[#allocation6 + $0x468] ss:$16 sps:$4 sm:$0xff]  }
 0x188   :  { %3959 = vmatpush1.bf16.msra.mxu1 %v10111_v61  ;;  %v3523_v54 = vpop.f32.mrf.mxu0  ;;  %3907 = vmatprep.subr.bf16.mxu0 %v10116_v6  ;;  %v10123_v61 = vld [vmem:[#allocation6 + $0x668] ss:$16 sps:$4 sm:$0xff]  }
 0x189   :  { %v3576_v38 = vpop.f32.mrf.mxu1  ;;  %3960 = vmatprep.subr.bf16.mxu1 %v10119_v7  ;;  %v3524_v27 = vadd.f32 %v3523_v54, %v10793_v14  ;;  %v10823_v30 = vadd.f32 %v3574_v35, %v3522_v11  ;;  %3933 = vmatprep.mubr.bf16.mxu0 %v10642_v49  ;;  %v10131_v14 = vld [vmem:[#allocation6 + $0x64c] ss:$16 sps:$4 sm:$0xff]   ;;  %v10126_v49 = vld [vmem:[#allocation6 + $0x448] ss:$16 sps:$4 sm:$0xff]  }
 0x18a   :  { %3986 = vmatprep.mubr.bf16.mxu1 %v10648_v51  ;;  %v3525_v34 = vpop.f32.mrf.mxu0  ;;  %v10129_v51 = vld [vmem:[#allocation6 + $0x648] ss:$16 sps:$4 sm:$0xff]   ;;  %v10146_v11 = vld [vmem:[#allocation6 + $0x5ec] ss:$16 sps:$4 sm:$0xff]  }
 0x18b   :  { %v3578_v37 = vpop.f32.mrf.mxu1  ;;  %v3526_v4 = vadd.f32 %v3525_v34, %v10795_v20  ;;  %v10828_v45 = vadd.f32 %v3576_v38, %v3524_v27  ;;  %3908 = vmatpush1.bf16.msra.mxu0 %v10114_v18  ;;  %v10137_v20 = vld [vmem:[#allocation6 + $0x62c] ss:$16 sps:$4 sm:$0xff]   ;;  %v10132_v6 = vld [vmem:[#allocation6 + $0x428] ss:$16 sps:$4 sm:$0xff]  }
 0x18c   :  { %3961 = vmatpush1.bf16.msra.mxu1 %v10117_v33  ;;  %3909 = vmatprep.subr.bf16.mxu0 %v10122_v26  ;;  %v10135_v7 = vld [vmem:[#allocation6 + $0x628] ss:$16 sps:$4 sm:$0xff]   ;;  %v10140_v18 = vld [vmem:[#allocation6 + $0x40c] ss:$16 sps:$4 sm:$0xff]  }
 0x18d   :  { %3962 = vmatprep.subr.bf16.mxu1 %v10125_v44  ;;  %v10830_v9 = vadd.f32 %v3578_v37, %v3526_v4  ;;  %v10143_v33 = vld [vmem:[#allocation6 + $0x60c] ss:$16 sps:$4 sm:$0xff]   ;;  %v10138_v19 = vld [vmem:[#allocation6 + $0x408] ss:$16 sps:$4 sm:$0xff]  }
 0x18e   :  { %v10141_v35 = vld [vmem:[#allocation6 + $0x608] ss:$16 sps:$4 sm:$0xff]   ;;  %v10149_v54 = vld [vmem:[#allocation6 + $0x7ec] ss:$16 sps:$4 sm:$0xff]  }
 0x18f   :  { %3910 = vmatpush1.bf16.msra.mxu0 %v10120_v50  ;;  %v10144_v38 = vld [vmem:[#allocation6 + $0x5e8] ss:$16 sps:$4 sm:$0xff]   ;;  %v10152_v44 = vld [vmem:[#allocation6 + $0x5cc] ss:$16 sps:$4 sm:$0xff]  }
 0x190   :  { %3963 = vmatpush1.bf16.msra.mxu1 %v10123_v61  ;;  %3911 = vmatprep.subr.bf16.mxu0 %v10128_v8  ;;  %v10147_v26 = vld [vmem:[#allocation6 + $0x7e8] ss:$16 sps:$4 sm:$0xff]   ;;  %v10155_v27 = vld [vmem:[#allocation6 + $0x7cc] ss:$16 sps:$4 sm:$0xff]  }
 0x191   :  { %3964 = vmatprep.subr.bf16.mxu1 %v10131_v14  ;;  %v10150_v34 = vld [vmem:[#allocation6 + $0x5c8] ss:$16 sps:$4 sm:$0xff]   ;;  %v10158_v4 = vld [vmem:[#allocation6 + $0x5ac] ss:$16 sps:$4 sm:$0xff]  }
 0x192   :  { %v10153_v37 = vld [vmem:[#allocation6 + $0x7c8] ss:$16 sps:$4 sm:$0xff]   ;;  %v10161_v50 = vld [vmem:[#allocation6 + $0x7ac] ss:$16 sps:$4 sm:$0xff]  }
 0x193   :  { %3912 = vmatpush1.bf16.msra.mxu0 %v10126_v49  ;;  %v10156_v61 = vld [vmem:[#allocation6 + $0x5a8] ss:$16 sps:$4 sm:$0xff]   ;;  %v10164_v14 = vld [vmem:[#allocation6 + $0x58c] ss:$16 sps:$4 sm:$0xff]  }
 0x194   :  { %3965 = vmatpush1.bf16.msra.mxu1 %v10129_v51  ;;  %3913 = vmatprep.subr.bf16.mxu0 %v10134_v60  ;;  %v10159_v8 = vld [vmem:[#allocation6 + $0x7a8] ss:$16 sps:$4 sm:$0xff]   ;;  %v10167_v49 = vld [vmem:[#allocation6 + $0x78c] ss:$16 sps:$4 sm:$0xff]  }
 0x195   :  { %3966 = vmatprep.subr.bf16.mxu1 %v10137_v20  ;;  %v10162_v51 = vld [vmem:[#allocation6 + $0x588] ss:$16 sps:$4 sm:$0xff]   ;;  %v10170_v20 = vld [vmem:[#allocation6 + $0x56c] ss:$16 sps:$4 sm:$0xff]  }
 0x196   :  { %v10165_v60 = vld [vmem:[#allocation6 + $0x788] ss:$16 sps:$4 sm:$0xff]  }
 0x197   :  { %3914 = vmatpush1.bf16.msra.mxu0 %v10132_v6  ;;  %v10173_v6 = vld [vmem:[#allocation6 + $0x76c] ss:$16 sps:$4 sm:$0xff]  }
 0x198   :  { %3967 = vmatpush1.bf16.msra.mxu1 %v10135_v7  ;;  %3915 = vmatprep.subr.bf16.mxu0 %v10140_v18  ;;  %v10168_v7 = vld [vmem:[#allocation6 + $0x568] ss:$16 sps:$4 sm:$0xff]  }
 0x199   :  { %3968 = vmatprep.subr.bf16.mxu1 %v10143_v33  ;;  %v10171_v18 = vld [vmem:[#allocation6 + $0x768] ss:$16 sps:$4 sm:$0xff]   ;;  %v10176_v33 = vld [vmem:[#allocation6 + $0x54c] ss:$16 sps:$4 sm:$0xff]  }
 0x19b   :  { %3916 = vmatpush1.bf16.msra.mxu0 %v10138_v19  ;;  %v10179_v19 = vld [vmem:[#allocation6 + $0x74c] ss:$16 sps:$4 sm:$0xff]  }
 0x19c   :  { %3969 = vmatpush1.bf16.msra.mxu1 %v10141_v35  ;;  %3917 = vmatprep.subr.bf16.mxu0 %v10146_v11  ;;  %v10174_v35 = vld [vmem:[#allocation6 + $0x548] ss:$16 sps:$4 sm:$0xff]  }
 0x19d   :  { %3970 = vmatprep.subr.bf16.mxu1 %v10149_v54  ;;  %v10177_v11 = vld [vmem:[#allocation6 + $0x748] ss:$16 sps:$4 sm:$0xff]   ;;  %v10182_v54 = vld [vmem:[#allocation6 + $0x52c] ss:$16 sps:$4 sm:$0xff]  }
 0x19f   :  { %3918 = vmatpush2.bf16.msra.mxu0 %v10144_v38  ;;  %v10185_v38 = vld [vmem:[#allocation6 + $0x72c] ss:$16 sps:$4 sm:$0xff]  }
 0x1a0   :  { %3971 = vmatpush2.bf16.msra.mxu1 %v10147_v26  ;;  %3919 = vmatprep.subr.bf16.mxu0 %v10152_v44  ;;  %v10180_v26 = vld [vmem:[#allocation6 + $0x528] ss:$16 sps:$4 sm:$0xff]  }
 0x1a1   :  { %3972 = vmatprep.subr.bf16.mxu1 %v10155_v27  ;;  %v10183_v44 = vld [vmem:[#allocation6 + $0x728] ss:$16 sps:$4 sm:$0xff]   ;;  %v10188_v27 = vld [vmem:[#allocation6 + $0x50c] ss:$16 sps:$4 sm:$0xff]  }
 0x1a3   :  { %3920 = vmatpush2.bf16.msra.mxu0 %v10150_v34  ;;  %v10191_v34 = vld [vmem:[#allocation6 + $0x70c] ss:$16 sps:$4 sm:$0xff]  }
 0x1a4   :  { %3973 = vmatpush2.bf16.msra.mxu1 %v10153_v37  ;;  %3921 = vmatprep.subr.bf16.mxu0 %v10158_v4  ;;  %v10186_v37 = vld [vmem:[#allocation6 + $0x508] ss:$16 sps:$4 sm:$0xff]  }
 0x1a5   :  { %3974 = vmatprep.subr.bf16.mxu1 %v10161_v50  ;;  %v10189_v4 = vld [vmem:[#allocation6 + $0x708] ss:$16 sps:$4 sm:$0xff]   ;;  %v10194_v50 = vld [vmem:[#allocation6 + $0x8ec] ss:$16 sps:$4 sm:$0xff]  }
 0x1a7   :  { %3922 = vmatpush2.bf16.msra.mxu0 %v10156_v61  ;;  %v10197_v61 = vld [vmem:[#allocation6 + $0xaec] ss:$16 sps:$4 sm:$0xff]  }
 0x1a8   :  { %3975 = vmatpush2.bf16.msra.mxu1 %v10159_v8  ;;  %3923 = vmatprep.subr.bf16.mxu0 %v10164_v14  ;;  %v10192_v8 = vld [vmem:[#allocation6 + $0x8e8] ss:$16 sps:$4 sm:$0xff]  }
 0x1a9   :  { %3976 = vmatprep.subr.bf16.mxu1 %v10167_v49  ;;  %v10195_v14 = vld [vmem:[#allocation6 + $0xae8] ss:$16 sps:$4 sm:$0xff]   ;;  %v10832_v49 = vpop.f32.mrf.mxu0 }
 0x1ab   :  { %3924 = vmatpush2.bf16.msra.mxu0 %v10162_v51  ;;  %v10834_v51 = vpop.f32.mrf.mxu1 }
 0x1ac   :  { %3977 = vmatpush2.bf16.msra.mxu1 %v10165_v60  ;;  %3925 = vmatprep.subr.bf16.mxu0 %v10170_v20  ;;  %v10200_v60 = vld [vmem:[#allocation6 + $0x8cc] ss:$16 sps:$4 sm:$0xff]  }
 0x1ad   :  { %3978 = vmatprep.subr.bf16.mxu1 %v10173_v6  ;;  %v10203_v20 = vld [vmem:[#allocation6 + $0xacc] ss:$16 sps:$4 sm:$0xff]  }
 0x1af   :  { %3926 = vmatpush2.bf16.msra.mxu0 %v10168_v7 }
 0x1b0   :  { %3979 = vmatpush2.bf16.msra.mxu1 %v10171_v18  ;;  %3927 = vmatprep.subr.bf16.mxu0 %v10176_v33  ;;  %v10198_v33 = vld [vmem:[#allocation6 + $0x8c8] ss:$16 sps:$4 sm:$0xff]  }
 0x1b1   :  { %3980 = vmatprep.subr.bf16.mxu1 %v10179_v19  ;;  %v10201_v19 = vld [vmem:[#allocation6 + $0xac8] ss:$16 sps:$4 sm:$0xff]  }
 0x1b3   :  { %3928 = vmatpush2.bf16.msra.mxu0 %v10174_v35 }
 0x1b4   :  { %3981 = vmatpush2.bf16.msra.mxu1 %v10177_v11  ;;  %3929 = vmatprep.subr.bf16.mxu0 %v10182_v54  ;;  %v10206_v54 = vld [vmem:[#allocation6 + $0x8ac] ss:$16 sps:$4 sm:$0xff]  }
 0x1b5   :  { %3982 = vmatprep.subr.bf16.mxu1 %v10185_v38  ;;  %v10209_v38 = vld [vmem:[#allocation6 + $0xaac] ss:$16 sps:$4 sm:$0xff]  }
 0x1b7   :  { %3930 = vmatpush2.bf16.msra.mxu0 %v10180_v26 }
 0x1b8   :  { %3983 = vmatpush2.bf16.msra.mxu1 %v10183_v44  ;;  %3931 = vmatprep.subr.bf16.mxu0 %v10188_v27  ;;  %v10204_v44 = vld [vmem:[#allocation6 + $0x8a8] ss:$16 sps:$4 sm:$0xff]  }
 0x1b9   :  { %3984 = vmatprep.subr.bf16.mxu1 %v10191_v34  ;;  %v10207_v27 = vld [vmem:[#allocation6 + $0xaa8] ss:$16 sps:$4 sm:$0xff]  }
 0x1bb   :  { %3932 = vmatpush2.bf16.msra.mxu0 %v10186_v37 }
 0x1bc   :  { %3985 = vmatpush2.bf16.msra.mxu1 %v10189_v4  ;;  %4007 = vmatprep.subr.bf16.mxu0 %v10194_v50  ;;  %v10212_v4 = vld [vmem:[#allocation6 + $0x88c] ss:$16 sps:$4 sm:$0xff]  }
 0x1bd   :  { %4060 = vmatprep.subr.bf16.mxu1 %v10197_v61  ;;  %v10215_v50 = vld [vmem:[#allocation6 + $0xa8c] ss:$16 sps:$4 sm:$0xff]  }
 0x1be   :  { %v3617_v6 = vpop.f32.mrf.mxu0  ;;  %3934 = vmatmul.mubr.bf16.vlgmr.msra.gmra.mxu0 %v10654_v32 }
 0x1bf   :  { %v3670_v7 = vpop.f32.mrf.mxu1  ;;  %3987 = vmatmul.mubr.bf16.vlgmr.msra.gmra.mxu1 %v10658_v36  ;;  %v3618_v18 = vadd.f32 %v3617_v6, %v10808_v48  ;;  %4008 = vmatpush1.bf16.msra.mxu0 %v10192_v8  ;;  %v10210_v8 = vld [vmem:[#allocation6 + $0x888] ss:$16 sps:$4 sm:$0xff]   ;;  %v10218_v6 = vld [vmem:[#allocation6 + $0x86c] ss:$16 sps:$4 sm:$0xff]  }
 0x1c0   :  { %4061 = vmatpush1.bf16.msra.mxu1 %v10195_v14  ;;  %v10839_v35 = vpop.f32.mrf.mxu0  ;;  %4009 = vmatprep.subr.bf16.mxu0 %v10200_v60  ;;  %v10213_v14 = vld [vmem:[#allocation6 + $0xa88] ss:$16 sps:$4 sm:$0xff]  }
 0x1c1   :  { %v10841_v11 = vpop.f32.mrf.mxu1  ;;  %4062 = vmatprep.subr.bf16.mxu1 %v10203_v20  ;;  %v10843_v26 = vadd.f32 %v3670_v7, %v3618_v18  ;;  %3943 = vmatprep.mubr.bf16.mxu0 %v10660_v42  ;;  %v10221_v7 = vld [vmem:[#allocation6 + $0xa6c] ss:$16 sps:$4 sm:$0xff]  }
 0x1c2   :  { %3996 = vmatprep.mubr.bf16.mxu1 %v10662_v43  ;;  %v3621_v32 = vpop.f32.mrf.mxu0 }
 0x1c3   :  { %v3674_v36 = vpop.f32.mrf.mxu1  ;;  %v3622_v48 = vadd.f32 %v3621_v32, %v10817_v12  ;;  %4010 = vmatpush1.bf16.msra.mxu0 %v10198_v33  ;;  %v10224_v32 = vld [vmem:[#allocation6 + $0x84c] ss:$16 sps:$4 sm:$0xff]  }
 0x1c4   :  { %4063 = vmatpush1.bf16.msra.mxu1 %v10201_v19  ;;  %v10848_v34 = vpop.f32.mrf.mxu0  ;;  %4011 = vmatprep.subr.bf16.mxu0 %v10206_v54  ;;  %v10216_v54 = vld [vmem:[#allocation6 + $0x868] ss:$16 sps:$4 sm:$0xff]  }
 0x1c5   :  { %v10850_v37 = vpop.f32.mrf.mxu1  ;;  %4064 = vmatprep.subr.bf16.mxu1 %v10209_v38  ;;  %v10852_v61 = vadd.f32 %v3674_v36, %v3622_v48  ;;  %v10219_v38 = vld [vmem:[#allocation6 + $0xa68] ss:$16 sps:$4 sm:$0xff]   ;;  %v10230_v48 = vld [vmem:[#allocation6 + $0x82c] ss:$16 sps:$4 sm:$0xff]  }
 0x1c6   :  { %v3627_v42 = vpop.f32.mrf.mxu0  ;;  %3944 = vmatmul.mubr.bf16.gmra.mxu0 %v10672_v56 }
 0x1c7   :  { %v3680_v43 = vpop.f32.mrf.mxu1  ;;  %3997 = vmatmul.mubr.bf16.gmra.mxu1 %v10674_v57  ;;  %v3628_v12 = vadd.f32 %v3627_v42, %v10823_v30  ;;  %4012 = vmatpush1.bf16.msra.mxu0 %v10204_v44  ;;  %v10228_v44 = vld [vmem:[#allocation6 + $0x828] ss:$16 sps:$4 sm:$0xff]  }
 0x1c8   :  { %4065 = vmatpush1.bf16.msra.mxu1 %v10207_v27  ;;  %v3629_v60 = vpop.f32.mrf.mxu0  ;;  %4013 = vmatprep.subr.bf16.mxu0 %v10212_v4  ;;  %v10231_v27 = vld [vmem:[#allocation6 + $0xa28] ss:$16 sps:$4 sm:$0xff]   ;;  %v10236_v4 = vld [vmem:[#allocation6 + $0x80c] ss:$16 sps:$4 sm:$0xff]  }
 0x1c9   :  { %v3682_v20 = vpop.f32.mrf.mxu1  ;;  %4066 = vmatprep.subr.bf16.mxu1 %v10215_v50  ;;  %v3630_v18 = vadd.f32 %v3629_v60, %v10828_v45  ;;  %v10858_v33 = vadd.f32 %v3680_v43, %v3628_v12  ;;  %4039 = vmatprep.mubr.bf16.mxu0 %v10682_v62  ;;  %v10227_v45 = vld [vmem:[#allocation6 + $0xa4c] ss:$16 sps:$4 sm:$0xff]   ;;  %v10222_v62 = vld [vmem:[#allocation6 + $0x848] ss:$16 sps:$4 sm:$0xff]  }
 0x1ca   :  { %4092 = vmatprep.mubr.bf16.mxu1 %v10686_v63  ;;  %v3631_v56 = vpop.f32.mrf.mxu0  ;;  %v10225_v63 = vld [vmem:[#allocation6 + $0xa48] ss:$16 sps:$4 sm:$0xff]   ;;  %v10239_v50 = vld [vmem:[#allocation6 + $0xa0c] ss:$16 sps:$4 sm:$0xff]  }
 0x1cb   :  { %v3684_v57 = vpop.f32.mrf.mxu1  ;;  %v3632_v30 = vadd.f32 %v3631_v56, %v10830_v9  ;;  %v10863_v19 = vadd.f32 %v3682_v20, %v3630_v18  ;;  %4014 = vmatpush1.bf16.msra.mxu0 %v10210_v8  ;;  %v10233_v9 = vld [vmem:[#allocation6 + $0xa2c] ss:$16 sps:$4 sm:$0xff]   ;;  %v10234_v42 = vld [vmem:[#allocation6 + $0x808] ss:$16 sps:$4 sm:$0xff]  }
 0x1cc   :  { %4067 = vmatpush1.bf16.msra.mxu1 %v10213_v14  ;;  %4015 = vmatprep.subr.bf16.mxu0 %v10218_v6  ;;  %v10237_v43 = vld [vmem:[#allocation6 + $0xa08] ss:$16 sps:$4 sm:$0xff]   ;;  %v10242_v12 = vld [vmem:[#allocation6 + $0x9ec] ss:$16 sps:$4 sm:$0xff]  }
 0x1cd   :  { %4068 = vmatprep.subr.bf16.mxu1 %v10221_v7  ;;  %v10865_v36 = vadd.f32 %v3684_v57, %v3632_v30  ;;  %v10245_v8 = vld [vmem:[#allocation6 + $0xbec] ss:$16 sps:$4 sm:$0xff]   ;;  %v10240_v14 = vld [vmem:[#allocation6 + $0x9e8] ss:$16 sps:$4 sm:$0xff]  }
 0x1ce   :  { %v10243_v60 = vld [vmem:[#allocation6 + $0xbe8] ss:$16 sps:$4 sm:$0xff]   ;;  %v10248_v20 = vld [vmem:[#allocation6 + $0x9cc] ss:$16 sps:$4 sm:$0xff]  }
 0x1cf   :  { %4016 = vmatpush1.bf16.msra.mxu0 %v10216_v54  ;;  %v10251_v6 = vld [vmem:[#allocation6 + $0xbcc] ss:$16 sps:$4 sm:$0xff]   ;;  %v10246_v7 = vld [vmem:[#allocation6 + $0x9c8] ss:$16 sps:$4 sm:$0xff]  }
 0x1d0   :  { %4069 = vmatpush1.bf16.msra.mxu1 %v10219_v38  ;;  %4017 = vmatprep.subr.bf16.mxu0 %v10224_v32  ;;  %v10249_v18 = vld [vmem:[#allocation6 + $0xbc8] ss:$16 sps:$4 sm:$0xff]   ;;  %v10254_v56 = vld [vmem:[#allocation6 + $0x9ac] ss:$16 sps:$4 sm:$0xff]  }
 0x1d1   :  { %4070 = vmatprep.subr.bf16.mxu1 %v10227_v45  ;;  %v10257_v57 = vld [vmem:[#allocation6 + $0xbac] ss:$16 sps:$4 sm:$0xff]   ;;  %v10252_v30 = vld [vmem:[#allocation6 + $0x9a8] ss:$16 sps:$4 sm:$0xff]  }
 0x1d2   :  { %v10255_v54 = vld [vmem:[#allocation6 + $0xba8] ss:$16 sps:$4 sm:$0xff]   ;;  %v10260_v38 = vld [vmem:[#allocation6 + $0x98c] ss:$16 sps:$4 sm:$0xff]  }
 0x1d3   :  { %4018 = vmatpush1.bf16.msra.mxu0 %v10222_v62  ;;  %v10263_v32 = vld [vmem:[#allocation6 + $0xb8c] ss:$16 sps:$4 sm:$0xff]   ;;  %v10258_v45 = vld [vmem:[#allocation6 + $0x988] ss:$16 sps:$4 sm:$0xff]  }
 0x1d4   :  { %4071 = vmatpush1.bf16.msra.mxu1 %v10225_v63  ;;  %4019 = vmatprep.subr.bf16.mxu0 %v10230_v48  ;;  %v10261_v62 = vld [vmem:[#allocation6 + $0xb88] ss:$16 sps:$4 sm:$0xff]   ;;  %v10266_v63 = vld [vmem:[#allocation6 + $0x96c] ss:$16 sps:$4 sm:$0xff]  }
 0x1d5   :  { %4072 = vmatprep.subr.bf16.mxu1 %v10233_v9  ;;  %v10269_v48 = vld [vmem:[#allocation6 + $0xb6c] ss:$16 sps:$4 sm:$0xff]   ;;  %v10264_v9 = vld [vmem:[#allocation6 + $0x968] ss:$16 sps:$4 sm:$0xff]  }
 0x1d7   :  { %4020 = vmatpush1.bf16.msra.mxu0 %v10228_v44  ;;  %v10267_v44 = vld [vmem:[#allocation6 + $0xb68] ss:$16 sps:$4 sm:$0xff]  }
 0x1d8   :  { %4073 = vmatpush1.bf16.msra.mxu1 %v10231_v27  ;;  %4021 = vmatprep.subr.bf16.mxu0 %v10236_v4  ;;  %v10272_v27 = vld [vmem:[#allocation6 + $0x94c] ss:$16 sps:$4 sm:$0xff]  }
 0x1d9   :  { %4074 = vmatprep.subr.bf16.mxu1 %v10239_v50  ;;  %v10275_v4 = vld [vmem:[#allocation6 + $0xb4c] ss:$16 sps:$4 sm:$0xff]   ;;  %v10270_v50 = vld [vmem:[#allocation6 + $0x948] ss:$16 sps:$4 sm:$0xff]  }
 0x1db   :  { %4022 = vmatpush1.bf16.msra.mxu0 %v10234_v42  ;;  %v10273_v42 = vld [vmem:[#allocation6 + $0xb48] ss:$16 sps:$4 sm:$0xff]  }
 0x1dc   :  { %4075 = vmatpush1.bf16.msra.mxu1 %v10237_v43  ;;  %4023 = vmatprep.subr.bf16.mxu0 %v10242_v12  ;;  %v10278_v43 = vld [vmem:[#allocation6 + $0x92c] ss:$16 sps:$4 sm:$0xff]  }
 0x1dd   :  { %4076 = vmatprep.subr.bf16.mxu1 %v10245_v8  ;;  %v10281_v12 = vld [vmem:[#allocation6 + $0xb2c] ss:$16 sps:$4 sm:$0xff]   ;;  %v10276_v8 = vld [vmem:[#allocation6 + $0x928] ss:$16 sps:$4 sm:$0xff]  }
 0x1df   :  { %4024 = vmatpush2.bf16.msra.mxu0 %v10240_v14  ;;  %v10279_v14 = vld [vmem:[#allocation6 + $0xb28] ss:$16 sps:$4 sm:$0xff]  }
 0x1e0   :  { %4077 = vmatpush2.bf16.msra.mxu1 %v10243_v60  ;;  %4025 = vmatprep.subr.bf16.mxu0 %v10248_v20  ;;  %v10284_v60 = vld [vmem:[#allocation6 + $0x90c] ss:$16 sps:$4 sm:$0xff]  }
 0x1e1   :  { %4078 = vmatprep.subr.bf16.mxu1 %v10251_v6  ;;  %v10287_v20 = vld [vmem:[#allocation6 + $0xb0c] ss:$16 sps:$4 sm:$0xff]   ;;  %v10282_v6 = vld [vmem:[#allocation6 + $0x908] ss:$16 sps:$4 sm:$0xff]  }
 0x1e3   :  { %4026 = vmatpush2.bf16.msra.mxu0 %v10246_v7  ;;  %v10285_v7 = vld [vmem:[#allocation6 + $0xb08] ss:$16 sps:$4 sm:$0xff]  }
 0x1e4   :  { %4079 = vmatpush2.bf16.msra.mxu1 %v10249_v18  ;;  %4027 = vmatprep.subr.bf16.mxu0 %v10254_v56  ;;  %v10290_v18 = vld [vmem:[#allocation6 + $0xcec] ss:$16 sps:$4 sm:$0xff]  }
 0x1e5   :  { %4080 = vmatprep.subr.bf16.mxu1 %v10257_v57  ;;  %v10293_v56 = vld [vmem:[#allocation6 + $0xeec] ss:$16 sps:$4 sm:$0xff]   ;;  %v10288_v57 = vld [vmem:[#allocation6 + $0xce8] ss:$16 sps:$4 sm:$0xff]  }
 0x1e7   :  { %4028 = vmatpush2.bf16.msra.mxu0 %v10252_v30  ;;  %v10291_v30 = vld [vmem:[#allocation6 + $0xee8] ss:$16 sps:$4 sm:$0xff]  }
 0x1e8   :  { %4081 = vmatpush2.bf16.msra.mxu1 %v10255_v54  ;;  %4029 = vmatprep.subr.bf16.mxu0 %v10260_v38  ;;  %v10867_v54 = vpop.f32.mrf.mxu0  ;;  %v10869_v38 = vpop.f32.mrf.mxu1 }
 0x1e9   :  { %4082 = vmatprep.subr.bf16.mxu1 %v10263_v32  ;;  %v10296_v32 = vld [vmem:[#allocation6 + $0xccc] ss:$16 sps:$4 sm:$0xff]  }
 0x1eb   :  { %4030 = vmatpush2.bf16.msra.mxu0 %v10258_v45  ;;  %v10299_v45 = vld [vmem:[#allocation6 + $0xecc] ss:$16 sps:$4 sm:$0xff]  }
 0x1ec   :  { %4083 = vmatpush2.bf16.msra.mxu1 %v10261_v62  ;;  %4031 = vmatprep.subr.bf16.mxu0 %v10266_v63 }
 0x1ed   :  { %4084 = vmatprep.subr.bf16.mxu1 %v10269_v48  ;;  %v10294_v48 = vld [vmem:[#allocation6 + $0xcc8] ss:$16 sps:$4 sm:$0xff]  }
 0x1ef   :  { %4032 = vmatpush2.bf16.msra.mxu0 %v10264_v9  ;;  %v10297_v9 = vld [vmem:[#allocation6 + $0xec8] ss:$16 sps:$4 sm:$0xff]  }
 0x1f0   :  { %4085 = vmatpush2.bf16.msra.mxu1 %v10267_v44  ;;  %4033 = vmatprep.subr.bf16.mxu0 %v10272_v27 }
 0x1f1   :  { %4086 = vmatprep.subr.bf16.mxu1 %v10275_v4  ;;  %v10302_v4 = vld [vmem:[#allocation6 + $0xcac] ss:$16 sps:$4 sm:$0xff]  }
 0x1f3   :  { %4034 = vmatpush2.bf16.msra.mxu0 %v10270_v50  ;;  %v10305_v50 = vld [vmem:[#allocation6 + $0xeac] ss:$16 sps:$4 sm:$0xff]  }
 0x1f4   :  { %4087 = vmatpush2.bf16.msra.mxu1 %v10273_v42  ;;  %4035 = vmatprep.subr.bf16.mxu0 %v10278_v43 }
 0x1f5   :  { %4088 = vmatprep.subr.bf16.mxu1 %v10281_v12  ;;  %v10300_v12 = vld [vmem:[#allocation6 + $0xca8] ss:$16 sps:$4 sm:$0xff]  }
 0x1f7   :  { %4036 = vmatpush2.bf16.msra.mxu0 %v10276_v8  ;;  %v10303_v8 = vld [vmem:[#allocation6 + $0xea8] ss:$16 sps:$4 sm:$0xff]  }
 0x1f8   :  { %4089 = vmatpush2.bf16.msra.mxu1 %v10279_v14  ;;  %4037 = vmatprep.subr.bf16.mxu0 %v10284_v60 }
 0x1f9   :  { %4090 = vmatprep.subr.bf16.mxu1 %v10287_v20  ;;  %v10308_v20 = vld [vmem:[#allocation6 + $0xc8c] ss:$16 sps:$4 sm:$0xff]  }
 0x1fb   :  { %4038 = vmatpush2.bf16.msra.mxu0 %v10282_v6 }
 0x1fc   :  { %4091 = vmatpush2.bf16.msra.mxu1 %v10285_v7  ;;  %4113 = vmatprep.subr.bf16.mxu0 %v10290_v18  ;;  %v10306_v18 = vld [vmem:[#allocation6 + $0xc88] ss:$16 sps:$4 sm:$0xff]  }
 0x1fd   :  { %4166 = vmatprep.subr.bf16.mxu1 %v10293_v56  ;;  %v10309_v56 = vld [vmem:[#allocation6 + $0xe88] ss:$16 sps:$4 sm:$0xff]  }
 0x1fe   :  { %v3723_v62 = vpop.f32.mrf.mxu0  ;;  %4040 = vmatmul.mubr.bf16.vlgmr.msra.gmra.mxu0 %v10694_v16 }
 0x1ff   :  { %v3776_v63 = vpop.f32.mrf.mxu1  ;;  %4093 = vmatmul.mubr.bf16.vlgmr.msra.gmra.mxu1 %v10698_v17  ;;  %4114 = vmatpush1.bf16.msra.mxu0 %v10288_v57  ;;  %v3724_v42 = vadd.f32 %v3723_v62, %v10843_v26  ;;  %v10311_v26 = vld [vmem:[#allocation6 + $0xe8c] ss:$16 sps:$4 sm:$0xff]  }
 0x200   :  { %4167 = vmatpush1.bf16.msra.mxu1 %v10291_v30  ;;  %v10873_v44 = vpop.f32.mrf.mxu0  ;;  %4115 = vmatprep.subr.bf16.mxu0 %v10296_v32  ;;  %v10314_v32 = vld [vmem:[#allocation6 + $0xc6c] ss:$16 sps:$4 sm:$0xff]  }
 0x201   :  { %v10875_v27 = vpop.f32.mrf.mxu1  ;;  %4168 = vmatprep.subr.bf16.mxu1 %v10299_v45  ;;  %4049 = vmatprep.mubr.bf16.mxu0 %v10700_v23  ;;  %v3777_v6 = vadd.f32 %v3776_v63, %v3724_v42  ;;  %v10317_v45 = vld [vmem:[#allocation6 + $0xe6c] ss:$16 sps:$4 sm:$0xff]  }
 0x202   :  { %4102 = vmatprep.mubr.bf16.mxu1 %v10702_v24  ;;  %v3727_v16 = vpop.f32.mrf.mxu0 }
 0x203   :  { %v3780_v17 = vpop.f32.mrf.mxu1  ;;  %v3728_v43 = vadd.f32 %v3727_v16, %v10852_v61  ;;  %4116 = vmatpush1.bf16.msra.mxu0 %v10294_v48  ;;  %v10312_v48 = vld [vmem:[#allocation6 + $0xc68] ss:$16 sps:$4 sm:$0xff]  }
 0x204   :  { %4169 = vmatpush1.bf16.msra.mxu1 %v10297_v9  ;;  %v10881_v14 = vpop.f32.mrf.mxu0  ;;  %4117 = vmatprep.subr.bf16.mxu0 %v10302_v4  ;;  %v10315_v9 = vld [vmem:[#allocation6 + $0xe68] ss:$16 sps:$4 sm:$0xff]   ;;  %v10320_v4 = vld [vmem:[#allocation6 + $0xc4c] ss:$16 sps:$4 sm:$0xff]  }
 0x205   :  { %v10883_v60 = vpop.f32.mrf.mxu1  ;;  %4170 = vmatprep.subr.bf16.mxu1 %v10305_v50  ;;  %v3781_v23 = vadd.f32 %v3780_v17, %v3728_v43  ;;  %v10323_v50 = vld [vmem:[#allocation6 + $0xe4c] ss:$16 sps:$4 sm:$0xff]   ;;  %v10324_v43 = vld [vmem:[#allocation6 + $0xc28] ss:$16 sps:$4 sm:$0xff]  }
 0x206   :  { %v3733_v7 = vpop.f32.mrf.mxu0  ;;  %4050 = vmatmul.mubr.bf16.gmra.mxu0 %v10714_v28 }
 0x207   :  { %v3786_v24 = vpop.f32.mrf.mxu1  ;;  %4103 = vmatmul.mubr.bf16.gmra.mxu1 %v10716_v29  ;;  %v10887_v61 = vpack.c.bf16 %v3781_v23, %v3777_v6  ;;  %4118 = vmatpush1.bf16.msra.mxu0 %v10300_v12  ;;  %v3734_v62 = vadd.f32 %v3733_v7, %v10858_v33  ;;  %v10326_v33 = vld [vmem:[#allocation6 + $0xc2c] ss:$16 sps:$4 sm:$0xff]   ;;  %v10327_v12 = vld [vmem:[#allocation6 + $0xe28] ss:$16 sps:$4 sm:$0xff]  }
 0x208   :  { %4171 = vmatpush1.bf16.msra.mxu1 %v10303_v8  ;;  %v10889_v57 = vpop.f32.mrf.mxu0  ;;  %4119 = vmatprep.subr.bf16.mxu0 %v10308_v20  ;;  %v10332_v8 = vld [vmem:[#allocation6 + $0xc0c] ss:$16 sps:$4 sm:$0xff]   ;;  %v10333_v6 = vld [vmem:[#allocation6 + $0xe08] ss:$16 sps:$4 sm:$0xff]  }
 0x209   :  { %v10891_v30 = vpop.f32.mrf.mxu1  ;;  %4172 = vmatprep.subr.bf16.mxu1 %v10311_v26  ;;  %4145 = vmatprep.mubr.bf16.mxu0 %v10722_v40  ;;  %v3787_v42 = vadd.f32 %v3786_v24, %v3734_v62  ;;  %v10318_v40 = vld [vmem:[#allocation6 + $0xc48] ss:$16 sps:$4 sm:$0xff]   ;;  %v10335_v20 = vld [vmem:[#allocation6 + $0xe0c] ss:$16 sps:$4 sm:$0xff]  }
 0x20a   :  { %4198 = vmatprep.mubr.bf16.mxu1 %v10726_v41  ;;  %v3737_v28 = vpop.f32.mrf.mxu0  ;;  %v10321_v41 = vld [vmem:[#allocation6 + $0xe48] ss:$16 sps:$4 sm:$0xff]   ;;  %v10338_v23 = vld [vmem:[#allocation6 + $0xdec] ss:$16 sps:$4 sm:$0xff]  }
 0x20b   :  { %v3790_v29 = vpop.f32.mrf.mxu1  ;;  %v3738_v63 = vadd.f32 %v3737_v28, %v10865_v36  ;;  %4120 = vmatpush1.bf16.msra.mxu0 %v10306_v18  ;;  %v10329_v36 = vld [vmem:[#allocation6 + $0xe2c] ss:$16 sps:$4 sm:$0xff]   ;;  %v10330_v26 = vld [vmem:[#allocation6 + $0xc08] ss:$16 sps:$4 sm:$0xff]  }
 0x20c   :  { %4173 = vmatpush1.bf16.msra.mxu1 %v10309_v56  ;;  %4121 = vmatprep.subr.bf16.mxu0 %v10314_v32  ;;  %v10341_v7 = vld [vmem:[#allocation6 + $0xfec] ss:$16 sps:$4 sm:$0xff]   ;;  %v10336_v24 = vld [vmem:[#allocation6 + $0xde8] ss:$16 sps:$4 sm:$0xff]  }
 0x20d   :  { %4174 = vmatprep.subr.bf16.mxu1 %v10317_v45  ;;  %v3791_v16 = vadd.f32 %v3790_v29, %v3738_v63  ;;  %v10339_v18 = vld [vmem:[#allocation6 + $0xfe8] ss:$16 sps:$4 sm:$0xff]   ;;  %v10344_v56 = vld [vmem:[#allocation6 + $0xdcc] ss:$16 sps:$4 sm:$0xff]  }
 0x20e   :  { %v10347_v32 = vld [vmem:[#allocation6 + $0xfcc] ss:$16 sps:$4 sm:$0xff]   ;;  %v10342_v45 = vld [vmem:[#allocation6 + $0xdc8] ss:$16 sps:$4 sm:$0xff]  }
 0x20f   :  { %v10897_v17 = vpack.c.bf16 %v3791_v16, %v3787_v42  ;;  %4122 = vmatpush1.bf16.msra.mxu0 %v10312_v48  ;;  %v10345_v62 = vld [vmem:[#allocation6 + $0xfc8] ss:$16 sps:$4 sm:$0xff]   ;;  %v10350_v28 = vld [vmem:[#allocation6 + $0xdac] ss:$16 sps:$4 sm:$0xff]  }
 0x210   :  { %4175 = vmatpush1.bf16.msra.mxu1 %v10315_v9  ;;  %4123 = vmatprep.subr.bf16.mxu0 %v10320_v4  ;;  %v10353_v29 = vld [vmem:[#allocation6 + $0xfac] ss:$16 sps:$4 sm:$0xff]   ;;  %v10348_v63 = vld [vmem:[#allocation6 + $0xda8] ss:$16 sps:$4 sm:$0xff]  }
 0x211   :  { %4176 = vmatprep.subr.bf16.mxu1 %v10323_v50  ;;  %v10351_v48 = vld [vmem:[#allocation6 + $0xfa8] ss:$16 sps:$4 sm:$0xff]   ;;  %v10356_v9 = vld [vmem:[#allocation6 + $0xd8c] ss:$16 sps:$4 sm:$0xff]  }
 0x212   :  { %v10359_v4 = vld [vmem:[#allocation6 + $0xf8c] ss:$16 sps:$4 sm:$0xff]   ;;  %v10354_v50 = vld [vmem:[#allocation6 + $0xd88] ss:$16 sps:$4 sm:$0xff]  }
 0x213   :  { %4124 = vmatpush1.bf16.msra.mxu0 %v10318_v40  ;;  %v10357_v42 = vld [vmem:[#allocation6 + $0xf88] ss:$16 sps:$4 sm:$0xff]   ;;  %v10362_v16 = vld [vmem:[#allocation6 + $0xd6c] ss:$16 sps:$4 sm:$0xff]  }
 0x214   :  { %4177 = vmatpush1.bf16.msra.mxu1 %v10321_v41  ;;  %4125 = vmatprep.subr.bf16.mxu0 %v10326_v33  ;;  %v10365_v40 = vld [vmem:[#allocation6 + $0xf6c] ss:$16 sps:$4 sm:$0xff]   ;;  %v3412_v41 = vadd.f32 %v10780_v25, %v10786_v55  ;;  %v10360_v33 = vld [vmem:[#allocation6 + $0xd68] ss:$16 sps:$4 sm:$0xff]  }
 0x215   :  { %4178 = vmatprep.subr.bf16.mxu1 %v10329_v36  ;;  %v10363_v36 = vld [vmem:[#allocation6 + $0xf68] ss:$16 sps:$4 sm:$0xff]   ;;  %v10374_v25 = vld [vmem:[#allocation6 + $0xd2c] ss:$16 sps:$4 sm:$0xff]  }
 0x217   :  { %4126 = vmatpush1.bf16.msra.mxu0 %v10324_v43  ;;  %v10368_v43 = vld [vmem:[#allocation6 + $0xd4c] ss:$16 sps:$4 sm:$0xff]  }
 0x218   :  { %4179 = vmatpush1.bf16.msra.mxu1 %v10327_v12  ;;  %4127 = vmatprep.subr.bf16.mxu0 %v10332_v8  ;;  %v10371_v12 = vld [vmem:[#allocation6 + $0xf4c] ss:$16 sps:$4 sm:$0xff]   ;;  %v3408_v8 = vadd.f32 %v10758_v46, %v10786_v55  ;;  %v10375_v46 = vld [vmem:[#allocation6 + $0xf28] ss:$16 sps:$4 sm:$0xff]  }
 0x219   :  { %4180 = vmatprep.subr.bf16.mxu1 %v10335_v20  ;;  %v3465_v20 = vadd.f32 %v10782_v31, %v3412_v41  ;;  %v10380_v31 = vld [vmem:[#allocation6 + $0xd0c] ss:$16 sps:$4 sm:$0xff]  }
 0x21b   :  { %4128 = vmatpush1.bf16.msra.mxu0 %v10330_v26  ;;  %v10366_v26 = vld [vmem:[#allocation6 + $0xd48] ss:$16 sps:$4 sm:$0xff]  }
 0x21c   :  { %4181 = vmatpush1.bf16.msra.mxu1 %v10333_v6  ;;  %4129 = vmatprep.subr.bf16.mxu0 %v10338_v23  ;;  %v10369_v6 = vld [vmem:[#allocation6 + $0xf48] ss:$16 sps:$4 sm:$0xff]   ;;  %v10377_v23 = vld [vmem:[#allocation6 + $0xf2c] ss:$16 sps:$4 sm:$0xff]  }
 0x21d   :  { %4182 = vmatprep.subr.bf16.mxu1 %v10341_v7  ;;  %v3461_v7 = vadd.f32 %v10760_v47, %v3408_v8  ;;  %v4243_v8 = vld [vmem:[#allocation9 + $0x100] sm:$0xff] }
 0x21f   :  { %4130 = vmatpush2.bf16.msra.mxu0 %v10336_v24  ;;  %v3518_v24 = vadd.f32 %v10813_v1, %v3465_v20  ;;  %v10378_v1 = vld [vmem:[#allocation6 + $0xd08] ss:$16 sps:$4 sm:$0xff]  }
 0x220   :  { %4183 = vmatpush2.bf16.msra.mxu1 %v10339_v18  ;;  %4131 = vmatprep.subr.bf16.mxu0 %v10344_v56  ;;  %v3514_v18 = vadd.f32 %v10804_v58, %v3461_v7  ;;  %v10372_v56 = vld [vmem:[#allocation6 + $0xd28] ss:$16 sps:$4 sm:$0xff]  }
 0x221   :  { %4184 = vmatprep.subr.bf16.mxu1 %v10347_v32  ;;  %v10383_v32 = vld [vmem:[#allocation6 + $0xf0c] ss:$16 sps:$4 sm:$0xff]   ;;  %v10381_v58 = vld [vmem:[#allocation6 + $0xf08] ss:$16 sps:$4 sm:$0xff]  }
 0x222   :  { %v4247_v20 = vld [vmem:[#allocation9 + $0x140] sm:$0xff] }
 0x223   :  { %4132 = vmatpush2.bf16.msra.mxu0 %v10342_v45  ;;  %v3571_v45 = vadd.f32 %v10815_v3, %v3518_v24  ;;  %v4235_v7 = vld [vmem:[#allocation9 + $0x80] sm:$0xff] }
 0x224   :  { %4185 = vmatpush2.bf16.msra.mxu1 %v10345_v62  ;;  %4133 = vmatprep.subr.bf16.mxu0 %v10350_v28  ;;  %v4283_v62 = vld [vmem:[#allocation9 + $0x380] sm:$0xff] }
 0x225   :  { %4186 = vmatprep.subr.bf16.mxu1 %v10353_v29  ;;  %v4287_v28 = vld [vmem:[#allocation9 + $0x3c0] sm:$0xff]  ;;  %v3567_v29 = vadd.f32 %v10806_v53, %v3514_v18  ;;  %v3624_v47 = vadd.f32 %v10848_v34, %v3571_v45 }
 0x226   :  { %v9149_v3 = vcombine.low %v4283_v62, %v4287_v28  ;;  %v4239_v24 = vld [vmem:[#allocation9 + $0xc0] sm:$0xff] }
 0x227   :  { %4134 = vmatpush2.bf16.msra.mxu0 %v10348_v63  ;;  %v9150_v63 = vcombine.high %v4283_v62, %v4287_v28  ;;  %v4399_v45 = vld [vmem:[#allocation9 + $0xac0] sm:$0xff] }
 0x228   :  { %4187 = vmatpush2.bf16.msra.mxu1 %v10351_v48  ;;  %4135 = vmatprep.subr.bf16.mxu0 %v10356_v9  ;;  %v3620_v48 = vadd.f32 %v10839_v35, %v3567_v29  ;;  %v4275_v9 = vld [vmem:[#allocation9 + $0x300] sm:$0xff] }
 0x229   :  { %4188 = vmatprep.subr.bf16.mxu1 %v10359_v4  ;;  %v4279_v4 = vld [vmem:[#allocation9 + $0x340] sm:$0xff] }
 0x22a   :  { %v9142_v53 = vcombine.high %v4275_v9, %v4279_v4  ;;  %v3673_v34 = vadd.f32 %v10841_v11, %v3620_v48  ;;  %v9141_v41 = vcombine.low %v4275_v9, %v4279_v4  ;;  %v4227_v62 = vld [vmem:[#allocation9] sm:$0xff] }
 0x22b   :  { %4136 = vmatpush2.bf16.msra.mxu0 %v10354_v50  ;;  %v3677_v50 = vadd.f32 %v10850_v37, %v3624_v47  ;;  %v4231_v28 = vld [vmem:[#allocation9 + $0x40] sm:$0xff] }
 0x22c   :  { %4189 = vmatpush2.bf16.msra.mxu1 %v10357_v42  ;;  %4137 = vmatprep.subr.bf16.mxu0 %v10362_v16  ;;  %v4267_v16 = vld [vmem:[#allocation9 + $0x280] sm:$0xff]  ;;  %v3726_v35 = vadd.f32 %v10873_v44, %v3673_v34 }
 0x22d   :  { %4190 = vmatprep.subr.bf16.mxu1 %v10365_v40  ;;  %v3730_v42 = vadd.f32 %v10881_v14, %v3677_v50  ;;  %v4271_v40 = vld [vmem:[#allocation9 + $0x2c0] sm:$0xff] }
 0x22e   :  { %v9134_v37 = vcombine.high %v4267_v16, %v4271_v40  ;;  %v4263_v14 = vld [vmem:[#allocation9 + $0x240] sm:$0xff] }
 0x22f   :  { %4138 = vmatpush2.bf16.msra.mxu0 %v10360_v33  ;;  %v3783_v11 = vadd.f32 %v10883_v60, %v3730_v42  ;;  %v4259_v33 = vld [vmem:[#allocation9 + $0x200] sm:$0xff] }
 0x230   :  { %4191 = vmatpush2.bf16.msra.mxu1 %v10363_v36  ;;  %4139 = vmatprep.subr.bf16.mxu0 %v10368_v43  ;;  %v3779_v36 = vadd.f32 %v10875_v27, %v3726_v35  ;;  %v4251_v44 = vld [vmem:[#allocation9 + $0x180] sm:$0xff] }
 0x231   :  { %4192 = vmatprep.subr.bf16.mxu1 %v10371_v12  ;;  %v4255_v12 = vld [vmem:[#allocation9 + $0x1c0] sm:$0xff] }
 0x232   :  { %v10921_v43 = vpack.c.bf16 %v3783_v11, %v3779_v36  ;;  %v4411_v60 = vld [vmem:[#allocation9 + $0xb80] sm:$0xff] }
 0x233   :  { %4140 = vmatpush2.bf16.msra.mxu0 %v10366_v26  ;;  %v4415_v27 = vld [vmem:[#allocation9 + $0xbc0] sm:$0xff] }
 0x234   :  { %4193 = vmatpush2.bf16.msra.mxu1 %v10369_v6  ;;  %4141 = vmatprep.subr.bf16.mxu0 %v10374_v25  ;;  %v9278_v26 = vcombine.high %v4411_v60, %v4415_v27  ;;  %v9277_v6 = vcombine.low %v4411_v60, %v4415_v27  ;;  %v9117_v25 = vcombine.low %v4251_v44, %v4255_v12  ;;  %v4391_v48 = vld [vmem:[#allocation9 + $0xa40] sm:$0xff] }
 0x235   :  { %4194 = vmatprep.subr.bf16.mxu1 %v10377_v23  ;;  %v9110_v23 = vcombine.high %v4243_v8, %v4247_v20  ;;  %v4347_v9 = vld [vmem:[#allocation9 + $0x780] sm:$0xff] }
 0x236   :  { %v4351_v4 = vld [vmem:[#allocation9 + $0x7c0] sm:$0xff] }
 0x237   :  { %4142 = vmatpush2.bf16.msra.mxu0 %v10372_v56  ;;  %v9214_v34 = vcombine.high %v4347_v9, %v4351_v4  ;;  %v4379_v42 = vld [vmem:[#allocation9 + $0x980] sm:$0xff]  ;;  %v9213_v11 = vcombine.low %v4347_v9, %v4351_v4 }
 0x238   :  { %4195 = vmatpush2.bf16.msra.mxu1 %v10375_v46  ;;  %4143 = vmatprep.subr.bf16.mxu0 %v10380_v31  ;;  %v9109_v46 = vcombine.low %v4243_v8, %v4247_v20  ;;  %v9102_v31 = vcombine.high %v4235_v7, %v4239_v24  ;;  %v4343_v35 = vld [vmem:[#allocation9 + $0x740] sm:$0xff] }
 0x239   :  { %4196 = vmatprep.subr.bf16.mxu1 %v10383_v32  ;;  %v4395_v32 = vld [vmem:[#allocation9 + $0xa80] sm:$0xff] }
 0x23a   :  { %v9261_v29 = vcombine.low %v4395_v32, %v4399_v45  ;;  %v9262_v47 = vcombine.high %v4395_v32, %v4399_v45  ;;  %v4375_v36 = vld [vmem:[#allocation9 + $0x940] sm:$0xff] }
 0x23b   :  { %4144 = vmatpush2.bf16.msra.mxu0 %v10378_v1  ;;  %v9101_v1 = vcombine.low %v4235_v7, %v4239_v24  ;;  %v4363_v60 = vld [vmem:[#allocation9 + $0x880] sm:$0xff] }
 0x23c   :  { %4197 = vmatpush2.bf16.msra.mxu1 %v10381_v58  ;;  %5805 = vmatprep.subr.bf16.mxu0 %v9150_v63  ;;  %v9094_v58 = vcombine.high %v4227_v62, %v4231_v28  ;;  %v4387_v63 = vld [vmem:[#allocation9 + $0xa00] sm:$0xff] }
 0x23d   :  { %5858 = vmatprep.subr.bf16.mxu1 %v9278_v26  ;;  %v9253_v50 = vcombine.low %v4387_v63, %v4391_v48  ;;  %v4367_v27 = vld [vmem:[#allocation9 + $0x8c0] sm:$0xff] }
 0x23e   :  { %4146 = vmatmul.mubr.bf16.vlgmr.msra.gmra.mxu0 %v10741_v22  ;;  %v9133_v22 = vcombine.low %v4267_v16, %v4271_v40  ;;  %v4383_v16 = vld [vmem:[#allocation9 + $0x9c0] sm:$0xff]  ;;  %v9229_v26 = vcombine.low %v4363_v60, %v4367_v27 }
 0x23f   :  { %4199 = vmatmul.mubr.bf16.vlgmr.msra.gmra.mxu1 %v10745_v52  ;;  %5806 = vmatpush1.bf16.msra.mxu0 %v9149_v3  ;;  %v9126_v52 = vcombine.high %v4259_v33, %v4263_v14  ;;  %v9254_v3 = vcombine.high %v4387_v63, %v4391_v48  ;;  %v4339_v40 = vld [vmem:[#allocation9 + $0x700] sm:$0xff] }
 0x240   :  { %4155 = vmatprep.mubr.bf16.mxu0 %v10751_v39  ;;  %5807 = vmatprep.subr.bf16.mxu0 %v9142_v53  ;;  %v9125_v39 = vcombine.low %v4259_v33, %v4263_v14  ;;  %v9093_v53 = vcombine.low %v4227_v62, %v4231_v28  ;;  %v9206_v33 = vcombine.high %v4339_v40, %v4343_v35  ;;  %v4371_v14 = vld [vmem:[#allocation9 + $0x900] sm:$0xff] }
 0x241   :  { %4208 = vmatprep.mubr.bf16.mxu1 %v10753_v59  ;;  %v9118_v59 = vcombine.high %v4251_v44, %v4255_v12  ;;  %5859 = vmatpush1.bf16.msra.mxu1 %v9277_v6  ;;  %v9237_v44 = vcombine.low %v4371_v14, %v4375_v36  ;;  %v9238_v12 = vcombine.high %v4371_v14, %v4375_v36  ;;  %v4323_v8 = vld [vmem:[#allocation9 + $0x600] sm:$0xff] }
 0x242   :  { %v4327_v20 = vld [vmem:[#allocation9 + $0x640] sm:$0xff]  ;;  %v9230_v6 = vcombine.high %v4363_v60, %v4367_v27  ;;  %v3792_v60 = vpop.f32.mrf.mxu1  ;;  %v3736_v27 = vadd.f32 %v10889_v57, %v10863_v19 }
 0x243   :  { %5808 = vmatpush1.bf16.msra.mxu0 %v9141_v41  ;;  %v9245_v41 = vcombine.low %v4379_v42, %v4383_v16  ;;  %v4359_v7 = vld [vmem:[#allocation9 + $0x840] sm:$0xff]  ;;  %v9189_v32 = vcombine.low %v4323_v8, %v4327_v20 }
 0x244   :  { %5809 = vmatprep.subr.bf16.mxu0 %v9134_v37  ;;  %v9246_v37 = vcombine.high %v4379_v42, %v4383_v16  ;;  %v4315_v24 = vld [vmem:[#allocation9 + $0x580] sm:$0xff] }
 0x245   :  { %v4307_v28 = vld [vmem:[#allocation9 + $0x500] sm:$0xff] }
 0x246   :  { %4156 = vmatmul.mubr.bf16.gmra.mxu0 %v10766_v0  ;;  %v4403_v0 = vld [vmem:[#allocation9 + $0xb00] sm:$0xff] }
 0x247   :  { %4209 = vmatmul.mubr.bf16.gmra.mxu1 %v10768_v2  ;;  %5810 = vmatpush1.bf16.msra.mxu0 %v9133_v22  ;;  %v4407_v2 = vld [vmem:[#allocation9 + $0xb40] sm:$0xff] }
 0x248   :  { %5837 = vmatprep.mubr.bf16.mxu0 %v10921_v43  ;;  %5811 = vmatprep.subr.bf16.mxu0 %v9126_v52  ;;  %v9270_v18 = vcombine.high %v4403_v0, %v4407_v2  ;;  %v9269_v56 = vcombine.low %v4403_v0, %v4407_v2  ;;  %v4331_v22 = vld [vmem:[#allocation9 + $0x680] sm:$0xff]  ;;  %v9190_v0 = vcombine.high %v4323_v8, %v4327_v20 }
 0x249   :  { %v4335_v52 = vld [vmem:[#allocation9 + $0x6c0] sm:$0xff] }
 0x24a   :  { %5860 = vmatprep.subr.bf16.mxu1 %v9270_v18  ;;  %v4355_v2 = vld [vmem:[#allocation9 + $0x800] sm:$0xff] }
 0x24b   :  { %5812 = vmatpush1.bf16.msra.mxu0 %v9125_v39  ;;  %5861 = vmatpush1.bf16.msra.mxu1 %v9269_v56  ;;  %v9205_v39 = vcombine.low %v4339_v40, %v4343_v35  ;;  %v4319_v18 = vld [vmem:[#allocation9 + $0x5c0] sm:$0xff]  ;;  %v9221_v56 = vcombine.low %v4355_v2, %v4359_v7 }
 0x24c   :  { %5813 = vmatprep.subr.bf16.mxu0 %v9118_v59  ;;  %5862 = vmatprep.subr.bf16.mxu1 %v9262_v47  ;;  %v9198_v59 = vcombine.high %v4331_v22, %v4335_v52  ;;  %v9182_v45 = vcombine.high %v4315_v24, %v4319_v18  ;;  %v4471_v48 = vld [vmem:[#allocation9 + $0xf40] sm:$0xff] }
 0x24d   :  { %v4299_v4 = vld [vmem:[#allocation9 + $0x480] sm:$0xff] }
 0x24e   :  { %v4459_v16 = vld [vmem:[#allocation9 + $0xe80] sm:$0xff] }
 0x24f   :  { %5814 = vmatpush1.bf16.msra.mxu0 %v9117_v25  ;;  %5863 = vmatpush1.bf16.msra.mxu1 %v9261_v29  ;;  %v3422_v25 = vadd.f32 %v10797_v10, %v10786_v55  ;;  %v4475_v55 = vld [vmem:[#allocation9 + $0xf80] sm:$0xff] }
 0x250   :  { %5815 = vmatprep.subr.bf16.mxu0 %v9110_v23  ;;  %5864 = vmatprep.subr.bf16.mxu1 %v9254_v3  ;;  %v9197_v23 = vcombine.low %v4331_v22, %v4335_v52  ;;  %v4479_v10 = vld [vmem:[#allocation9 + $0xfc0] sm:$0xff] }
 0x251   :  { %v4311_v29 = vld [vmem:[#allocation9 + $0x540] sm:$0xff]  ;;  %v9341_v47 = vcombine.low %v4475_v55, %v4479_v10 }
 0x252   :  { %v9174_v63 = vcombine.high %v4307_v28, %v4311_v29  ;;  %v4463_v40 = vld [vmem:[#allocation9 + $0xec0] sm:$0xff] }
 0x253   :  { %5816 = vmatpush1.bf16.msra.mxu0 %v9109_v46  ;;  %5865 = vmatpush1.bf16.msra.mxu1 %v9253_v50  ;;  %v9222_v46 = vcombine.high %v4355_v2, %v4359_v7  ;;  %v4303_v50 = vld [vmem:[#allocation9 + $0x4c0] sm:$0xff]  ;;  %v3789_v7 = vadd.f32 %v10891_v30, %v3736_v27  ;;  %v4340_v27 = vld [vmem:[#allocation9 + $0x708] sm:$0xff] }
 0x254   :  { %5817 = vmatprep.subr.bf16.mxu0 %v9102_v31  ;;  %5866 = vmatprep.subr.bf16.mxu1 %v9246_v37  ;;  %v3475_v31 = vadd.f32 %v10799_v15, %v3422_v25  ;;  %v4467_v15 = vld [vmem:[#allocation9 + $0xf00] sm:$0xff]  ;;  %v9166_v42 = vcombine.high %v4299_v4, %v4303_v50  ;;  %v9325_v37 = vcombine.low %v4459_v16, %v4463_v40  ;;  %v4276_v25 = vld [vmem:[#allocation9 + $0x308] sm:$0xff] }
 0x255   :  { %v9333_v3 = vcombine.low %v4467_v15, %v4471_v48  ;;  %v4291_v35 = vld [vmem:[#allocation9 + $0x400] sm:$0xff]  ;;  %v9165_v14 = vcombine.low %v4299_v4, %v4303_v50  ;;  %v4256_v4 = vld [vmem:[#allocation9 + $0x1c8] sm:$0xff] }
 0x256   :  { %v3528_v62 = vadd.f32 %v10832_v49, %v3475_v31  ;;  %v4451_v36 = vld [vmem:[#allocation9 + $0xe00] sm:$0xff]  ;;  %v4272_v31 = vld [vmem:[#allocation9 + $0x2c8] sm:$0xff] }
 0x257   :  { %5818 = vmatpush1.bf16.msra.mxu0 %v9101_v1  ;;  %5867 = vmatpush1.bf16.msra.mxu1 %v9245_v41  ;;  %v9342_v1 = vcombine.high %v4475_v55, %v4479_v10  ;;  %v4295_v41 = vld [vmem:[#allocation9 + $0x440] sm:$0xff] }
 0x258   :  { %5819 = vmatprep.subr.bf16.mxu0 %v9094_v58  ;;  %5868 = vmatprep.subr.bf16.mxu1 %v9238_v12  ;;  %v9181_v58 = vcombine.low %v4315_v24, %v4319_v18  ;;  %v3581_v9 = vadd.f32 %v10834_v51, %v3528_v62  ;;  %v4455_v22 = vld [vmem:[#allocation9 + $0xe40] sm:$0xff]  ;;  %v4288_v12 = vld [vmem:[#allocation9 + $0x3c8] sm:$0xff]  ;;  %v9157_v8 = vcombine.low %v4291_v35, %v4295_v41 }
 0x259   :  { %v4443_v20 = vld [vmem:[#allocation9 + $0xd80] sm:$0xff] }
 0x25a   :  { %v3634_v49 = vadd.f32 %v10867_v54, %v3581_v9  ;;  %v9158_v54 = vcombine.high %v4291_v35, %v4295_v41  ;;  %v4435_v57 = vld [vmem:[#allocation9 + $0xd00] sm:$0xff]  ;;  %v4252_v9 = vld [vmem:[#allocation9 + $0x188] sm:$0xff] }
 0x25b   :  { %5820 = vmatpush1.bf16.msra.mxu0 %v9093_v53  ;;  %5869 = vmatpush1.bf16.msra.mxu1 %v9237_v44  ;;  %v9334_v53 = vcombine.high %v4467_v15, %v4471_v48  ;;  %v4284_v44 = vld [vmem:[#allocation9 + $0x388] sm:$0xff]  ;;  %v4439_v18 = vld [vmem:[#allocation9 + $0xd40] sm:$0xff] }
 0x25c   :  { %5821 = vmatprep.subr.bf16.mxu0 %v9214_v34  ;;  %5870 = vmatprep.subr.bf16.mxu1 %v9230_v6  ;;  %v9173_v34 = vcombine.low %v4307_v28, %v4311_v29  ;;  %v3687_v51 = vadd.f32 %v10869_v38, %v3634_v49  ;;  %v9152_v38 = vcombine.high %v4284_v44, %v4288_v12  ;;  %v4427_v10 = vld [vmem:[#allocation9 + $0xc80] sm:$0xff]  ;;  %v4260_v28 = vld [vmem:[#allocation9 + $0x208] sm:$0xff] }
 0x25d   :  { %v9151_v24 = vcombine.low %v4284_v44, %v4288_v12  ;;  %v4431_v62 = vld [vmem:[#allocation9 + $0xcc0] sm:$0xff]  ;;  %v4264_v29 = vld [vmem:[#allocation9 + $0x248] sm:$0xff]  ;;  %v9120_v49 = vcombine.high %v4252_v9, %v4256_v4 }
 0x25e   :  { %v4419_v15 = vld [vmem:[#allocation9 + $0xc00] sm:$0xff]  ;;  %v4348_v12 = vld [vmem:[#allocation9 + $0x788] sm:$0xff] }
 0x25f   :  { %5822 = vmatpush2.bf16.msra.mxu0 %v9213_v11  ;;  %5871 = vmatpush1.bf16.msra.mxu1 %v9229_v26  ;;  %v9326_v11 = vcombine.high %v4459_v16, %v4463_v40  ;;  %v4447_v26 = vld [vmem:[#allocation9 + $0xdc0] sm:$0xff]  ;;  %v4244_v16 = vld [vmem:[#allocation9 + $0x108] sm:$0xff] }
 0x260   :  { %5823 = vmatprep.subr.bf16.mxu0 %v9206_v33  ;;  %5872 = vmatprep.subr.bf16.mxu1 %v9222_v46  ;;  %v3739_v33 = vpop.f32.mrf.mxu0  ;;  %v9310_v2 = vcombine.high %v4443_v20, %v4447_v26  ;;  %v4268_v46 = vld [vmem:[#allocation9 + $0x288] sm:$0xff]  ;;  %v4423_v48 = vld [vmem:[#allocation9 + $0xc40] sm:$0xff] }
 0x261   :  { %v3740_v52 = vadd.f32 %v3739_v33, %v3687_v51  ;;  %v9136_v55 = vcombine.high %v4268_v46, %v4272_v31  ;;  %v9286_v50 = vcombine.high %v4419_v15, %v4423_v48  ;;  %v4248_v40 = vld [vmem:[#allocation9 + $0x148] sm:$0xff] }
 0x262   :  { %v4236_v33 = vld [vmem:[#allocation9 + $0x88] sm:$0xff] }
 0x263   :  { %5824 = vmatpush2.bf16.msra.mxu0 %v9205_v39  ;;  %5873 = vmatpush1.bf16.msra.mxu1 %v9221_v56  ;;  %v9317_v39 = vcombine.low %v4451_v36, %v4455_v22  ;;  %v3793_v6 = vadd.f32 %v3792_v60, %v3740_v52  ;;  %v4240_v51 = vld [vmem:[#allocation9 + $0xc8] sm:$0xff] }
 0x264   :  { %5825 = vmatprep.subr.bf16.mxu0 %v9198_v59  ;;  %5874 = vmatprep.subr.bf16.mxu1 %v9342_v1  ;;  %v9318_v59 = vcombine.high %v4451_v36, %v4455_v22  ;;  %v9293_v1 = vcombine.low %v4427_v10, %v4431_v62  ;;  %v4228_v36 = vld [vmem:[#allocation9 + $0x8] sm:$0xff]  ;;  %v9103_v52 = vcombine.low %v4236_v33, %v4240_v51 }
 0x265   :  { %v10936_v56 = vpack.c.bf16 %v3793_v6, %v3789_v7  ;;  %v4232_v22 = vld [vmem:[#allocation9 + $0x48] sm:$0xff] }
 0x266   :  { %v9096_v44 = vcombine.high %v4228_v36, %v4232_v22  ;;  %v4336_v6 = vld [vmem:[#allocation9 + $0x6c8] sm:$0xff] }
 0x267   :  { %5826 = vmatpush2.bf16.msra.mxu0 %v9197_v23  ;;  %5875 = vmatpush2.bf16.msra.mxu1 %v9341_v47  ;;  %v4280_v23 = vld [vmem:[#allocation9 + $0x348] sm:$0xff]  ;;  %v9294_v47 = vcombine.high %v4427_v10, %v4431_v62 }
 0x268   :  { %5827 = vmatprep.subr.bf16.mxu0 %v9190_v0  ;;  %5876 = vmatprep.subr.bf16.mxu1 %v9334_v53  ;;  %v9309_v0 = vcombine.low %v4443_v20, %v4447_v26  ;;  %v9144_v19 = vcombine.high %v4276_v25, %v4280_v23  ;;  %v9143_v30 = vcombine.low %v4276_v25, %v4280_v23  ;;  %v4332_v26 = vld [vmem:[#allocation9 + $0x688] sm:$0xff] }
 0x269   :  { %v9127_v53 = vcombine.low %v4260_v28, %v4264_v29  ;;  %v9200_v23 = vcombine.high %v4332_v26, %v4336_v6  ;;  %v9199_v7 = vcombine.low %v4332_v26, %v4336_v6 }
 0x26b   :  { %5828 = vmatpush2.bf16.msra.mxu0 %v9189_v32  ;;  %5877 = vmatpush2.bf16.msra.mxu1 %v9333_v3  ;;  %v9302_v32 = vcombine.high %v4435_v57, %v4439_v18  ;;  %v9285_v3 = vcombine.low %v4419_v15, %v4423_v48  ;;  %v4292_v15 = vld [vmem:[#allocation9 + $0x408] sm:$0xff] }
 0x26c   :  { %5829 = vmatprep.subr.bf16.mxu0 %v9182_v45  ;;  %5878 = vmatprep.subr.bf16.mxu1 %v9326_v11  ;;  %v9301_v45 = vcombine.low %v4435_v57, %v4439_v18  ;;  %v9112_v11 = vcombine.high %v4244_v16, %v4248_v40  ;;  %v4320_v57 = vld [vmem:[#allocation9 + $0x5c8] sm:$0xff]  ;;  %v10950_v18 = vpop.f32.mrf.mxu0 }
 0x26d   :  { %v4296_v48 = vld [vmem:[#allocation9 + $0x448] sm:$0xff] }
 0x26f   :  { %5830 = vmatpush2.bf16.msra.mxu0 %v9181_v58  ;;  %5879 = vmatpush2.bf16.msra.mxu1 %v9325_v37  ;;  %v9135_v58 = vcombine.low %v4268_v46, %v4272_v31  ;;  %v9119_v37 = vcombine.low %v4252_v9, %v4256_v4 }
 0x270   :  { %5831 = vmatprep.subr.bf16.mxu0 %v9174_v63  ;;  %5880 = vmatprep.subr.bf16.mxu1 %v9318_v59  ;;  %v9128_v63 = vcombine.high %v4260_v28, %v4264_v29  ;;  %v9095_v59 = vcombine.low %v4228_v36, %v4232_v22  ;;  %v4300_v28 = vld [vmem:[#allocation9 + $0x488] sm:$0xff] }
 0x271   :  { %v4304_v29 = vld [vmem:[#allocation9 + $0x4c8] sm:$0xff] }
 0x273   :  { %5832 = vmatpush2.bf16.msra.mxu0 %v9173_v34  ;;  %5881 = vmatpush2.bf16.msra.mxu1 %v9317_v39  ;;  %v10942_v34 = vld [vmem:[#allocation9 + $0xb88] sm:$0xff] }
 0x274   :  { %5833 = vmatprep.subr.bf16.mxu0 %v9166_v42  ;;  %5882 = vmatprep.subr.bf16.mxu1 %v9310_v2  ;;  %11619 = vst [vmem:[#allocation20_spill] sm:$0xff] %v10942_v34  ;;  %v10944_v42 = vld [vmem:[#allocation9 + $0xbc8] sm:$0xff] }
 0x275   :  { %11620 = vst [vmem:[#allocation21_spill] sm:$0xff] %v10944_v42  ;;  %v9280_v35 = vcombine.high %v10942_v34, %v10944_v42  ;;  %v4352_v39 = vld [vmem:[#allocation9 + $0x7c8] sm:$0xff]  ;;  %v4286_v34 = vld [vmem:[#allocation9 + $0x398] sm:$0xff] }
 0x276   :  { %v9216_v60 = vcombine.high %v4348_v12, %v4352_v39  ;;  %v4328_v2 = vld [vmem:[#allocation9 + $0x648] sm:$0xff] }
 0x277   :  { %5834 = vmatpush2.bf16.msra.mxu0 %v9165_v14  ;;  %5883 = vmatpush2.bf16.msra.mxu1 %v9309_v0  ;;  %v9111_v14 = vcombine.low %v4244_v16, %v4248_v40  ;;  %v4324_v0 = vld [vmem:[#allocation9 + $0x608] sm:$0xff]  ;;  %v4289_v16 = vld [vmem:[#allocation9 + $0x3d0] sm:$0xff] }
 0x278   :  { %5835 = vmatprep.subr.bf16.mxu0 %v9158_v54  ;;  %5884 = vmatprep.subr.bf16.mxu1 %v9302_v32  ;;  %v9104_v54 = vcombine.high %v4236_v33, %v4240_v51  ;;  %v9191_v46 = vcombine.low %v4324_v0, %v4328_v2  ;;  %v4308_v32 = vld [vmem:[#allocation9 + $0x508] sm:$0xff]  ;;  %v4277_v51 = vld [vmem:[#allocation9 + $0x310] sm:$0xff] }
 0x27b   :  { %5836 = vmatpush2.bf16.msra.mxu0 %v9157_v8  ;;  %5885 = vmatpush2.bf16.msra.mxu1 %v9301_v45  ;;  %v4344_v8 = vld [vmem:[#allocation9 + $0x748] sm:$0xff] }
 0x27c   :  { %5911 = vmatprep.subr.bf16.mxu0 %v9152_v38  ;;  %5886 = vmatprep.subr.bf16.mxu1 %v9294_v47  ;;  %v9215_v38 = vcombine.low %v4348_v12, %v4352_v39  ;;  %v9208_v20 = vcombine.high %v4340_v27, %v4344_v8  ;;  %v9207_v25 = vcombine.low %v4340_v27, %v4344_v8  ;;  %v4312_v45 = vld [vmem:[#allocation9 + $0x548] sm:$0xff]  ;;  %v4273_v12 = vld [vmem:[#allocation9 + $0x2d0] sm:$0xff] }
 0x27d   :  { %v9176_v62 = vcombine.high %v4308_v32, %v4312_v45  ;;  %v4261_v8 = vld [vmem:[#allocation9 + $0x210] sm:$0xff] }
 0x27e   :  { %5838 = vmatmul.mubr.bf16.vlgmr.msra.gmra.mxu0 %v10887_v61 }
 0x27f   :  { %5847 = vmatprep.mubr.bf16.mxu0 %v10936_v56  ;;  %5912 = vmatpush1.bf16.msra.mxu0 %v9151_v24  ;;  %v9192_v24 = vcombine.high %v4324_v0, %v4328_v2  ;;  %v4257_v0 = vld [vmem:[#allocation9 + $0x1d0] sm:$0xff] }
 0x280   :  { %5913 = vmatprep.subr.bf16.mxu0 %v9144_v19  ;;  %5887 = vmatpush2.bf16.msra.mxu1 %v9293_v1  ;;  %v4316_v19 = vld [vmem:[#allocation9 + $0x588] sm:$0xff] }
 0x281   :  { %5888 = vmatprep.subr.bf16.mxu1 %v9286_v50  ;;  %v9184_v31 = vcombine.high %v4316_v19, %v4320_v57  ;;  %v9183_v10 = vcombine.low %v4316_v19, %v4320_v57  ;;  %v9167_v50 = vcombine.low %v4300_v28, %v4304_v29  ;;  %v4245_v57 = vld [vmem:[#allocation9 + $0x110] sm:$0xff] }
 0x283   :  { %5914 = vmatpush1.bf16.msra.mxu0 %v9143_v30  ;;  %v10952_v30 = vpop.f32.mrf.mxu1 }
 0x284   :  { %5915 = vmatprep.subr.bf16.mxu0 %v9136_v55  ;;  %5889 = vmatpush2.bf16.msra.mxu1 %v9285_v3  ;;  %v10954_v55 = vpop.f32.mrf.mxu0 }
 0x285   :  { %5964 = vmatprep.subr.bf16.mxu1 %v9280_v35  ;;  %v10956_v47 = vpop.f32.mrf.mxu1  ;;  %v9159_v35 = vcombine.low %v4292_v15, %v4296_v48 }
 0x286   :  { %5848 = vmatmul.mubr.bf16.gmra.mxu0 %v10897_v17  ;;  %v10958_v1 = vpop.f32.mrf.mxu0 }
 0x287   :  { %5916 = vmatpush1.bf16.msra.mxu0 %v9135_v58  ;;  %5943 = vmatprep.mubr.bf16.mxu0 %v10921_v43  ;;  %v9175_v58 = vcombine.low %v4308_v32, %v4312_v45  ;;  %v10960_v9 = vpop.f32.mrf.mxu1 }
 0x288   :  { %5917 = vmatprep.subr.bf16.mxu0 %v9128_v63  ;;  %v9168_v63 = vcombine.high %v4300_v28, %v4304_v29  ;;  %v10962_v4 = vpop.f32.mrf.mxu0  ;;  %v4241_v28 = vld [vmem:[#allocation9 + $0xd0] sm:$0xff] }
 0x289   :  { %v10966_v40 = vpop.f32.mrf.mxu1 }
 0x28a   :  { %v10964_v3 = vpop.f32.mrf.mxu0 }
 0x28b   :  { %5918 = vmatpush1.bf16.msra.mxu0 %v9127_v53  ;;  %v9160_v53 = vcombine.high %v4292_v15, %v4296_v48  ;;  %v4229_v48 = vld [vmem:[#allocation9 + $0x10] sm:$0xff] }
 0x28c   :  { %5919 = vmatprep.subr.bf16.mxu0 %v9120_v49  ;;  %v4285_v49 = vld [vmem:[#allocation9 + $0x390] sm:$0xff] }
 0x28d   :  { %v9154_v33 = vcombine.high %v4285_v49, %v4289_v16 }
 0x28f   :  { %5920 = vmatpush1.bf16.msra.mxu0 %v9119_v37  ;;  %v10968_v37 = vpop.f32.mrf.mxu0 }
 0x290   :  { %5921 = vmatprep.subr.bf16.mxu0 %v9112_v11  ;;  %v10970_v11 = vpop.f32.mrf.mxu1 }
 0x291   :  { %v10972_v36 = vpop.f32.mrf.mxu0 }
 0x292   :  { %v10974_v22 = vpop.f32.mrf.mxu1 }
 0x293   :  { %5922 = vmatpush1.bf16.msra.mxu0 %v9111_v14  ;;  %v4281_v14 = vld [vmem:[#allocation9 + $0x350] sm:$0xff] }
 0x294   :  { %5923 = vmatprep.subr.bf16.mxu0 %v9104_v54  ;;  %v9153_v54 = vcombine.low %v4285_v49, %v4289_v16  ;;  %v9145_v39 = vcombine.low %v4277_v51, %v4281_v14 }
 0x297   :  { %5924 = vmatpush1.bf16.msra.mxu0 %v9103_v52  ;;  %v9146_v52 = vcombine.high %v4277_v51, %v4281_v14  ;;  %v4349_v51 = vld [vmem:[#allocation9 + $0x790] sm:$0xff] }
 0x298   :  { %5925 = vmatprep.subr.bf16.mxu0 %v9096_v44  ;;  %v4269_v44 = vld [vmem:[#allocation9 + $0x290] sm:$0xff] }
 0x299   :  { %v9138_v27 = vcombine.high %v4269_v44, %v4273_v12  ;;  %v9137_v26 = vcombine.low %v4269_v44, %v4273_v12  ;;  %v4353_v14 = vld [vmem:[#allocation9 + $0x7d0] sm:$0xff] }
 0x29a   :  { %v9218_v12 = vcombine.high %v4349_v51, %v4353_v14 }
 0x29b   :  { %5926 = vmatpush1.bf16.msra.mxu0 %v9095_v59  ;;  %v10978_v59 = vpop.f32.mrf.mxu0 }
 0x29c   :  { %5927 = vmatprep.subr.bf16.mxu0 %v9216_v60  ;;  %v10980_v60 = vpop.f32.mrf.mxu1 }
 0x29e   :  { %v10984_v6 = vpop.f32.mrf.mxu1 }
 0x29f   :  { %5928 = vmatpush2.bf16.msra.mxu0 %v9215_v38  ;;  %v4265_v38 = vld [vmem:[#allocation9 + $0x250] sm:$0xff] }
 0x2a0   :  { %5929 = vmatprep.subr.bf16.mxu0 %v9208_v20  ;;  %v10982_v20 = vpop.f32.mrf.mxu0  ;;  %v10986_v2 = vpop.f32.mrf.mxu1 }
 0x2a3   :  { %5930 = vmatpush2.bf16.msra.mxu0 %v9207_v25  ;;  %v9130_v25 = vcombine.high %v4261_v8, %v4265_v38 }
 0x2a4   :  { %5931 = vmatprep.subr.bf16.mxu0 %v9200_v23  ;;  %v4253_v23 = vld [vmem:[#allocation9 + $0x190] sm:$0xff] }
 0x2a5   :  { %v9122_v19 = vcombine.high %v4253_v23, %v4257_v0  ;;  %v9121_v45 = vcombine.low %v4253_v23, %v4257_v0  ;;  %v4333_v23 = vld [vmem:[#allocation9 + $0x690] sm:$0xff] }
 0x2a6   :  { %v4337_v0 = vld [vmem:[#allocation9 + $0x6d0] sm:$0xff] }
 0x2a7   :  { %5932 = vmatpush2.bf16.msra.mxu0 %v9199_v7  ;;  %v10988_v7 = vpop.f32.mrf.mxu0 }
 0x2a8   :  { %5933 = vmatprep.subr.bf16.mxu0 %v9192_v24  ;;  %v9129_v24 = vcombine.low %v4261_v8, %v4265_v38  ;;  %v9217_v38 = vcombine.low %v4349_v51, %v4353_v14 }
 0x2a9   :  { %v10994_v32 = vpop.f32.mrf.mxu0 }
 0x2ab   :  { %5934 = vmatpush2.bf16.msra.mxu0 %v9191_v46  ;;  %v4249_v46 = vld [vmem:[#allocation9 + $0x150] sm:$0xff] }
 0x2ac   :  { %5935 = vmatprep.subr.bf16.mxu0 %v9184_v31  ;;  %v10992_v31 = vpop.f32.mrf.mxu1 }
 0x2ae   :  { %v10996_v29 = vpop.f32.mrf.mxu1 }
 0x2af   :  { %5936 = vmatpush2.bf16.msra.mxu0 %v9183_v10  ;;  %v9114_v10 = vcombine.high %v4245_v57, %v4249_v46 }
 0x2b0   :  { %5937 = vmatprep.subr.bf16.mxu0 %v9176_v62  ;;  %v4237_v62 = vld [vmem:[#allocation9 + $0x90] sm:$0xff] }
 0x2b1   :  { %v9106_v15 = vcombine.high %v4237_v62, %v4241_v28  ;;  %v9105_v16 = vcombine.low %v4237_v62, %v4241_v28  ;;  %v4329_v62 = vld [vmem:[#allocation9 + $0x650] sm:$0xff] }
 0x2b3   :  { %5938 = vmatpush2.bf16.msra.mxu0 %v9175_v58  ;;  %v10998_v58 = vpop.f32.mrf.mxu0 }
 0x2b4   :  { %5939 = vmatprep.subr.bf16.mxu0 %v9168_v63  ;;  %v9113_v63 = vcombine.low %v4245_v57, %v4249_v46 }
 0x2b5   :  { %v11002_v49 = vpop.f32.mrf.mxu0 }
 0x2b7   :  { %5940 = vmatpush2.bf16.msra.mxu0 %v9167_v50  ;;  %v4233_v50 = vld [vmem:[#allocation9 + $0x50] sm:$0xff] }
 0x2b8   :  { %5941 = vmatprep.subr.bf16.mxu0 %v9160_v53  ;;  %v11000_v53 = vpop.f32.mrf.mxu1 }
 0x2bb   :  { %5942 = vmatpush2.bf16.msra.mxu0 %v9159_v35  ;;  %v11004_v35 = vpop.f32.mrf.mxu1 }
 0x2bc   :  { %6017 = vmatprep.subr.bf16.mxu0 %v9154_v33  ;;  %v9098_v33 = vcombine.high %v4229_v48, %v4233_v50 }
 0x2bd   :  { %v11008_v44 = vpop.f32.mrf.mxu1 }
 0x2be   :  { %5944 = vmatmul.mubr.bf16.vlgmr.msra.gmra.mxu0 %v10887_v61 }
 0x2bf   :  { %5953 = vmatprep.mubr.bf16.mxu0 %v10936_v56  ;;  %6018 = vmatpush1.bf16.msra.mxu0 %v9153_v54  ;;  %v11006_v54 = vpop.f32.mrf.mxu0 }
 0x2c0   :  { %6019 = vmatprep.subr.bf16.mxu0 %v9146_v52  ;;  %v9097_v52 = vcombine.low %v4229_v48, %v4233_v50  ;;  %v4317_v50 = vld [vmem:[#allocation9 + $0x590] sm:$0xff] }
 0x2c1   :  { %v11010_v8 = vpop.f32.mrf.mxu0 }
 0x2c3   :  { %6020 = vmatpush1.bf16.msra.mxu0 %v9145_v39  ;;  %v4341_v39 = vld [vmem:[#allocation9 + $0x710] sm:$0xff] }
 0x2c4   :  { %6021 = vmatprep.subr.bf16.mxu0 %v9138_v27  ;;  %v4345_v27 = vld [vmem:[#allocation9 + $0x750] sm:$0xff] }
 0x2c6   :  { %5954 = vmatmul.mubr.bf16.gmra.mxu0 %v10897_v17 }
 0x2c7   :  { %6022 = vmatpush1.bf16.msra.mxu0 %v9137_v26  ;;  %6049 = vmatprep.mubr.bf16.mxu0 %v10921_v43  ;;  %v11012_v26 = vpop.f32.mrf.mxu1 }
 0x2c8   :  { %6023 = vmatprep.subr.bf16.mxu0 %v9130_v25  ;;  %v9210_v25 = vcombine.high %v4341_v39, %v4345_v27 }
 0x2c9   :  { %v11016_v57 = vpop.f32.mrf.mxu1 }
 0x2cb   :  { %6024 = vmatpush1.bf16.msra.mxu0 %v9129_v24  ;;  %v11014_v24 = vpop.f32.mrf.mxu0  ;;  %v11020_v28 = vpop.f32.mrf.mxu1 }
 0x2cc   :  { %6025 = vmatprep.subr.bf16.mxu0 %v9122_v19  ;;  %v9209_v19 = vcombine.low %v4341_v39, %v4345_v27  ;;  %v4309_v39 = vld [vmem:[#allocation9 + $0x510] sm:$0xff] }
 0x2cd   :  { %v11018_v46 = vpop.f32.mrf.mxu0  ;;  %v4313_v27 = vld [vmem:[#allocation9 + $0x550] sm:$0xff] }
 0x2cf   :  { %6026 = vmatpush1.bf16.msra.mxu0 %v9121_v45  ;;  %v9202_v45 = vcombine.high %v4333_v23, %v4337_v0 }
 0x2d0   :  { %6027 = vmatprep.subr.bf16.mxu0 %v9114_v10  ;;  %v4325_v10 = vld [vmem:[#allocation9 + $0x610] sm:$0xff] }
 0x2d1   :  { %v9194_v48 = vcombine.high %v4325_v10, %v4329_v62  ;;  %v9193_v51 = vcombine.low %v4325_v10, %v4329_v62  ;;  %v4301_v62 = vld [vmem:[#allocation9 + $0x490] sm:$0xff] }
 0x2d3   :  { %6028 = vmatpush1.bf16.msra.mxu0 %v9113_v63  ;;  %v9201_v63 = vcombine.low %v4333_v23, %v4337_v0 }
 0x2d4   :  { %6029 = vmatprep.subr.bf16.mxu0 %v9106_v15  ;;  %v11022_v15 = vpop.f32.mrf.mxu0 }
 0x2d6   :  { %v11026_v14 = vpop.f32.mrf.mxu0 }
 0x2d7   :  { %6030 = vmatpush1.bf16.msra.mxu0 %v9105_v16  ;;  %v4321_v16 = vld [vmem:[#allocation9 + $0x5d0] sm:$0xff] }
 0x2d8   :  { %6031 = vmatprep.subr.bf16.mxu0 %v9098_v33  ;;  %v11024_v33 = vpop.f32.mrf.mxu1  ;;  %v9185_v23 = vcombine.low %v4317_v50, %v4321_v16  ;;  %v11036_v0 = vpop.f32.mrf.mxu0 }
 0x2da   :  { %v11042_v21 = vpop.f32.mrf.mxu0 }
 0x2db   :  { %6032 = vmatpush1.bf16.msra.mxu0 %v9097_v52  ;;  %v9186_v52 = vcombine.high %v4317_v50, %v4321_v16 }
 0x2dc   :  { %6033 = vmatprep.subr.bf16.mxu0 %v9218_v12  ;;  %v11029_v12 = vsub.s32 3, %v10732_v5 }
 0x2de   :  { %11621 = vst [vmem:[#allocation22_spill] sm:$0xff] %v11029_v12 }
 0x2df   :  { %6034 = vmatpush2.bf16.msra.mxu0 %v9217_v38  ;;  %v11032_v38 = vsub.s32 2, %v10732_v5  ;;  %v9177_v5 = vcombine.low %v4309_v39, %v4313_v27 }
 0x2e0   :  { %6035 = vmatprep.subr.bf16.mxu0 %v9210_v25  ;;  %v11034_v25 = vpop.f32.mrf.mxu1 }
 0x2e1   :  { %11622 = vst [vmem:[#allocation23_spill] sm:$0xff] %v11032_v38 }
 0x2e2   :  { %v11040_v41 = vpop.f32.mrf.mxu1 }
 0x2e3   :  { %6036 = vmatpush2.bf16.msra.mxu0 %v9209_v19  ;;  %v9178_v19 = vcombine.high %v4309_v39, %v4313_v27 }
 0x2e4   :  { %6037 = vmatprep.subr.bf16.mxu0 %v9202_v45  ;;  %v10424_v45 = vld [vmem:[#allocation8] sm:$0xf]  ;;  %v11044_v13 = vpop.f32.mrf.mxu1 }
 0x2e5   :  { %v646_v10 = vrot.slane %v10424_v45, %v11029_v12  ;;  %11623 = vst [vmem:[#allocation24_spill] sm:$0xff] %v11044_v13  ;;  %v4297_v12 = vld [vmem:[#allocation9 + $0x450] sm:$0xff] }
 0x2e6   :  { %v11052_v39 = vpop.f32.mrf.mxu1 }
 0x2e7   :  { %6038 = vmatpush2.bf16.msra.mxu0 %v9201_v63  ;;  %v4305_v63 = vld [vmem:[#allocation9 + $0x4d0] sm:$0xff]  ;;  %v3832_v16 = vadd.f32 %v10954_v55, %v646_v10  ;;  %11624 = vst [vmem:[#allocation25_spill] sm:$0xff] %v11052_v39 }
 0x2e8   :  { %6039 = vmatprep.subr.bf16.mxu0 %v9194_v48  ;;  %v642_v48 = vrot.slane %v10424_v45, %v11032_v38  ;;  %v9170_v50 = vcombine.high %v4301_v62, %v4305_v63  ;;  %v3836_v45 = vadd.f32 %v10962_v4, %v646_v10  ;;  %v9169_v38 = vcombine.low %v4301_v62, %v4305_v63 }
 0x2e9   :  { %v3842_v63 = vadd.f32 %v10968_v37, %v646_v10 }
 0x2ea   :  { %v3830_v42 = vadd.f32 %v10950_v18, %v642_v48  ;;  %v3889_v18 = vadd.f32 %v10966_v40, %v3836_v45  ;;  %v4278_v40 = vld [vmem:[#allocation9 + $0x318] sm:$0xff] }
 0x2eb   :  { %6040 = vmatpush2.bf16.msra.mxu0 %v9193_v51  ;;  %v3834_v51 = vadd.f32 %v10958_v1, %v642_v48  ;;  %v4290_v1 = vld [vmem:[#allocation9 + $0x3d8] sm:$0xff] }
 0x2ec   :  { %6041 = vmatprep.subr.bf16.mxu0 %v9186_v52  ;;  %v4293_v52 = vld [vmem:[#allocation9 + $0x410] sm:$0xff]  ;;  %v3883_v13 = vadd.f32 %v10952_v30, %v3830_v42  ;;  %v3844_v42 = vadd.f32 %v10972_v36, %v642_v48  ;;  %v3942_v30 = vadd.f32 %v10998_v58, %v3889_v18 }
 0x2ed   :  { %v9162_v27 = vcombine.high %v4293_v52, %v4297_v12  ;;  %v3887_v55 = vadd.f32 %v10960_v9, %v3834_v51  ;;  %v9161_v62 = vcombine.low %v4293_v52, %v4297_v12  ;;  %v9156_v9 = vcombine.high %v4286_v34, %v4290_v1 }
 0x2ee   :  { %v3846_v12 = vadd.f32 %v10978_v59, %v646_v10  ;;  %v3897_v52 = vadd.f32 %v10980_v60, %v3844_v42  ;;  %v4274_v10 = vld [vmem:[#allocation9 + $0x2d8] sm:$0xff] }
 0x2ef   :  { %6042 = vmatpush2.bf16.msra.mxu0 %v9185_v23  ;;  %v11050_v23 = vpop.f32.mrf.mxu0 }
 0x2f0   :  { %6043 = vmatprep.subr.bf16.mxu0 %v9178_v19  ;;  %v3885_v19 = vadd.f32 %v10956_v47, %v3832_v16  ;;  %v11064_v47 = vpop.f32.mrf.mxu1  ;;  %v3950_v60 = vadd.f32 %v11010_v8, %v3897_v52  ;;  %v4266_v8 = vld [vmem:[#allocation9 + $0x258] sm:$0xff] }
 0x2f1   :  { %v11062_v39 = vpop.f32.mrf.mxu0 }
 0x2f2   :  { %v3938_v4 = vadd.f32 %v10988_v7, %v3885_v19  ;;  %v4282_v7 = vld [vmem:[#allocation9 + $0x358] sm:$0xff]  ;;  %v11074_v36 = vpop.f32.mrf.mxu1 }
 0x2f3   :  { %6044 = vmatpush2.bf16.msra.mxu0 %v9177_v5  ;;  %v3940_v5 = vadd.f32 %v10994_v32, %v3887_v55  ;;  %v3840_v32 = vadd.f32 %v10964_v3, %v642_v48  ;;  %v4057_v51 = vpop.f32.mrf.mxu0  ;;  %v9148_v58 = vcombine.high %v4278_v40, %v4282_v7  ;;  %v3995_v3 = vadd.f32 %v11000_v53, %v3942_v30 }
 0x2f4   :  { %6045 = vmatprep.subr.bf16.mxu0 %v9170_v50  ;;  %v3936_v50 = vadd.f32 %v10982_v20, %v3883_v13  ;;  %v3991_v37 = vadd.f32 %v10992_v31, %v3938_v4  ;;  %v9155_v20 = vcombine.low %v4286_v34, %v4290_v1  ;;  %v4262_v1 = vld [vmem:[#allocation9 + $0x218] sm:$0xff] }
 0x2f5   :  { %v3993_v13 = vadd.f32 %v10996_v29, %v3940_v5  ;;  %v4270_v29 = vld [vmem:[#allocation9 + $0x298] sm:$0xff]  ;;  %v3893_v34 = vadd.f32 %v10970_v11, %v3840_v32  ;;  %v4048_v53 = vadd.f32 %v11036_v0, %v3995_v3  ;;  %v9132_v30 = vcombine.high %v4262_v1, %v4266_v8 }
 0x2f6   :  { %v3989_v16 = vadd.f32 %v10986_v2, %v3936_v50  ;;  %v4044_v59 = vadd.f32 %v11022_v15, %v3991_v37  ;;  %v9147_v15 = vcombine.low %v4278_v40, %v4282_v7  ;;  %v4258_v32 = vld [vmem:[#allocation9 + $0x1d8] sm:$0xff] }
 0x2f7   :  { %6046 = vmatpush2.bf16.msra.mxu0 %v9169_v38  ;;  %v3895_v38 = vadd.f32 %v10974_v22, %v3842_v63  ;;  %v4046_v31 = vadd.f32 %v11026_v14, %v3993_v13  ;;  %v3899_v22 = vadd.f32 %v10984_v6, %v3846_v12  ;;  %v3946_v11 = vadd.f32 %v11002_v49, %v3893_v34  ;;  %v11626_v34 = vld [vmem:[#allocation24_spill] sm:$0xff] }
 0x2f8   :  { %6047 = vmatprep.subr.bf16.mxu0 %v9162_v27  ;;  %v4042_v48 = vadd.f32 %v11018_v46, %v3989_v16  ;;  %v4097_v19 = vadd.f32 %v11024_v33, %v4044_v59  ;;  %v4003_v49 = vadd.f32 %v11012_v26, %v3950_v60  ;;  %v4101_v63 = vadd.f32 %v11040_v41, %v4048_v53  ;;  %v4254_v26 = vld [vmem:[#allocation9 + $0x198] sm:$0xff] }
 0x2f9   :  { %v3948_v2 = vadd.f32 %v11006_v54, %v3895_v38  ;;  %v9140_v54 = vcombine.high %v4270_v29, %v4274_v10  ;;  %v3952_v46 = vadd.f32 %v11014_v24, %v3899_v22  ;;  %v4099_v55 = vadd.f32 %v11034_v25, %v4046_v31 }
 0x2fa   :  { %v4095_v18 = vadd.f32 %v11020_v28, %v4042_v48  ;;  %v3999_v24 = vadd.f32 %v11004_v35, %v3946_v11  ;;  %v4056_v40 = vadd.f32 %v11062_v39, %v4003_v49  ;;  %v9131_v13 = vcombine.low %v4262_v1, %v4266_v8  ;;  %v11627_v1 = vld [vmem:[#allocation20_spill] sm:$0xff]  ;;  %v11628_v8 = vld [vmem:[#allocation21_spill] sm:$0xff] }
 0x2fb   :  { %6048 = vmatpush2.bf16.msra.mxu0 %v9161_v62  ;;  %v4001_v0 = vadd.f32 %v11008_v44, %v3948_v2  ;;  %v9139_v62 = vcombine.low %v4270_v29, %v4274_v10  ;;  %v4005_v44 = vadd.f32 %v11016_v57, %v3952_v46  ;;  %v4404_v57 = vld [vmem:[#allocation9 + $0xb08] sm:$0xff]  ;;  %v9124_v3 = vcombine.high %v4254_v26, %v4258_v32  ;;  %v4246_v10 = vld [vmem:[#allocation9 + $0x118] sm:$0xff] }
 0x2fc   :  { %6123 = vmatprep.subr.bf16.mxu0 %v9156_v9  ;;  %v4052_v41 = vadd.f32 %v11042_v21, %v3999_v24  ;;  %v11625_v21 = vld [vmem:[#allocation25_spill] sm:$0xff]  ;;  %v4109_v31 = vadd.f32 %v11064_v47, %v4056_v40  ;;  %v9123_v60 = vcombine.low %v4254_v26, %v4258_v32  ;;  %v4396_v47 = vld [vmem:[#allocation9 + $0xa88] sm:$0xff] }
 0x2fd   :  { %v4054_v28 = vadd.f32 %v11050_v23, %v4001_v0  ;;  %v4408_v23 = vld [vmem:[#allocation9 + $0xb48] sm:$0xff]  ;;  %v11629_v0 = vcombine.low %v11627_v1, %v11628_v8  ;;  %v4318_v1 = vld [vmem:[#allocation9 + $0x598] sm:$0xff] }
 0x2fe   :  { %v4147_v45 = vpop.f32.mrf.mxu0  ;;  %6050 = vmatmul.mubr.bf16.vlgmr.msra.gmra.mxu0 %v10887_v61  ;;  %v4105_v22 = vadd.f32 %v11626_v34, %v4052_v41  ;;  %v4392_v24 = vld [vmem:[#allocation9 + $0xa48] sm:$0xff]  ;;  %v4334_v34 = vld [vmem:[#allocation9 + $0x698] sm:$0xff] }
 0x2ff   :  { %v4200_v27 = vpop.f32.mrf.mxu1  ;;  %6059 = vmatprep.mubr.bf16.mxu0 %v10936_v56  ;;  %6124 = vmatpush1.bf16.msra.mxu0 %v9155_v20  ;;  %v4148_v33 = vadd.f32 %v4147_v45, %v4095_v18  ;;  %v4058_v20 = vadd.f32 %v4057_v51, %v4005_v44  ;;  %v4107_v59 = vadd.f32 %v11625_v21, %v4054_v28  ;;  %v4250_v51 = vld [vmem:[#allocation9 + $0x158] sm:$0xff]  ;;  %v4380_v32 = vld [vmem:[#allocation9 + $0x988] sm:$0xff] }
 0x300   :  { %v4149_v14 = vpop.f32.mrf.mxu0  ;;  %6125 = vmatprep.subr.bf16.mxu0 %v9148_v58  ;;  %v4238_v18 = vld [vmem:[#allocation9 + $0x98] sm:$0xff]  ;;  %v4384_v41 = vld [vmem:[#allocation9 + $0x9c8] sm:$0xff] }
 0x301   :  { %v4202_v6 = vpop.f32.mrf.mxu1  ;;  %v4150_v50 = vadd.f32 %v4149_v14, %v4097_v19  ;;  %v4201_v39 = vadd.f32 %v4200_v27, %v4148_v33  ;;  %v9272_v27 = vcombine.high %v4404_v57, %v4408_v23  ;;  %v4111_v53 = vadd.f32 %v11074_v36, %v4058_v20  ;;  %v4400_v14 = vld [vmem:[#allocation9 + $0xac8] sm:$0xff]  ;;  %v4230_v44 = vld [vmem:[#allocation9 + $0x18] sm:$0xff] }
 0x302   :  { %v4151_v4 = vpop.f32.mrf.mxu0  ;;  %v9116_v19 = vcombine.high %v4246_v10, %v4250_v51  ;;  %v9271_v36 = vcombine.low %v4404_v57, %v4408_v23  ;;  %v4234_v28 = vld [vmem:[#allocation9 + $0x58] sm:$0xff]  ;;  %v9248_v20 = vcombine.high %v4380_v32, %v4384_v41  ;;  %v4376_v57 = vld [vmem:[#allocation9 + $0x948] sm:$0xff] }
 0x303   :  { %v4204_v5 = vpop.f32.mrf.mxu1  ;;  %v4152_v9 = vadd.f32 %v4151_v4, %v4099_v55  ;;  %6126 = vmatpush1.bf16.msra.mxu0 %v9147_v15  ;;  %v4203_v38 = vadd.f32 %v4202_v6, %v4150_v50  ;;  %v4242_v4 = vld [vmem:[#allocation9 + $0xd8] sm:$0xff]  ;;  %v9115_v50 = vcombine.low %v4246_v10, %v4250_v51 }
 0x304   :  { %v4153_v25 = vpop.f32.mrf.mxu0  ;;  %6127 = vmatprep.subr.bf16.mxu0 %v9140_v54  ;;  %v9107_v26 = vcombine.low %v4238_v18, %v4242_v4  ;;  %v4322_v8 = vld [vmem:[#allocation9 + $0x5d8] sm:$0xff] }
 0x305   :  { %v4206_v42 = vpop.f32.mrf.mxu1  ;;  %v4154_v7 = vadd.f32 %v4153_v25, %v4101_v63  ;;  %v4205_v12 = vadd.f32 %v4204_v5, %v4152_v9  ;;  %v4388_v9 = vld [vmem:[#allocation9 + $0xa08] sm:$0xff]  ;;  %v9108_v25 = vcombine.high %v4238_v18, %v4242_v4 }
 0x306   :  { %v4157_v37 = vpop.f32.mrf.mxu0  ;;  %6060 = vmatmul.mubr.bf16.gmra.mxu0 %v10897_v17  ;;  %v4468_v18 = vld [vmem:[#allocation9 + $0xf08] sm:$0xff] }
 0x307   :  { %v4210_v35 = vpop.f32.mrf.mxu1  ;;  %v4207_v16 = vadd.f32 %v4206_v42, %v4154_v7  ;;  %6128 = vmatpush1.bf16.msra.mxu0 %v9139_v62  ;;  %6155 = vmatprep.mubr.bf16.mxu0 %v10921_v43  ;;  %v11108_v2 = vpack.c.bf16 %v4205_v12, %v4201_v39  ;;  %v4158_v6 = vadd.f32 %v4157_v37, %v4105_v22  ;;  %v4338_v22 = vld [vmem:[#allocation9 + $0x6d8] sm:$0xff]  ;;  %v4472_v4 = vld [vmem:[#allocation9 + $0xf48] sm:$0xff] }
 0x308   :  { %v4159_v58 = vpop.f32.mrf.mxu0  ;;  %6129 = vmatprep.subr.bf16.mxu0 %v9132_v30  ;;  %v9264_v62 = vcombine.high %v4396_v47, %v4400_v14  ;;  %v9263_v30 = vcombine.low %v4396_v47, %v4400_v14  ;;  %v9256_v7 = vcombine.high %v4388_v9, %v4392_v24  ;;  %v9100_v12 = vcombine.high %v4230_v44, %v4234_v28  ;;  %v4330_v47 = vld [vmem:[#allocation9 + $0x658] sm:$0xff] }
 0x309   :  { %v4212_v52 = vpop.f32.mrf.mxu1  ;;  %v11105_v29 = vpack.c.bf16 %v4207_v16, %v4203_v38  ;;  %v4160_v15 = vadd.f32 %v4159_v58, %v4107_v59  ;;  %v4211_v33 = vadd.f32 %v4210_v35, %v4158_v6  ;;  %v9255_v37 = vcombine.low %v4388_v9, %v4392_v24  ;;  %v4350_v35 = vld [vmem:[#allocation9 + $0x798] sm:$0xff]  ;;  %v4372_v16 = vld [vmem:[#allocation9 + $0x908] sm:$0xff] }
 0x30a   :  { %v4161_v48 = vpop.f32.mrf.mxu0  ;;  %v9099_v38 = vcombine.low %v4230_v44, %v4234_v28  ;;  %v9247_v39 = vcombine.low %v4380_v32, %v4384_v41  ;;  %v4342_v58 = vld [vmem:[#allocation9 + $0x718] sm:$0xff]  ;;  %v4364_v59 = vld [vmem:[#allocation9 + $0x888] sm:$0xff]  ;;  %v9239_v51 = vcombine.low %v4372_v16, %v4376_v57  ;;  %v9203_v6 = vcombine.low %v4334_v34, %v4338_v22 }
 0x30b   :  { %v4214_v45 = vpop.f32.mrf.mxu1  ;;  %v4162_v11 = vadd.f32 %v4161_v48, %v4109_v31  ;;  %5890 = vmatprep.mubr.bf16.mxu1 %v11105_v29  ;;  %6130 = vmatpush1.bf16.msra.mxu0 %v9131_v13  ;;  %v4213_v49 = vadd.f32 %v4212_v52, %v4160_v15  ;;  %v4354_v13 = vld [vmem:[#allocation9 + $0x7d8] sm:$0xff]  ;;  %v4368_v31 = vld [vmem:[#allocation9 + $0x8c8] sm:$0xff]  ;;  %v9187_v9 = vcombine.low %v4318_v1, %v4322_v8 }
 0x30c   :  { %v4163_v54 = vpop.f32.mrf.mxu0  ;;  %5891 = vmatmul.mubr.bf16.vlgmr.msra.gmra.mxu1 %v11108_v2  ;;  %6131 = vmatprep.subr.bf16.mxu0 %v9124_v3  ;;  %v9220_v23 = vcombine.high %v4350_v35, %v4354_v13  ;;  %v4346_v52 = vld [vmem:[#allocation9 + $0x758] sm:$0xff]  ;;  %v9240_v3 = vcombine.high %v4372_v16, %v4376_v57  ;;  %v9219_v21 = vcombine.low %v4350_v35, %v4354_v13  ;;  %v4460_v24 = vld [vmem:[#allocation9 + $0xe88] sm:$0xff] }
 0x30d   :  { %v4216_v46 = vpop.f32.mrf.mxu1  ;;  %v4164_v55 = vadd.f32 %v4163_v54, %v4111_v53  ;;  %5965 = vmatpush1.bf16.msra.mxu1 %v11629_v0  ;;  %v4215_v5 = vadd.f32 %v4214_v45, %v4162_v11  ;;  %v9212_v10 = vcombine.high %v4342_v58, %v4346_v52  ;;  %v9232_v48 = vcombine.high %v4364_v59, %v4368_v31  ;;  %v4326_v11 = vld [vmem:[#allocation9 + $0x618] sm:$0xff]  ;;  %v4476_v54 = vld [vmem:[#allocation9 + $0xf88] sm:$0xff] }
 0x30e   :  { %5966 = vmatprep.subr.bf16.mxu1 %v9272_v27  ;;  %v9211_v45 = vcombine.low %v4342_v58, %v4346_v52  ;;  %v4360_v27 = vld [vmem:[#allocation9 + $0x848] sm:$0xff]  ;;  %v9204_v53 = vcombine.high %v4334_v34, %v4338_v22  ;;  %v9231_v15 = vcombine.low %v4364_v59, %v4368_v31  ;;  %v4302_v44 = vld [vmem:[#allocation9 + $0x498] sm:$0xff]  ;;  %v6317_v58 = vld [vmem:[#allocation9 + $0x3a0] sm:$0xff] }
 0x30f   :  { %v4217_v63 = vadd.f32 %v4216_v46, %v4164_v55  ;;  %6132 = vmatpush1.bf16.msra.mxu0 %v9123_v60  ;;  %v11118_v40 = vpack.c.bf16 %v4215_v5, %v4211_v33  ;;  %v4356_v60 = vld [vmem:[#allocation9 + $0x808] sm:$0xff]  ;;  %v9188_v5 = vcombine.high %v4318_v1, %v4322_v8  ;;  %v4306_v28 = vld [vmem:[#allocation9 + $0x4d8] sm:$0xff]  ;;  %v6321_v52 = vld [vmem:[#allocation9 + $0x3e0] sm:$0xff] }
 0x310   :  { %6133 = vmatprep.subr.bf16.mxu0 %v9116_v19  ;;  %v9224_v14 = vcombine.high %v4356_v60, %v4360_v27  ;;  %v4480_v46 = vld [vmem:[#allocation9 + $0xfc8] sm:$0xff]  ;;  %v9196_v19 = vcombine.high %v4326_v11, %v4330_v47  ;;  %v9223_v55 = vcombine.low %v4356_v60, %v4360_v27  ;;  %v4294_v35 = vld [vmem:[#allocation9 + $0x418] sm:$0xff]  ;;  %v6309_v34 = vld [vmem:[#allocation9 + $0x320] sm:$0xff] }
 0x311   :  { %v11116_v42 = vpack.c.bf16 %v4217_v63, %v4213_v49  ;;  %5967 = vmatpush1.bf16.msra.mxu1 %v9271_v36  ;;  %v9344_v0 = vcombine.high %v4476_v54, %v4480_v46  ;;  %v9195_v36 = vcombine.low %v4326_v11, %v4330_v47  ;;  %v4310_v49 = vld [vmem:[#allocation9 + $0x518] sm:$0xff]  ;;  %v4464_v33 = vld [vmem:[#allocation9 + $0xec8] sm:$0xff]  ;;  %v6313_v22 = vld [vmem:[#allocation9 + $0x360] sm:$0xff] }
 0x312   :  { %5968 = vmatprep.subr.bf16.mxu1 %v9264_v62  ;;  %v9343_v62 = vcombine.low %v4476_v54, %v4480_v46  ;;  %v4314_v63 = vld [vmem:[#allocation9 + $0x558] sm:$0xff]  ;;  %v4452_v32 = vld [vmem:[#allocation9 + $0xe08] sm:$0xff]  ;;  %v6301_v11 = vld [vmem:[#allocation9 + $0x2a0] sm:$0xff] }
 0x313   :  { %5900 = vmatprep.mubr.bf16.mxu1 %v11116_v42  ;;  %6134 = vmatpush1.bf16.msra.mxu0 %v9115_v50  ;;  %v9336_v50 = vcombine.high %v4468_v18, %v4472_v4  ;;  %v4456_v41 = vld [vmem:[#allocation9 + $0xe48] sm:$0xff]  ;;  %v4298_v13 = vld [vmem:[#allocation9 + $0x458] sm:$0xff]  ;;  %v6305_v47 = vld [vmem:[#allocation9 + $0x2e0] sm:$0xff] }
 0x314   :  { %5901 = vmatmul.mubr.bf16.gmra.mxu1 %v11118_v40  ;;  %6135 = vmatprep.subr.bf16.mxu0 %v9108_v25  ;;  %v9180_v25 = vcombine.high %v4310_v49, %v4314_v63  ;;  %v4444_v16 = vld [vmem:[#allocation9 + $0xd88] sm:$0xff]  ;;  %v6293_v1 = vld [vmem:[#allocation9 + $0x220] sm:$0xff] }
 0x315   :  { %5969 = vmatpush1.bf16.msra.mxu1 %v9263_v30  ;;  %5996 = vmatprep.mubr.bf16.mxu1 %v11105_v29  ;;  %v9335_v30 = vcombine.low %v4468_v18, %v4472_v4  ;;  %v4448_v57 = vld [vmem:[#allocation9 + $0xdc8] sm:$0xff]  ;;  %v6297_v8 = vld [vmem:[#allocation9 + $0x260] sm:$0xff]  ;;  %v4413_v18 = vld [vmem:[#allocation9 + $0xb90] sm:$0xff] }
 0x316   :  { %5970 = vmatprep.subr.bf16.mxu1 %v9256_v7  ;;  %v9328_v7 = vcombine.high %v4460_v24, %v4464_v33  ;;  %v4436_v59 = vld [vmem:[#allocation9 + $0xd08] sm:$0xff]  ;;  %v4417_v4 = vld [vmem:[#allocation9 + $0xbd0] sm:$0xff] }
 0x317   :  { %6136 = vmatpush1.bf16.msra.mxu0 %v9107_v26  ;;  %v9179_v26 = vcombine.low %v4310_v49, %v4314_v63  ;;  %v4440_v31 = vld [vmem:[#allocation9 + $0xd48] sm:$0xff]  ;;  %v6285_v49 = vld [vmem:[#allocation9 + $0x1a0] sm:$0xff] }
 0x318   :  { %6137 = vmatprep.subr.bf16.mxu0 %v9100_v12  ;;  %v9172_v12 = vcombine.high %v4302_v44, %v4306_v28  ;;  %v4428_v60 = vld [vmem:[#allocation9 + $0xc88] sm:$0xff]  ;;  %v6289_v63 = vld [vmem:[#allocation9 + $0x1e0] sm:$0xff] }
 0x319   :  { %5971 = vmatpush1.bf16.msra.mxu1 %v9255_v37  ;;  %v9327_v37 = vcombine.low %v4460_v24, %v4464_v33  ;;  %v4432_v27 = vld [vmem:[#allocation9 + $0xcc8] sm:$0xff]  ;;  %v4405_v24 = vld [vmem:[#allocation9 + $0xb10] sm:$0xff] }
 0x31a   :  { %5972 = vmatprep.subr.bf16.mxu1 %v9248_v20  ;;  %v9320_v20 = vcombine.high %v4452_v32, %v4456_v41  ;;  %v4420_v54 = vld [vmem:[#allocation9 + $0xc08] sm:$0xff]  ;;  %v4409_v33 = vld [vmem:[#allocation9 + $0xb50] sm:$0xff] }
 0x31b   :  { %6138 = vmatpush1.bf16.msra.mxu0 %v9099_v38  ;;  %v9171_v38 = vcombine.low %v4302_v44, %v4306_v28  ;;  %v4424_v46 = vld [vmem:[#allocation9 + $0xc48] sm:$0xff]  ;;  %v6277_v44 = vld [vmem:[#allocation9 + $0x120] sm:$0xff] }
 0x31c   :  { %6139 = vmatprep.subr.bf16.mxu0 %v9220_v23  ;;  %v9164_v23 = vcombine.high %v4294_v35, %v4298_v13  ;;  %v6281_v28 = vld [vmem:[#allocation9 + $0x160] sm:$0xff] }
 0x31d   :  { %5973 = vmatpush1.bf16.msra.mxu1 %v9247_v39  ;;  %v9319_v39 = vcombine.low %v4452_v32, %v4456_v41  ;;  %v4397_v32 = vld [vmem:[#allocation9 + $0xa90] sm:$0xff] }
 0x31e   :  { %5974 = vmatprep.subr.bf16.mxu1 %v9240_v3  ;;  %v9312_v3 = vcombine.high %v4444_v16, %v4448_v57  ;;  %v4401_v41 = vld [vmem:[#allocation9 + $0xad0] sm:$0xff] }
 0x31f   :  { %6140 = vmatpush2.bf16.msra.mxu0 %v9219_v21  ;;  %v9163_v21 = vcombine.low %v4294_v35, %v4298_v13  ;;  %v6269_v35 = vld [vmem:[#allocation9 + $0xa0] sm:$0xff] }
 0x320   :  { %6141 = vmatprep.subr.bf16.mxu0 %v9212_v10  ;;  %v9406_v10 = vcombine.high %v6317_v58, %v6321_v52  ;;  %v6273_v13 = vld [vmem:[#allocation9 + $0xe0] sm:$0xff] }
 0x321   :  { %5975 = vmatpush1.bf16.msra.mxu1 %v9239_v51  ;;  %v9311_v51 = vcombine.low %v4444_v16, %v4448_v57  ;;  %v4389_v16 = vld [vmem:[#allocation9 + $0xa10] sm:$0xff] }
 0x322   :  { %5976 = vmatprep.subr.bf16.mxu1 %v9232_v48  ;;  %v9304_v48 = vcombine.high %v4436_v59, %v4440_v31  ;;  %v4393_v57 = vld [vmem:[#allocation9 + $0xa50] sm:$0xff] }
 0x323   :  { %6142 = vmatpush2.bf16.msra.mxu0 %v9211_v45  ;;  %v9405_v45 = vcombine.low %v6317_v58, %v6321_v52  ;;  %v6261_v58 = vld [vmem:[#allocation9 + $0x20] sm:$0xff] }
 0x324   :  { %6143 = vmatprep.subr.bf16.mxu0 %v9204_v53  ;;  %v9398_v53 = vcombine.high %v6309_v34, %v6313_v22  ;;  %v6265_v52 = vld [vmem:[#allocation9 + $0x60] sm:$0xff] }
 0x325   :  { %5977 = vmatpush1.bf16.msra.mxu1 %v9231_v15  ;;  %v9303_v15 = vcombine.low %v4436_v59, %v4440_v31  ;;  %v4381_v59 = vld [vmem:[#allocation9 + $0x990] sm:$0xff] }
 0x326   :  { %5978 = vmatprep.subr.bf16.mxu1 %v9224_v14  ;;  %v9296_v14 = vcombine.high %v4428_v60, %v4432_v27  ;;  %v4385_v31 = vld [vmem:[#allocation9 + $0x9d0] sm:$0xff] }
 0x327   :  { %6144 = vmatpush2.bf16.msra.mxu0 %v9203_v6  ;;  %v9397_v6 = vcombine.low %v6309_v34, %v6313_v22  ;;  %v6381_v34 = vld [vmem:[#allocation9 + $0x7a0] sm:$0xff] }
 0x328   :  { %6145 = vmatprep.subr.bf16.mxu0 %v9196_v19  ;;  %v9390_v19 = vcombine.high %v6301_v11, %v6305_v47  ;;  %v6385_v22 = vld [vmem:[#allocation9 + $0x7e0] sm:$0xff] }
 0x329   :  { %5979 = vmatpush1.bf16.msra.mxu1 %v9223_v55  ;;  %v9295_v55 = vcombine.low %v4428_v60, %v4432_v27  ;;  %v4373_v60 = vld [vmem:[#allocation9 + $0x910] sm:$0xff] }
 0x32a   :  { %5980 = vmatprep.subr.bf16.mxu1 %v9344_v0  ;;  %v9288_v0 = vcombine.high %v4420_v54, %v4424_v46  ;;  %v4377_v27 = vld [vmem:[#allocation9 + $0x950] sm:$0xff] }
 0x32b   :  { %6146 = vmatpush2.bf16.msra.mxu0 %v9195_v36  ;;  %v9389_v36 = vcombine.low %v6301_v11, %v6305_v47  ;;  %v6373_v11 = vld [vmem:[#allocation9 + $0x720] sm:$0xff] }
 0x32c   :  { %6147 = vmatprep.subr.bf16.mxu0 %v9188_v5  ;;  %v9382_v5 = vcombine.high %v6293_v1, %v6297_v8  ;;  %v6377_v47 = vld [vmem:[#allocation9 + $0x760] sm:$0xff] }
 0x32d   :  { %5981 = vmatpush2.bf16.msra.mxu1 %v9343_v62  ;;  %v9287_v62 = vcombine.low %v4420_v54, %v4424_v46  ;;  %v4365_v54 = vld [vmem:[#allocation9 + $0x890] sm:$0xff] }
 0x32e   :  { %5982 = vmatprep.subr.bf16.mxu1 %v9336_v50  ;;  %v9282_v50 = vcombine.high %v4413_v18, %v4417_v4  ;;  %v4369_v46 = vld [vmem:[#allocation9 + $0x8d0] sm:$0xff] }
 0x32f   :  { %6148 = vmatpush2.bf16.msra.mxu0 %v9187_v9  ;;  %v9381_v9 = vcombine.low %v6293_v1, %v6297_v8  ;;  %v6365_v1 = vld [vmem:[#allocation9 + $0x6a0] sm:$0xff] }
 0x330   :  { %6149 = vmatprep.subr.bf16.mxu0 %v9180_v25  ;;  %v9374_v25 = vcombine.high %v6285_v49, %v6289_v63  ;;  %v6369_v8 = vld [vmem:[#allocation9 + $0x6e0] sm:$0xff] }
 0x331   :  { %5983 = vmatpush2.bf16.msra.mxu1 %v9335_v30  ;;  %v9281_v30 = vcombine.low %v4413_v18, %v4417_v4  ;;  %v4357_v18 = vld [vmem:[#allocation9 + $0x810] sm:$0xff] }
 0x332   :  { %5984 = vmatprep.subr.bf16.mxu1 %v9328_v7  ;;  %v9274_v7 = vcombine.high %v4405_v24, %v4409_v33  ;;  %v4361_v4 = vld [vmem:[#allocation9 + $0x850] sm:$0xff] }
 0x333   :  { %6150 = vmatpush2.bf16.msra.mxu0 %v9179_v26  ;;  %v9373_v26 = vcombine.low %v6285_v49, %v6289_v63  ;;  %v6357_v49 = vld [vmem:[#allocation9 + $0x620] sm:$0xff] }
 0x334   :  { %6151 = vmatprep.subr.bf16.mxu0 %v9172_v12  ;;  %v9366_v12 = vcombine.high %v6277_v44, %v6281_v28  ;;  %v6361_v63 = vld [vmem:[#allocation9 + $0x660] sm:$0xff] }
 0x335   :  { %5985 = vmatpush2.bf16.msra.mxu1 %v9327_v37  ;;  %v9273_v37 = vcombine.low %v4405_v24, %v4409_v33  ;;  %v4477_v24 = vld [vmem:[#allocation9 + $0xf90] sm:$0xff] }
 0x336   :  { %5986 = vmatprep.subr.bf16.mxu1 %v9320_v20  ;;  %v9266_v20 = vcombine.high %v4397_v32, %v4401_v41  ;;  %v4481_v33 = vld [vmem:[#allocation9 + $0xfd0] sm:$0xff] }
 0x337   :  { %6152 = vmatpush2.bf16.msra.mxu0 %v9171_v38  ;;  %v9365_v38 = vcombine.low %v6277_v44, %v6281_v28  ;;  %v6349_v44 = vld [vmem:[#allocation9 + $0x5a0] sm:$0xff] }
 0x338   :  { %6153 = vmatprep.subr.bf16.mxu0 %v9164_v23  ;;  %v9358_v23 = vcombine.high %v6269_v35, %v6273_v13  ;;  %v6353_v28 = vld [vmem:[#allocation9 + $0x5e0] sm:$0xff] }
 0x339   :  { %5987 = vmatpush2.bf16.msra.mxu1 %v9319_v39  ;;  %v9265_v39 = vcombine.low %v4397_v32, %v4401_v41  ;;  %v4469_v32 = vld [vmem:[#allocation9 + $0xf10] sm:$0xff] }
 0x33a   :  { %5988 = vmatprep.subr.bf16.mxu1 %v9312_v3  ;;  %v9258_v3 = vcombine.high %v4389_v16, %v4393_v57  ;;  %v4473_v41 = vld [vmem:[#allocation9 + $0xf50] sm:$0xff] }
 0x33b   :  { %6154 = vmatpush2.bf16.msra.mxu0 %v9163_v21  ;;  %v9357_v21 = vcombine.low %v6269_v35, %v6273_v13  ;;  %v6341_v35 = vld [vmem:[#allocation9 + $0x520] sm:$0xff] }
 0x33c   :  { %7839 = vmatprep.subr.bf16.mxu0 %v9406_v10  ;;  %v9350_v10 = vcombine.high %v6261_v58, %v6265_v52  ;;  %v6345_v13 = vld [vmem:[#allocation9 + $0x560] sm:$0xff] }
 0x33d   :  { %5989 = vmatpush2.bf16.msra.mxu1 %v9311_v51  ;;  %v9257_v51 = vcombine.low %v4389_v16, %v4393_v57  ;;  %v4461_v16 = vld [vmem:[#allocation9 + $0xe90] sm:$0xff] }
 0x33e   :  { %6156 = vmatmul.mubr.bf16.vlgmr.msra.gmra.mxu0 %v10887_v61  ;;  %5990 = vmatprep.subr.bf16.mxu1 %v9304_v48  ;;  %v9250_v48 = vcombine.high %v4381_v59, %v4385_v31  ;;  %v4465_v57 = vld [vmem:[#allocation9 + $0xed0] sm:$0xff] }
 0x33f   :  { %6165 = vmatprep.mubr.bf16.mxu0 %v10936_v56  ;;  %7840 = vmatpush1.bf16.msra.mxu0 %v9405_v45  ;;  %v9349_v45 = vcombine.low %v6261_v58, %v6265_v52  ;;  %v6333_v58 = vld [vmem:[#allocation9 + $0x4a0] sm:$0xff] }
 0x340   :  { %7841 = vmatprep.subr.bf16.mxu0 %v9398_v53  ;;  %v9470_v53 = vcombine.high %v6381_v34, %v6385_v22  ;;  %v6337_v52 = vld [vmem:[#allocation9 + $0x4e0] sm:$0xff] }
 0x341   :  { %5991 = vmatpush2.bf16.msra.mxu1 %v9303_v15  ;;  %v9249_v15 = vcombine.low %v4381_v59, %v4385_v31  ;;  %v4453_v59 = vld [vmem:[#allocation9 + $0xe10] sm:$0xff] }
 0x342   :  { %5992 = vmatprep.subr.bf16.mxu1 %v9296_v14  ;;  %v9242_v14 = vcombine.high %v4373_v60, %v4377_v27  ;;  %v4457_v31 = vld [vmem:[#allocation9 + $0xe50] sm:$0xff] }
 0x343   :  { %7842 = vmatpush1.bf16.msra.mxu0 %v9397_v6  ;;  %v9469_v6 = vcombine.low %v6381_v34, %v6385_v22  ;;  %v6325_v34 = vld [vmem:[#allocation9 + $0x420] sm:$0xff] }
 0x344   :  { %7843 = vmatprep.subr.bf16.mxu0 %v9390_v19  ;;  %v9462_v19 = vcombine.high %v6373_v11, %v6377_v47  ;;  %v6329_v22 = vld [vmem:[#allocation9 + $0x460] sm:$0xff] }
 0x345   :  { %5993 = vmatpush2.bf16.msra.mxu1 %v9295_v55  ;;  %v9241_v55 = vcombine.low %v4373_v60, %v4377_v27  ;;  %v4445_v60 = vld [vmem:[#allocation9 + $0xd90] sm:$0xff] }
 0x346   :  { %6166 = vmatmul.mubr.bf16.gmra.mxu0 %v10897_v17  ;;  %5994 = vmatprep.subr.bf16.mxu1 %v9288_v0  ;;  %v9234_v0 = vcombine.high %v4365_v54, %v4369_v46  ;;  %v4449_v27 = vld [vmem:[#allocation9 + $0xdd0] sm:$0xff] }
 0x347   :  { %7844 = vmatpush1.bf16.msra.mxu0 %v9389_v36  ;;  %7871 = vmatprep.mubr.bf16.mxu0 %v10921_v43  ;;  %v9461_v36 = vcombine.low %v6373_v11, %v6377_v47  ;;  %v6318_v11 = vld [vmem:[#allocation9 + $0x3a8] sm:$0xff] }
 0x348   :  { %7845 = vmatprep.subr.bf16.mxu0 %v9382_v5  ;;  %v9454_v5 = vcombine.high %v6365_v1, %v6369_v8  ;;  %v6322_v47 = vld [vmem:[#allocation9 + $0x3e8] sm:$0xff] }
 0x349   :  { %5995 = vmatpush2.bf16.msra.mxu1 %v9287_v62  ;;  %v9233_v62 = vcombine.low %v4365_v54, %v4369_v46  ;;  %v4437_v54 = vld [vmem:[#allocation9 + $0xd10] sm:$0xff] }
 0x34a   :  { %6070 = vmatprep.subr.bf16.mxu1 %v9282_v50  ;;  %v9226_v50 = vcombine.high %v4357_v18, %v4361_v4  ;;  %v4441_v46 = vld [vmem:[#allocation9 + $0xd50] sm:$0xff] }
 0x34b   :  { %7846 = vmatpush1.bf16.msra.mxu0 %v9381_v9  ;;  %v9453_v9 = vcombine.low %v6365_v1, %v6369_v8  ;;  %v6310_v1 = vld [vmem:[#allocation9 + $0x328] sm:$0xff] }
 0x34c   :  { %5997 = vmatmul.mubr.bf16.vlgmr.msra.gmra.mxu1 %v11108_v2  ;;  %7847 = vmatprep.subr.bf16.mxu0 %v9374_v25  ;;  %v9446_v25 = vcombine.high %v6357_v49, %v6361_v63  ;;  %v6314_v8 = vld [vmem:[#allocation9 + $0x368] sm:$0xff] }
 0x34d   :  { %6006 = vmatprep.mubr.bf16.mxu1 %v11116_v42  ;;  %6071 = vmatpush1.bf16.msra.mxu1 %v9281_v30  ;;  %v9225_v30 = vcombine.low %v4357_v18, %v4361_v4  ;;  %v4429_v18 = vld [vmem:[#allocation9 + $0xc90] sm:$0xff] }
 0x34e   :  { %6072 = vmatprep.subr.bf16.mxu1 %v9274_v7  ;;  %v9346_v7 = vcombine.high %v4477_v24, %v4481_v33  ;;  %v4433_v4 = vld [vmem:[#allocation9 + $0xcd0] sm:$0xff] }
 0x34f   :  { %7848 = vmatpush1.bf16.msra.mxu0 %v9373_v26  ;;  %v9445_v26 = vcombine.low %v6357_v49, %v6361_v63  ;;  %v6302_v49 = vld [vmem:[#allocation9 + $0x2a8] sm:$0xff] }
 0x350   :  { %7849 = vmatprep.subr.bf16.mxu0 %v9366_v12  ;;  %v9438_v12 = vcombine.high %v6349_v44, %v6353_v28  ;;  %v6306_v63 = vld [vmem:[#allocation9 + $0x2e8] sm:$0xff] }
 0x351   :  { %6073 = vmatpush1.bf16.msra.mxu1 %v9273_v37  ;;  %v9345_v37 = vcombine.low %v4477_v24, %v4481_v33  ;;  %v4421_v24 = vld [vmem:[#allocation9 + $0xc10] sm:$0xff] }
 0x352   :  { %6074 = vmatprep.subr.bf16.mxu1 %v9266_v20  ;;  %v9338_v20 = vcombine.high %v4469_v32, %v4473_v41  ;;  %v4425_v33 = vld [vmem:[#allocation9 + $0xc50] sm:$0xff] }
 0x353   :  { %7850 = vmatpush1.bf16.msra.mxu0 %v9365_v38  ;;  %v9437_v38 = vcombine.low %v6349_v44, %v6353_v28  ;;  %v6294_v44 = vld [vmem:[#allocation9 + $0x228] sm:$0xff] }
 0x354   :  { %6007 = vmatmul.mubr.bf16.gmra.mxu1 %v11118_v40  ;;  %7851 = vmatprep.subr.bf16.mxu0 %v9358_v23  ;;  %v9430_v23 = vcombine.high %v6341_v35, %v6345_v13  ;;  %v6298_v28 = vld [vmem:[#allocation9 + $0x268] sm:$0xff] }
 0x355   :  { %6075 = vmatpush1.bf16.msra.mxu1 %v9265_v39  ;;  %6102 = vmatprep.mubr.bf16.mxu1 %v11105_v29  ;;  %v9337_v39 = vcombine.low %v4469_v32, %v4473_v41  ;;  %v4414_v32 = vld [vmem:[#allocation9 + $0xb98] sm:$0xff] }
 0x356   :  { %6076 = vmatprep.subr.bf16.mxu1 %v9258_v3  ;;  %v9330_v3 = vcombine.high %v4461_v16, %v4465_v57  ;;  %v4418_v41 = vld [vmem:[#allocation9 + $0xbd8] sm:$0xff] }
 0x357   :  { %7852 = vmatpush1.bf16.msra.mxu0 %v9357_v21  ;;  %v9429_v21 = vcombine.low %v6341_v35, %v6345_v13  ;;  %v6286_v35 = vld [vmem:[#allocation9 + $0x1a8] sm:$0xff] }
 0x358   :  { %7853 = vmatprep.subr.bf16.mxu0 %v9350_v10  ;;  %v9422_v10 = vcombine.high %v6333_v58, %v6337_v52  ;;  %v6290_v13 = vld [vmem:[#allocation9 + $0x1e8] sm:$0xff] }
 0x359   :  { %6077 = vmatpush1.bf16.msra.mxu1 %v9257_v51  ;;  %v9329_v51 = vcombine.low %v4461_v16, %v4465_v57  ;;  %v4406_v16 = vld [vmem:[#allocation9 + $0xb18] sm:$0xff] }
 0x35a   :  { %6078 = vmatprep.subr.bf16.mxu1 %v9250_v48  ;;  %v9322_v48 = vcombine.high %v4453_v59, %v4457_v31  ;;  %v4410_v57 = vld [vmem:[#allocation9 + $0xb58] sm:$0xff] }
 0x35b   :  { %7854 = vmatpush1.bf16.msra.mxu0 %v9349_v45  ;;  %v9421_v45 = vcombine.low %v6333_v58, %v6337_v52  ;;  %v6278_v58 = vld [vmem:[#allocation9 + $0x128] sm:$0xff] }
 0x35c   :  { %7855 = vmatprep.subr.bf16.mxu0 %v9470_v53  ;;  %v9414_v53 = vcombine.high %v6325_v34, %v6329_v22  ;;  %v6282_v52 = vld [vmem:[#allocation9 + $0x168] sm:$0xff] }
 0x35d   :  { %6079 = vmatpush1.bf16.msra.mxu1 %v9249_v15  ;;  %v9321_v15 = vcombine.low %v4453_v59, %v4457_v31  ;;  %v4398_v59 = vld [vmem:[#allocation9 + $0xa98] sm:$0xff] }
 0x35e   :  { %6080 = vmatprep.subr.bf16.mxu1 %v9242_v14  ;;  %v9314_v14 = vcombine.high %v4445_v60, %v4449_v27  ;;  %v4402_v31 = vld [vmem:[#allocation9 + $0xad8] sm:$0xff] }
 0x35f   :  { %7856 = vmatpush2.bf16.msra.mxu0 %v9469_v6  ;;  %v9413_v6 = vcombine.low %v6325_v34, %v6329_v22  ;;  %v6270_v34 = vld [vmem:[#allocation9 + $0xa8] sm:$0xff] }
 0x360   :  { %7857 = vmatprep.subr.bf16.mxu0 %v9462_v19  ;;  %v9408_v19 = vcombine.high %v6318_v11, %v6322_v47  ;;  %v6274_v22 = vld [vmem:[#allocation9 + $0xe8] sm:$0xff] }
 0x361   :  { %6081 = vmatpush1.bf16.msra.mxu1 %v9241_v55  ;;  %v9313_v55 = vcombine.low %v4445_v60, %v4449_v27  ;;  %v4390_v60 = vld [vmem:[#allocation9 + $0xa18] sm:$0xff] }
 0x362   :  { %6082 = vmatprep.subr.bf16.mxu1 %v9234_v0  ;;  %v9306_v0 = vcombine.high %v4437_v54, %v4441_v46  ;;  %v4394_v27 = vld [vmem:[#allocation9 + $0xa58] sm:$0xff] }
 0x363   :  { %7858 = vmatpush2.bf16.msra.mxu0 %v9461_v36  ;;  %v9407_v36 = vcombine.low %v6318_v11, %v6322_v47  ;;  %v6262_v11 = vld [vmem:[#allocation9 + $0x28] sm:$0xff] }
 0x364   :  { %7859 = vmatprep.subr.bf16.mxu0 %v9454_v5  ;;  %v9400_v5 = vcombine.high %v6310_v1, %v6314_v8  ;;  %v6266_v47 = vld [vmem:[#allocation9 + $0x68] sm:$0xff] }
 0x365   :  { %6083 = vmatpush1.bf16.msra.mxu1 %v9233_v62  ;;  %v9305_v62 = vcombine.low %v4437_v54, %v4441_v46  ;;  %v4382_v54 = vld [vmem:[#allocation9 + $0x998] sm:$0xff] }
 0x366   :  { %6084 = vmatprep.subr.bf16.mxu1 %v9226_v50  ;;  %v9298_v50 = vcombine.high %v4429_v18, %v4433_v4  ;;  %v4386_v46 = vld [vmem:[#allocation9 + $0x9d8] sm:$0xff] }
 0x367   :  { %7860 = vmatpush2.bf16.msra.mxu0 %v9453_v9  ;;  %v9399_v9 = vcombine.low %v6310_v1, %v6314_v8  ;;  %v6382_v1 = vld [vmem:[#allocation9 + $0x7a8] sm:$0xff] }
 0x368   :  { %7861 = vmatprep.subr.bf16.mxu0 %v9446_v25  ;;  %v9392_v25 = vcombine.high %v6302_v49, %v6306_v63  ;;  %v6386_v8 = vld [vmem:[#allocation9 + $0x7e8] sm:$0xff] }
 0x369   :  { %6085 = vmatpush1.bf16.msra.mxu1 %v9225_v30  ;;  %v9297_v30 = vcombine.low %v4429_v18, %v4433_v4  ;;  %v4374_v18 = vld [vmem:[#allocation9 + $0x918] sm:$0xff] }
 0x36a   :  { %6086 = vmatprep.subr.bf16.mxu1 %v9346_v7  ;;  %v9290_v7 = vcombine.high %v4421_v24, %v4425_v33  ;;  %v4378_v4 = vld [vmem:[#allocation9 + $0x958] sm:$0xff] }
 0x36b   :  { %7862 = vmatpush2.bf16.msra.mxu0 %v9445_v26  ;;  %v9391_v26 = vcombine.low %v6302_v49, %v6306_v63  ;;  %v6374_v49 = vld [vmem:[#allocation9 + $0x728] sm:$0xff] }
 0x36c   :  { %7863 = vmatprep.subr.bf16.mxu0 %v9438_v12  ;;  %v9384_v12 = vcombine.high %v6294_v44, %v6298_v28  ;;  %v6378_v63 = vld [vmem:[#allocation9 + $0x768] sm:$0xff] }
 0x36d   :  { %6087 = vmatpush2.bf16.msra.mxu1 %v9345_v37  ;;  %v9289_v37 = vcombine.low %v4421_v24, %v4425_v33  ;;  %v4366_v24 = vld [vmem:[#allocation9 + $0x898] sm:$0xff] }
 0x36e   :  { %6088 = vmatprep.subr.bf16.mxu1 %v9338_v20  ;;  %v9284_v20 = vcombine.high %v4414_v32, %v4418_v41  ;;  %v4370_v33 = vld [vmem:[#allocation9 + $0x8d8] sm:$0xff] }
 0x36f   :  { %7864 = vmatpush2.bf16.msra.mxu0 %v9437_v38  ;;  %v9383_v38 = vcombine.low %v6294_v44, %v6298_v28  ;;  %v6366_v44 = vld [vmem:[#allocation9 + $0x6a8] sm:$0xff] }
 0x370   :  { %7865 = vmatprep.subr.bf16.mxu0 %v9430_v23  ;;  %v9376_v23 = vcombine.high %v6286_v35, %v6290_v13  ;;  %v6370_v28 = vld [vmem:[#allocation9 + $0x6e8] sm:$0xff] }
 0x371   :  { %6089 = vmatpush2.bf16.msra.mxu1 %v9337_v39  ;;  %v9283_v39 = vcombine.low %v4414_v32, %v4418_v41  ;;  %v4358_v32 = vld [vmem:[#allocation9 + $0x818] sm:$0xff] }
 0x372   :  { %6090 = vmatprep.subr.bf16.mxu1 %v9330_v3  ;;  %v9276_v3 = vcombine.high %v4406_v16, %v4410_v57  ;;  %v4362_v41 = vld [vmem:[#allocation9 + $0x858] sm:$0xff] }
 0x373   :  { %7866 = vmatpush2.bf16.msra.mxu0 %v9429_v21  ;;  %v9375_v21 = vcombine.low %v6286_v35, %v6290_v13  ;;  %v6358_v35 = vld [vmem:[#allocation9 + $0x628] sm:$0xff] }
 0x374   :  { %7867 = vmatprep.subr.bf16.mxu0 %v9422_v10  ;;  %v9368_v10 = vcombine.high %v6278_v58, %v6282_v52  ;;  %v6362_v13 = vld [vmem:[#allocation9 + $0x668] sm:$0xff] }
 0x375   :  { %6091 = vmatpush2.bf16.msra.mxu1 %v9329_v51  ;;  %v9275_v51 = vcombine.low %v4406_v16, %v4410_v57  ;;  %v4478_v16 = vld [vmem:[#allocation9 + $0xf98] sm:$0xff] }
 0x376   :  { %6092 = vmatprep.subr.bf16.mxu1 %v9322_v48  ;;  %v9268_v48 = vcombine.high %v4398_v59, %v4402_v31  ;;  %v4482_v57 = vld [vmem:[#allocation9 + $0xfd8] sm:$0xff] }
 0x377   :  { %7868 = vmatpush2.bf16.msra.mxu0 %v9421_v45  ;;  %v9367_v45 = vcombine.low %v6278_v58, %v6282_v52  ;;  %v6350_v58 = vld [vmem:[#allocation9 + $0x5a8] sm:$0xff] }
 0x378   :  { %7869 = vmatprep.subr.bf16.mxu0 %v9414_v53  ;;  %v9360_v53 = vcombine.high %v6270_v34, %v6274_v22  ;;  %v6354_v52 = vld [vmem:[#allocation9 + $0x5e8] sm:$0xff] }
 0x379   :  { %6093 = vmatpush2.bf16.msra.mxu1 %v9321_v15  ;;  %v9267_v15 = vcombine.low %v4398_v59, %v4402_v31  ;;  %v4470_v59 = vld [vmem:[#allocation9 + $0xf18] sm:$0xff] }
 0x37a   :  { %6094 = vmatprep.subr.bf16.mxu1 %v9314_v14  ;;  %v9260_v14 = vcombine.high %v4390_v60, %v4394_v27  ;;  %v4474_v31 = vld [vmem:[#allocation9 + $0xf58] sm:$0xff] }
 0x37b   :  { %7870 = vmatpush2.bf16.msra.mxu0 %v9413_v6  ;;  %v9359_v6 = vcombine.low %v6270_v34, %v6274_v22  ;;  %v6342_v34 = vld [vmem:[#allocation9 + $0x528] sm:$0xff] }
 0x37c   :  { %7945 = vmatprep.subr.bf16.mxu0 %v9408_v19  ;;  %v9352_v19 = vcombine.high %v6262_v11, %v6266_v47  ;;  %v6346_v22 = vld [vmem:[#allocation9 + $0x568] sm:$0xff] }
 0x37d   :  { %6095 = vmatpush2.bf16.msra.mxu1 %v9313_v55  ;;  %v9259_v55 = vcombine.low %v4390_v60, %v4394_v27  ;;  %v4462_v60 = vld [vmem:[#allocation9 + $0xe98] sm:$0xff] }
 0x37e   :  { %7872 = vmatmul.mubr.bf16.vlgmr.msra.gmra.mxu0 %v10887_v61  ;;  %6096 = vmatprep.subr.bf16.mxu1 %v9306_v0  ;;  %v9252_v0 = vcombine.high %v4382_v54, %v4386_v46  ;;  %v4466_v27 = vld [vmem:[#allocation9 + $0xed8] sm:$0xff] }
 0x37f   :  { %7881 = vmatprep.mubr.bf16.mxu0 %v10936_v56  ;;  %7946 = vmatpush1.bf16.msra.mxu0 %v9407_v36  ;;  %v9351_v36 = vcombine.low %v6262_v11, %v6266_v47  ;;  %v6334_v11 = vld [vmem:[#allocation9 + $0x4a8] sm:$0xff] }
 0x380   :  { %7947 = vmatprep.subr.bf16.mxu0 %v9400_v5  ;;  %v9472_v5 = vcombine.high %v6382_v1, %v6386_v8  ;;  %v6338_v47 = vld [vmem:[#allocation9 + $0x4e8] sm:$0xff] }
 0x381   :  { %6097 = vmatpush2.bf16.msra.mxu1 %v9305_v62  ;;  %v9251_v62 = vcombine.low %v4382_v54, %v4386_v46  ;;  %v4454_v54 = vld [vmem:[#allocation9 + $0xe18] sm:$0xff] }
 0x382   :  { %6098 = vmatprep.subr.bf16.mxu1 %v9298_v50  ;;  %v9244_v50 = vcombine.high %v4374_v18, %v4378_v4  ;;  %v4458_v46 = vld [vmem:[#allocation9 + $0xe58] sm:$0xff] }
 0x383   :  { %7948 = vmatpush1.bf16.msra.mxu0 %v9399_v9  ;;  %v9471_v9 = vcombine.low %v6382_v1, %v6386_v8  ;;  %v6326_v1 = vld [vmem:[#allocation9 + $0x428] sm:$0xff] }
 0x384   :  { %7949 = vmatprep.subr.bf16.mxu0 %v9392_v25  ;;  %v9464_v25 = vcombine.high %v6374_v49, %v6378_v63  ;;  %v6330_v8 = vld [vmem:[#allocation9 + $0x468] sm:$0xff] }
 0x385   :  { %6099 = vmatpush2.bf16.msra.mxu1 %v9297_v30  ;;  %v9243_v30 = vcombine.low %v4374_v18, %v4378_v4  ;;  %v4446_v18 = vld [vmem:[#allocation9 + $0xd98] sm:$0xff] }
 0x386   :  { %7882 = vmatmul.mubr.bf16.gmra.mxu0 %v10897_v17  ;;  %6100 = vmatprep.subr.bf16.mxu1 %v9290_v7  ;;  %v9236_v7 = vcombine.high %v4366_v24, %v4370_v33  ;;  %v4450_v4 = vld [vmem:[#allocation9 + $0xdd8] sm:$0xff] }
 0x387   :  { %7950 = vmatpush1.bf16.msra.mxu0 %v9391_v26  ;;  %7977 = vmatprep.mubr.bf16.mxu0 %v10921_v43  ;;  %v9463_v26 = vcombine.low %v6374_v49, %v6378_v63  ;;  %v6319_v49 = vld [vmem:[#allocation9 + $0x3b0] sm:$0xff] }
 0x388   :  { %7951 = vmatprep.subr.bf16.mxu0 %v9384_v12  ;;  %v9456_v12 = vcombine.high %v6366_v44, %v6370_v28  ;;  %v6323_v63 = vld [vmem:[#allocation9 + $0x3f0] sm:$0xff] }
 0x389   :  { %6101 = vmatpush2.bf16.msra.mxu1 %v9289_v37  ;;  %v9235_v37 = vcombine.low %v4366_v24, %v4370_v33  ;;  %v4438_v24 = vld [vmem:[#allocation9 + $0xd18] sm:$0xff] }
 0x38a   :  { %6176 = vmatprep.subr.bf16.mxu1 %v9284_v20  ;;  %v9228_v20 = vcombine.high %v4358_v32, %v4362_v41  ;;  %v4442_v33 = vld [vmem:[#allocation9 + $0xd58] sm:$0xff] }
 0x38b   :  { %7952 = vmatpush1.bf16.msra.mxu0 %v9383_v38  ;;  %v9455_v38 = vcombine.low %v6366_v44, %v6370_v28  ;;  %v6311_v44 = vld [vmem:[#allocation9 + $0x330] sm:$0xff] }
 0x38c   :  { %6103 = vmatmul.mubr.bf16.vlgmr.msra.gmra.mxu1 %v11108_v2  ;;  %7953 = vmatprep.subr.bf16.mxu0 %v9376_v23  ;;  %v9448_v23 = vcombine.high %v6358_v35, %v6362_v13  ;;  %v6315_v28 = vld [vmem:[#allocation9 + $0x370] sm:$0xff] }
 0x38d   :  { %6112 = vmatprep.mubr.bf16.mxu1 %v11116_v42  ;;  %6177 = vmatpush1.bf16.msra.mxu1 %v9283_v39  ;;  %v9227_v39 = vcombine.low %v4358_v32, %v4362_v41  ;;  %v9409_v32 = vcombine.low %v6319_v49, %v6323_v63  ;;  %v4430_v41 = vld [vmem:[#allocation9 + $0xc98] sm:$0xff] }
 0x38e   :  { %6178 = vmatprep.subr.bf16.mxu1 %v9276_v3  ;;  %v9348_v3 = vcombine.high %v4478_v16, %v4482_v57 }
 0x38f   :  { %7954 = vmatpush1.bf16.msra.mxu0 %v9375_v21  ;;  %v9447_v21 = vcombine.low %v6358_v35, %v6362_v13  ;;  %v9307_v35 = vcombine.low %v4438_v24, %v4442_v33  ;;  %v6303_v13 = vld [vmem:[#allocation9 + $0x2b0] sm:$0xff] }
 0x390   :  { %7955 = vmatprep.subr.bf16.mxu0 %v9368_v10  ;;  %v9440_v10 = vcombine.high %v6350_v58, %v6354_v52 }
 0x391   :  { %6179 = vmatpush1.bf16.msra.mxu1 %v9275_v51  ;;  %v9347_v51 = vcombine.low %v4478_v16, %v4482_v57  ;;  %v9401_v57 = vcombine.low %v6311_v44, %v6315_v28 }
 0x392   :  { %6180 = vmatprep.subr.bf16.mxu1 %v9268_v48  ;;  %v9340_v48 = vcombine.high %v4470_v59, %v4474_v31 }
 0x393   :  { %7956 = vmatpush1.bf16.msra.mxu0 %v9367_v45  ;;  %v9439_v45 = vcombine.low %v6350_v58, %v6354_v52 }
 0x394   :  { %6113 = vmatmul.mubr.bf16.gmra.mxu1 %v11118_v40  ;;  %7957 = vmatprep.subr.bf16.mxu0 %v9360_v53  ;;  %v9432_v53 = vcombine.high %v6342_v34, %v6346_v22 }
 0x395   :  { %6181 = vmatpush1.bf16.msra.mxu1 %v9267_v15  ;;  %6208 = vmatprep.mubr.bf16.mxu1 %v11105_v29  ;;  %v9339_v15 = vcombine.low %v4470_v59, %v4474_v31 }
 0x396   :  { %6182 = vmatprep.subr.bf16.mxu1 %v9260_v14  ;;  %v9332_v14 = vcombine.high %v4462_v60, %v4466_v27 }
 0x397   :  { %7958 = vmatpush1.bf16.msra.mxu0 %v9359_v6  ;;  %v9431_v6 = vcombine.low %v6342_v34, %v6346_v22  ;;  %v6449_v34 = vld [vmem:[#allocation9 + $0xbe0] sm:$0xff] }
 0x398   :  { %7959 = vmatprep.subr.bf16.mxu0 %v9352_v19  ;;  %v9424_v19 = vcombine.high %v6334_v11, %v6338_v47  ;;  %v11141_v22 = vld [vmem:[#allocation11] sm:$0xff] }
 0x399   :  { %6183 = vmatpush1.bf16.msra.mxu1 %v9259_v55  ;;  %v9331_v55 = vcombine.low %v4462_v60, %v4466_v27  ;;  %v6287_v60 = vld [vmem:[#allocation9 + $0x1b0] sm:$0xff] }
 0x39a   :  { %6184 = vmatprep.subr.bf16.mxu1 %v9252_v0  ;;  %v9324_v0 = vcombine.high %v4454_v54, %v4458_v46  ;;  %v6291_v27 = vld [vmem:[#allocation9 + $0x1f0] sm:$0xff] }
 0x39b   :  { %7960 = vmatpush1.bf16.msra.mxu0 %v9351_v36  ;;  %v9423_v36 = vcombine.low %v6334_v11, %v6338_v47  ;;  %v11630_v11 = vld [vmem:[#allocation18_spill] sm:$0xff] }
 0x39c   :  { %7961 = vmatprep.subr.bf16.mxu0 %v9472_v5  ;;  %v9416_v5 = vcombine.high %v6326_v1, %v6330_v8  ;;  %v11146_v47 = vrot.slane %v11141_v22, %v11630_v11 }
 0x39d   :  { %6185 = vmatpush1.bf16.msra.mxu1 %v9251_v62  ;;  %v9323_v62 = vcombine.low %v4454_v54, %v4458_v46  ;;  %v6441_v54 = vld [vmem:[#allocation9 + $0xb60] sm:$0xff]  ;;  %v9378_v46 = vcombine.high %v6287_v60, %v6291_v27 }
 0x39e   :  { %6186 = vmatprep.subr.bf16.mxu1 %v9244_v50  ;;  %v9316_v50 = vcombine.high %v4446_v18, %v4450_v4 }
 0x39f   :  { %7962 = vmatpush2.bf16.msra.mxu0 %v9471_v9  ;;  %v9415_v9 = vcombine.low %v6326_v1, %v6330_v8  ;;  %v6279_v8 = vld [vmem:[#allocation9 + $0x130] sm:$0xff] }
 0x3a0   :  { %7963 = vmatprep.subr.bf16.mxu0 %v9464_v25  ;;  %v9410_v25 = vcombine.high %v6319_v49, %v6323_v63  ;;  %v6433_v49 = vld [vmem:[#allocation9 + $0xae0] sm:$0xff] }
 0x3a1   :  { %6187 = vmatpush1.bf16.msra.mxu1 %v9243_v30  ;;  %v9315_v30 = vcombine.low %v4446_v18, %v4450_v4 }
 0x3a2   :  { %6188 = vmatprep.subr.bf16.mxu1 %v9236_v7  ;;  %v5839_v7 = vpop.f32.mrf.mxu0 }
 0x3a3   :  { %7964 = vmatpush2.bf16.msra.mxu0 %v9463_v26  ;;  %v9308_v26 = vcombine.high %v4438_v24, %v4442_v33  ;;  %v5840_v4 = vadd.f32 %v5839_v7, %v11146_v47 }
 0x3a4   :  { %7965 = vmatprep.subr.bf16.mxu0 %v9456_v12  ;;  %v4434_v12 = vld [vmem:[#allocation9 + $0xcd8] sm:$0xff] }
 0x3a5   :  { %6189 = vmatpush1.bf16.msra.mxu1 %v9235_v37  ;;  %v9402_v37 = vcombine.high %v6311_v44, %v6315_v28  ;;  %v9300_v16 = vcombine.high %v4430_v41, %v4434_v12  ;;  %v9299_v52 = vcombine.low %v4430_v41, %v4434_v12  ;;  %v6421_v12 = vld [vmem:[#allocation9 + $0xa20] sm:$0xff] }
 0x3a6   :  { %6190 = vmatprep.subr.bf16.mxu1 %v9228_v20  ;;  %v6307_v20 = vld [vmem:[#allocation9 + $0x2f0] sm:$0xff] }
 0x3a7   :  { %7966 = vmatpush2.bf16.msra.mxu0 %v9455_v38  ;;  %v5841_v38 = vpop.f32.mrf.mxu0  ;;  %v9394_v58 = vcombine.high %v6303_v13, %v6307_v20 }
 0x3a8   :  { %7967 = vmatprep.subr.bf16.mxu0 %v9448_v23  ;;  %v4422_v23 = vld [vmem:[#allocation9 + $0xc18] sm:$0xff] }
 0x3a9   :  { %6191 = vmatpush1.bf16.msra.mxu1 %v9227_v39  ;;  %v4426_v39 = vld [vmem:[#allocation9 + $0xc58] sm:$0xff]  ;;  %v5843_v59 = vpop.f32.mrf.mxu0 }
 0x3aa   :  { %6192 = vmatprep.subr.bf16.mxu1 %v9348_v3  ;;  %v6295_v3 = vld [vmem:[#allocation9 + $0x230] sm:$0xff]  ;;  %v9292_v31 = vcombine.high %v4422_v23, %v4426_v39 }
 0x3ab   :  { %7968 = vmatpush2.bf16.msra.mxu0 %v9447_v21  ;;  %v6299_v21 = vld [vmem:[#allocation9 + $0x270] sm:$0xff] }
 0x3ac   :  { %7969 = vmatprep.subr.bf16.mxu0 %v9440_v10  ;;  %v9393_v10 = vcombine.low %v6303_v13, %v6307_v20 }
 0x3ad   :  { %6193 = vmatpush2.bf16.msra.mxu1 %v9347_v51  ;;  %v6445_v51 = vld [vmem:[#allocation9 + $0xba0] sm:$0xff] }
 0x3ae   :  { %6194 = vmatprep.subr.bf16.mxu1 %v9340_v48  ;;  %v9386_v48 = vcombine.high %v6295_v3, %v6299_v21  ;;  %v9533_v1 = vcombine.low %v6445_v51, %v6449_v34 }
 0x3af   :  { %7970 = vmatpush2.bf16.msra.mxu0 %v9439_v45  ;;  %v9291_v45 = vcombine.low %v4422_v23, %v4426_v39  ;;  %v6267_v23 = vld [vmem:[#allocation9 + $0x70] sm:$0xff] }
 0x3b0   :  { %7971 = vmatprep.subr.bf16.mxu0 %v9432_v53  ;;  %v5845_v53 = vpop.f32.mrf.mxu0 }
 0x3b1   :  { %6195 = vmatpush2.bf16.msra.mxu1 %v9339_v15  ;;  %v9534_v15 = vcombine.high %v6445_v51, %v6449_v34 }
 0x3b2   :  { %6196 = vmatprep.subr.bf16.mxu1 %v9332_v14  ;;  %v9385_v14 = vcombine.low %v6295_v3, %v6299_v21 }
 0x3b3   :  { %7972 = vmatpush2.bf16.msra.mxu0 %v9431_v6  ;;  %v6437_v6 = vld [vmem:[#allocation9 + $0xb20] sm:$0xff] }
 0x3b4   :  { %7973 = vmatprep.subr.bf16.mxu0 %v9424_v19  ;;  %v11631_v19 = vld [vmem:[#allocation19_spill] sm:$0xff]  ;;  %v9526_v18 = vcombine.high %v6437_v6, %v6441_v54  ;;  %v9525_v33 = vcombine.low %v6437_v6, %v6441_v54 }
 0x3b5   :  { %6197 = vmatpush2.bf16.msra.mxu1 %v9331_v55  ;;  %v11151_v55 = vrot.slane %v11141_v22, %v11631_v19 }
 0x3b6   :  { %6198 = vmatprep.subr.bf16.mxu1 %v9324_v0  ;;  %v6283_v0 = vld [vmem:[#allocation9 + $0x170] sm:$0xff] }
 0x3b7   :  { %7974 = vmatpush2.bf16.msra.mxu0 %v9423_v36  ;;  %v5849_v36 = vpop.f32.mrf.mxu0  ;;  %v9369_v41 = vcombine.low %v6279_v8, %v6283_v0  ;;  %v5846_v20 = vadd.f32 %v5845_v53, %v11151_v55  ;;  %v6387_v53 = vld [vmem:[#allocation9 + $0x7f0] sm:$0xff] }
 0x3b8   :  { %7975 = vmatprep.subr.bf16.mxu0 %v9416_v5  ;;  %v9377_v5 = vcombine.low %v6287_v60, %v6291_v27  ;;  %v5850_v3 = vadd.f32 %v5849_v36, %v11146_v47  ;;  %v6383_v27 = vld [vmem:[#allocation9 + $0x7b0] sm:$0xff] }
 0x3b9   :  { %6199 = vmatpush2.bf16.msra.mxu1 %v9323_v62  ;;  %v6429_v62 = vld [vmem:[#allocation9 + $0xaa0] sm:$0xff]  ;;  %v5851_v44 = vpop.f32.mrf.mxu0 }
 0x3ba   :  { %6200 = vmatprep.subr.bf16.mxu1 %v9316_v50  ;;  %v9370_v50 = vcombine.high %v6279_v8, %v6283_v0  ;;  %v9518_v7 = vcombine.high %v6429_v62, %v6433_v49  ;;  %v6405_v8 = vld [vmem:[#allocation9 + $0x920] sm:$0xff] }
 0x3bb   :  { %7976 = vmatpush2.bf16.msra.mxu0 %v9415_v9  ;;  %v5842_v9 = vadd.f32 %v5841_v38, %v11151_v55  ;;  %v5853_v39 = vpop.f32.mrf.mxu0  ;;  %v6409_v0 = vld [vmem:[#allocation9 + $0x960] sm:$0xff] }
 0x3bc   :  { %8051 = vmatprep.subr.bf16.mxu0 %v9410_v25  ;;  %v6271_v25 = vld [vmem:[#allocation9 + $0xb0] sm:$0xff]  ;;  %v5854_v54 = vadd.f32 %v5853_v39, %v11146_v47  ;;  %v6509_v39 = vld [vmem:[#allocation9 + $0xfa0] sm:$0xff] }
 0x3bd   :  { %6201 = vmatpush2.bf16.msra.mxu1 %v9315_v30  ;;  %v6275_v30 = vld [vmem:[#allocation9 + $0xf0] sm:$0xff] }
 0x3be   :  { %7978 = vmatmul.mubr.bf16.vlgmr.msra.gmra.mxu0 %v10887_v61  ;;  %6202 = vmatprep.subr.bf16.mxu1 %v9308_v26  ;;  %v5844_v26 = vadd.f32 %v5843_v59, %v11146_v47  ;;  %v9362_v13 = vcombine.high %v6271_v25, %v6275_v30  ;;  %v9361_v59 = vcombine.low %v6271_v25, %v6275_v30  ;;  %v6397_v25 = vld [vmem:[#allocation9 + $0x8a0] sm:$0xff] }
 0x3bf   :  { %7987 = vmatprep.mubr.bf16.mxu0 %v10936_v56  ;;  %8052 = vmatpush1.bf16.msra.mxu0 %v9409_v32  ;;  %v9494_v47 = vcombine.high %v6405_v8, %v6409_v0  ;;  %v6401_v30 = vld [vmem:[#allocation9 + $0x8e0] sm:$0xff] }
 0x3c0   :  { %8053 = vmatprep.subr.bf16.mxu0 %v9402_v37  ;;  %v6425_v37 = vld [vmem:[#allocation9 + $0xa60] sm:$0xff] }
 0x3c1   :  { %6203 = vmatpush2.bf16.msra.mxu1 %v9307_v35  ;;  %v9509_v60 = vcombine.low %v6421_v12, %v6425_v37 }
 0x3c2   :  { %6204 = vmatprep.subr.bf16.mxu1 %v9300_v16  ;;  %v9517_v16 = vcombine.low %v6429_v62, %v6433_v49  ;;  %v6375_v49 = vld [vmem:[#allocation9 + $0x730] sm:$0xff] }
 0x3c3   :  { %8054 = vmatpush1.bf16.msra.mxu0 %v9401_v57  ;;  %v6263_v57 = vld [vmem:[#allocation9 + $0x30] sm:$0xff] }
 0x3c4   :  { %8055 = vmatprep.subr.bf16.mxu0 %v9394_v58  ;;  %v9354_v34 = vcombine.high %v6263_v57, %v6267_v23 }
 0x3c5   :  { %6205 = vmatpush2.bf16.msra.mxu1 %v9299_v52  ;;  %v9510_v52 = vcombine.high %v6421_v12, %v6425_v37  ;;  %v6389_v12 = vld [vmem:[#allocation9 + $0x820] sm:$0xff] }
 0x3c6   :  { %7988 = vmatmul.mubr.bf16.gmra.mxu0 %v10897_v17  ;;  %6206 = vmatprep.subr.bf16.mxu1 %v9292_v31  ;;  %v6413_v31 = vld [vmem:[#allocation9 + $0x9a0] sm:$0xff] }
 0x3c7   :  { %8056 = vmatpush1.bf16.msra.mxu0 %v9393_v10  ;;  %8083 = vmatprep.mubr.bf16.mxu0 %v10921_v43  ;;  %v6417_v10 = vld [vmem:[#allocation9 + $0x9e0] sm:$0xff] }
 0x3c8   :  { %8057 = vmatprep.subr.bf16.mxu0 %v9386_v48  ;;  %v5852_v48 = vadd.f32 %v5851_v44, %v11151_v55  ;;  %v9502_v6 = vcombine.high %v6413_v31, %v6417_v10  ;;  %v9501_v62 = vcombine.low %v6413_v31, %v6417_v10  ;;  %v6393_v37 = vld [vmem:[#allocation9 + $0x860] sm:$0xff]  ;;  %v6355_v31 = vld [vmem:[#allocation9 + $0x5f0] sm:$0xff] }
 0x3c9   :  { %6207 = vmatpush2.bf16.msra.mxu1 %v9291_v45 }
 0x3ca   :  { %7892 = vmatprep.subr.bf16.mxu1 %v9534_v15  ;;  %v5855_v15 = vpop.f32.mrf.mxu0 }
 0x3cb   :  { %8058 = vmatpush1.bf16.msra.mxu0 %v9385_v14 }
 0x3cc   :  { %6209 = vmatmul.mubr.bf16.vlgmr.msra.gmra.mxu1 %v11108_v2  ;;  %v5892_v63 = vpop.f32.mrf.mxu1  ;;  %8059 = vmatprep.subr.bf16.mxu0 %v9378_v46 }
 0x3cd   :  { %v11156_v24 = vadd.f32 %v5892_v63, %v5840_v4  ;;  %6218 = vmatprep.mubr.bf16.mxu1 %v11116_v42  ;;  %7893 = vmatpush1.bf16.msra.mxu1 %v9533_v1  ;;  %v9353_v1 = vcombine.low %v6263_v57, %v6267_v23  ;;  %v5856_v4 = vadd.f32 %v5855_v15, %v11151_v55  ;;  %v6379_v63 = vld [vmem:[#allocation9 + $0x770] sm:$0xff] }
 0x3ce   :  { %v5894_v28 = vpop.f32.mrf.mxu1  ;;  %7894 = vmatprep.subr.bf16.mxu1 %v9526_v18  ;;  %v9474_v18 = vcombine.high %v6383_v27, %v6387_v53  ;;  %v9466_v44 = vcombine.high %v6375_v49, %v6379_v63  ;;  %v6367_v55 = vld [vmem:[#allocation9 + $0x6b0] sm:$0xff]  ;;  %v9478_v57 = vcombine.high %v6389_v12, %v6393_v37 }
 0x3cf   :  { %v11160_v32 = vadd.f32 %v5894_v28, %v5842_v9  ;;  %8060 = vmatpush1.bf16.msra.mxu0 %v9377_v5  ;;  %v9493_v28 = vcombine.low %v6405_v8, %v6409_v0  ;;  %v6347_v15 = vld [vmem:[#allocation9 + $0x570] sm:$0xff] }
 0x3d0   :  { %v5896_v35 = vpop.f32.mrf.mxu1  ;;  %8061 = vmatprep.subr.bf16.mxu0 %v9370_v50 }
 0x3d1   :  { %v11163_v38 = vadd.f32 %v5896_v35, %v5844_v26  ;;  %7895 = vmatpush1.bf16.msra.mxu1 %v9525_v33  ;;  %v9473_v33 = vcombine.low %v6383_v27, %v6387_v53  ;;  %v9486_v26 = vcombine.high %v6397_v25, %v6401_v30  ;;  %v6343_v53 = vld [vmem:[#allocation9 + $0x530] sm:$0xff] }
 0x3d2   :  { %v5898_v58 = vpop.f32.mrf.mxu1  ;;  %7896 = vmatprep.subr.bf16.mxu1 %v9518_v7  ;;  %v6371_v7 = vld [vmem:[#allocation9 + $0x6f0] sm:$0xff]  ;;  %v9434_v8 = vcombine.high %v6343_v53, %v6347_v15 }
 0x3d3   :  { %v11166_v21 = vadd.f32 %v5898_v58, %v5846_v20  ;;  %8062 = vmatpush1.bf16.msra.mxu0 %v9369_v41  ;;  %v9465_v41 = vcombine.low %v6375_v49, %v6379_v63  ;;  %v9458_v35 = vcombine.high %v6367_v55, %v6371_v7  ;;  %v6359_v20 = vld [vmem:[#allocation9 + $0x630] sm:$0xff]  ;;  %v9457_v23 = vcombine.low %v6367_v55, %v6371_v7  ;;  %v6513_v58 = vld [vmem:[#allocation9 + $0xfe0] sm:$0xff] }
 0x3d4   :  { %6219 = vmatmul.mubr.bf16.gmra.mxu1 %v11118_v40  ;;  %v5902_v51 = vpop.f32.mrf.mxu1  ;;  %8063 = vmatprep.subr.bf16.mxu0 %v9362_v13  ;;  %v9485_v13 = vcombine.low %v6397_v25, %v6401_v30  ;;  %v9598_v10 = vcombine.high %v6509_v39, %v6513_v58  ;;  %v9597_v27 = vcombine.low %v6509_v39, %v6513_v58  ;;  %v6485_v49 = vld [vmem:[#allocation9 + $0xe20] sm:$0xff]  ;;  %v6331_v25 = vld [vmem:[#allocation9 + $0x470] sm:$0xff]  ;;  %v6316_v39 = vld [vmem:[#allocation9 + $0x378] sm:$0xff]  ;;  %v5945_v58 = vpop.f32.mrf.mxu0 }
 0x3d5   :  { %v11170_v45 = vadd.f32 %v5902_v51, %v5850_v3  ;;  %7897 = vmatpush1.bf16.msra.mxu1 %v9517_v16  ;;  %7924 = vmatprep.mubr.bf16.mxu1 %v11105_v29  ;;  %v6363_v16 = vld [vmem:[#allocation9 + $0x670] sm:$0xff]  ;;  %v9477_v3 = vcombine.low %v6389_v12, %v6393_v37  ;;  %v6489_v63 = vld [vmem:[#allocation9 + $0xe60] sm:$0xff]  ;;  %v6324_v12 = vld [vmem:[#allocation9 + $0x3f8] sm:$0xff] }
 0x3d6   :  { %v5904_v14 = vpop.f32.mrf.mxu1  ;;  %7898 = vmatprep.subr.bf16.mxu1 %v9510_v52  ;;  %v9450_v52 = vcombine.high %v6359_v20, %v6363_v16  ;;  %v9449_v51 = vcombine.low %v6359_v20, %v6363_v16  ;;  %v9574_v30 = vcombine.high %v6485_v49, %v6489_v63  ;;  %v6481_v55 = vld [vmem:[#allocation9 + $0xde0] sm:$0xff] }
 0x3d7   :  { %v11174_v46 = vadd.f32 %v5904_v14, %v5852_v48  ;;  %8064 = vmatpush1.bf16.msra.mxu0 %v9361_v59  ;;  %v6351_v59 = vld [vmem:[#allocation9 + $0x5b0] sm:$0xff]  ;;  %v6505_v48 = vld [vmem:[#allocation9 + $0xf60] sm:$0xff] }
 0x3d8   :  { %v5906_v36 = vpop.f32.mrf.mxu1  ;;  %8065 = vmatprep.subr.bf16.mxu0 %v9354_v34  ;;  %v6501_v34 = vld [vmem:[#allocation9 + $0xf20] sm:$0xff] }
 0x3d9   :  { %v11177_v5 = vadd.f32 %v5906_v36, %v5854_v54  ;;  %7899 = vmatpush1.bf16.msra.mxu1 %v9509_v60  ;;  %v9442_v60 = vcombine.high %v6351_v59, %v6355_v31  ;;  %v9590_v14 = vcombine.high %v6501_v34, %v6505_v48  ;;  %v6493_v54 = vld [vmem:[#allocation9 + $0xea0] sm:$0xff]  ;;  %v9589_v0 = vcombine.low %v6501_v34, %v6505_v48  ;;  %v6335_v36 = vld [vmem:[#allocation9 + $0x4b0] sm:$0xff]  ;;  %v6304_v34 = vld [vmem:[#allocation9 + $0x2b8] sm:$0xff] }
 0x3da   :  { %v5908_v50 = vpop.f32.mrf.mxu1  ;;  %7900 = vmatprep.subr.bf16.mxu1 %v9502_v6  ;;  %v9441_v6 = vcombine.low %v6351_v59, %v6355_v31  ;;  %v6473_v20 = vld [vmem:[#allocation9 + $0xd60] sm:$0xff]  ;;  %v6308_v48 = vld [vmem:[#allocation9 + $0x2f8] sm:$0xff] }
 0x3db   :  { %v11179_v9 = vadd.f32 %v5908_v50, %v5856_v4  ;;  %8066 = vmatpush1.bf16.msra.mxu0 %v9353_v1  ;;  %v6497_v1 = vld [vmem:[#allocation9 + $0xee0] sm:$0xff] }
 0x3dc   :  { %8067 = vmatprep.subr.bf16.mxu0 %v9474_v18  ;;  %v6339_v18 = vld [vmem:[#allocation9 + $0x4f0] sm:$0xff]  ;;  %v9582_v4 = vcombine.high %v6493_v54, %v6497_v1  ;;  %v6461_v59 = vld [vmem:[#allocation9 + $0xca0] sm:$0xff] }
 0x3dd   :  { %7901 = vmatpush1.bf16.msra.mxu1 %v9501_v62  ;;  %v9433_v62 = vcombine.low %v6343_v53, %v6347_v15  ;;  %v9426_v50 = vcombine.high %v6335_v36, %v6339_v18  ;;  %v6465_v31 = vld [vmem:[#allocation9 + $0xce0] sm:$0xff] }
 0x3de   :  { %7902 = vmatprep.subr.bf16.mxu1 %v9494_v47  ;;  %v9581_v47 = vcombine.low %v6493_v54, %v6497_v1  ;;  %v6453_v15 = vld [vmem:[#allocation9 + $0xc20] sm:$0xff]  ;;  %v9549_v54 = vcombine.low %v6461_v59, %v6465_v31  ;;  %v6296_v1 = vld [vmem:[#allocation9 + $0x238] sm:$0xff] }
 0x3df   :  { %8068 = vmatpush2.bf16.msra.mxu0 %v9473_v33  ;;  %v6327_v33 = vld [vmem:[#allocation9 + $0x430] sm:$0xff] }
 0x3e0   :  { %8069 = vmatprep.subr.bf16.mxu0 %v9466_v44  ;;  %v9425_v44 = vcombine.low %v6335_v36, %v6339_v18  ;;  %v9418_v7 = vcombine.high %v6327_v33, %v6331_v25  ;;  %v9395_v18 = vcombine.low %v6304_v34, %v6308_v48 }
 0x3e1   :  { %7903 = vmatpush1.bf16.msra.mxu1 %v9493_v28  ;;  %v6477_v28 = vld [vmem:[#allocation9 + $0xda0] sm:$0xff] }
 0x3e2   :  { %7904 = vmatprep.subr.bf16.mxu1 %v9486_v26  ;;  %v9573_v26 = vcombine.low %v6485_v49, %v6489_v63  ;;  %v9566_v37 = vcombine.high %v6477_v28, %v6481_v55 }
 0x3e3   :  { %8070 = vmatpush2.bf16.msra.mxu0 %v9465_v41  ;;  %v6320_v41 = vld [vmem:[#allocation9 + $0x3b8] sm:$0xff] }
 0x3e4   :  { %8071 = vmatprep.subr.bf16.mxu0 %v9458_v35  ;;  %v9417_v35 = vcombine.low %v6327_v33, %v6331_v25  ;;  %v9412_v16 = vcombine.high %v6320_v41, %v6324_v12 }
 0x3e5   :  { %7905 = vmatpush1.bf16.msra.mxu1 %v9485_v13  ;;  %v6469_v13 = vld [vmem:[#allocation9 + $0xd20] sm:$0xff] }
 0x3e6   :  { %7906 = vmatprep.subr.bf16.mxu1 %v9478_v57  ;;  %v9565_v57 = vcombine.low %v6477_v28, %v6481_v55  ;;  %v6438_v55 = vld [vmem:[#allocation9 + $0xb28] sm:$0xff] }
 0x3e7   :  { %8072 = vmatpush2.bf16.msra.mxu0 %v9457_v23  ;;  %v6312_v23 = vld [vmem:[#allocation9 + $0x338] sm:$0xff] }
 0x3e8   :  { %8073 = vmatprep.subr.bf16.mxu0 %v9450_v52  ;;  %v9558_v52 = vcombine.high %v6469_v13, %v6473_v20  ;;  %v9403_v53 = vcombine.low %v6312_v23, %v6316_v39 }
 0x3e9   :  { %7907 = vmatpush1.bf16.msra.mxu1 %v9477_v3  ;;  %v9411_v3 = vcombine.low %v6320_v41, %v6324_v12  ;;  %v11633_v41 = vld [vmem:[#allocation22_spill] sm:$0xff] }
 0x3ea   :  { %7908 = vmatprep.subr.bf16.mxu1 %v9598_v10  ;;  %v9404_v10 = vcombine.high %v6312_v23, %v6316_v39  ;;  %v11191_v12 = vrot.slane %v11141_v22, %v11633_v41  ;;  %v6430_v23 = vld [vmem:[#allocation9 + $0xaa8] sm:$0xff] }
 0x3eb   :  { %8074 = vmatpush2.bf16.msra.mxu0 %v9449_v51  ;;  %v9557_v51 = vcombine.low %v6469_v13, %v6473_v20  ;;  %v6284_v13 = vld [vmem:[#allocation9 + $0x178] sm:$0xff]  ;;  %v6434_v39 = vld [vmem:[#allocation9 + $0xae8] sm:$0xff] }
 0x3ec   :  { %8075 = vmatprep.subr.bf16.mxu0 %v9442_v60  ;;  %v5947_v60 = vpop.f32.mrf.mxu0 }
 0x3ed   :  { %7909 = vmatpush2.bf16.msra.mxu1 %v9597_v27  ;;  %v9550_v27 = vcombine.high %v6461_v59, %v6465_v31  ;;  %v5948_v59 = vadd.f32 %v5947_v60, %v11191_v12 }
 0x3ee   :  { %7910 = vmatprep.subr.bf16.mxu1 %v9590_v14  ;;  %v6457_v14 = vld [vmem:[#allocation9 + $0xc60] sm:$0xff] }
 0x3ef   :  { %8076 = vmatpush2.bf16.msra.mxu0 %v9441_v6  ;;  %v9396_v6 = vcombine.high %v6304_v34, %v6308_v48  ;;  %v9542_v36 = vcombine.high %v6453_v15, %v6457_v14  ;;  %v9541_v63 = vcombine.low %v6453_v15, %v6457_v14  ;;  %v6276_v34 = vld [vmem:[#allocation9 + $0xf8] sm:$0xff] }
 0x3f0   :  { %8077 = vmatprep.subr.bf16.mxu0 %v9434_v8  ;;  %v6300_v8 = vld [vmem:[#allocation9 + $0x278] sm:$0xff] }
 0x3f1   :  { %7911 = vmatpush2.bf16.msra.mxu1 %v9589_v0  ;;  %v5949_v0 = vpop.f32.mrf.mxu0  ;;  %v9388_v49 = vcombine.high %v6296_v1, %v6300_v8  ;;  %v9387_v28 = vcombine.low %v6296_v1, %v6300_v8 }
 0x3f2   :  { %7912 = vmatprep.subr.bf16.mxu1 %v9582_v4  ;;  %v6446_v4 = vld [vmem:[#allocation9 + $0xba8] sm:$0xff] }
 0x3f3   :  { %8078 = vmatpush2.bf16.msra.mxu0 %v9433_v62  ;;  %v6450_v62 = vld [vmem:[#allocation9 + $0xbe8] sm:$0xff]  ;;  %v5951_v33 = vpop.f32.mrf.mxu0 }
 0x3f4   :  { %8079 = vmatprep.subr.bf16.mxu0 %v9426_v50  ;;  %v6288_v50 = vld [vmem:[#allocation9 + $0x1b8] sm:$0xff]  ;;  %v9536_v25 = vcombine.high %v6446_v4, %v6450_v62 }
 0x3f5   :  { %7913 = vmatpush2.bf16.msra.mxu1 %v9581_v47  ;;  %v6292_v47 = vld [vmem:[#allocation9 + $0x1f8] sm:$0xff]  ;;  %v5955_v20 = vpop.f32.mrf.mxu0 }
 0x3f6   :  { %7914 = vmatprep.subr.bf16.mxu1 %v9574_v30  ;;  %v11632_v30 = vld [vmem:[#allocation23_spill] sm:$0xff] }
 0x3f7   :  { %8080 = vmatpush2.bf16.msra.mxu0 %v9425_v44  ;;  %v11186_v44 = vrot.slane %v11141_v22, %v11632_v30 }
 0x3f8   :  { %8081 = vmatprep.subr.bf16.mxu0 %v9418_v7  ;;  %v6442_v7 = vld [vmem:[#allocation9 + $0xb68] sm:$0xff] }
 0x3f9   :  { %7915 = vmatpush2.bf16.msra.mxu1 %v9573_v26  ;;  %v9380_v26 = vcombine.high %v6288_v50, %v6292_v47 }
 0x3fa   :  { %7916 = vmatprep.subr.bf16.mxu1 %v9566_v37  ;;  %v9535_v37 = vcombine.low %v6446_v4, %v6450_v62  ;;  %v6264_v62 = vld [vmem:[#allocation9 + $0x38] sm:$0xff] }
 0x3fb   :  { %8082 = vmatpush2.bf16.msra.mxu0 %v9417_v35  ;;  %v6280_v35 = vld [vmem:[#allocation9 + $0x138] sm:$0xff] }
 0x3fc   :  { %8157 = vmatprep.subr.bf16.mxu0 %v9412_v16  ;;  %v9528_v16 = vcombine.high %v6438_v55, %v6442_v7  ;;  %v9371_v60 = vcombine.low %v6280_v35, %v6284_v13 }
 0x3fd   :  { %7917 = vmatpush2.bf16.msra.mxu1 %v9565_v57  ;;  %v5946_v57 = vadd.f32 %v5945_v58, %v11186_v44  ;;  %v5957_v58 = vpop.f32.mrf.mxu0 }
 0x3fe   :  { %8084 = vmatmul.mubr.bf16.vlgmr.msra.gmra.mxu0 %v10887_v61  ;;  %7918 = vmatprep.subr.bf16.mxu1 %v9558_v52 }
 0x3ff   :  { %8093 = vmatprep.mubr.bf16.mxu0 %v10936_v56  ;;  %8158 = vmatpush1.bf16.msra.mxu0 %v9411_v3  ;;  %v9372_v3 = vcombine.high %v6280_v35, %v6284_v13 }
 0x400   :  { %8159 = vmatprep.subr.bf16.mxu0 %v9404_v10  ;;  %v9527_v10 = vcombine.low %v6438_v55, %v6442_v7  ;;  %v6414_v7 = vld [vmem:[#allocation9 + $0x9a8] sm:$0xff] }
 0x401   :  { %7919 = vmatpush2.bf16.msra.mxu1 %v9557_v51  ;;  %v6272_v51 = vld [vmem:[#allocation9 + $0xb8] sm:$0xff] }
 0x402   :  { %7920 = vmatprep.subr.bf16.mxu1 %v9550_v27  ;;  %v9520_v27 = vcombine.high %v6430_v23, %v6434_v39  ;;  %v9364_v8 = vcombine.high %v6272_v51, %v6276_v34 }
 0x403   :  { %8160 = vmatpush1.bf16.msra.mxu0 %v9403_v53  ;;  %v5950_v53 = vadd.f32 %v5949_v0, %v11186_v44  ;;  %v9519_v0 = vcombine.low %v6430_v23, %v6434_v39  ;;  %v6388_v23 = vld [vmem:[#allocation9 + $0x7f8] sm:$0xff] }
 0x404   :  { %8161 = vmatprep.subr.bf16.mxu0 %v9396_v6  ;;  %v6422_v6 = vld [vmem:[#allocation9 + $0xa28] sm:$0xff] }
 0x405   :  { %7921 = vmatpush2.bf16.msra.mxu1 %v9549_v54  ;;  %v6426_v54 = vld [vmem:[#allocation9 + $0xa68] sm:$0xff] }
 0x406   :  { %8094 = vmatmul.mubr.bf16.gmra.mxu0 %v10897_v17  ;;  %7922 = vmatprep.subr.bf16.mxu1 %v9542_v36  ;;  %v5952_v36 = vadd.f32 %v5951_v33, %v11191_v12  ;;  %v9363_v33 = vcombine.low %v6272_v51, %v6276_v34 }
 0x407   :  { %8162 = vmatpush1.bf16.msra.mxu0 %v9395_v18  ;;  %8189 = vmatprep.mubr.bf16.mxu0 %v10921_v43  ;;  %v9379_v43 = vcombine.low %v6288_v50, %v6292_v47  ;;  %v9512_v47 = vcombine.high %v6422_v6, %v6426_v54 }
 0x408   :  { %8163 = vmatprep.subr.bf16.mxu0 %v9388_v49  ;;  %v6268_v49 = vld [vmem:[#allocation9 + $0x78] sm:$0xff] }
 0x409   :  { %7923 = vmatpush2.bf16.msra.mxu1 %v9541_v63  ;;  %v5959_v63 = vpop.f32.mrf.mxu0  ;;  %v9356_v13 = vcombine.high %v6264_v62, %v6268_v49  ;;  %v9355_v34 = vcombine.low %v6264_v62, %v6268_v49 }
 0x40a   :  { %7998 = vmatprep.subr.bf16.mxu1 %v9536_v25  ;;  %v5956_v25 = vadd.f32 %v5955_v20, %v11186_v44 }
 0x40b   :  { %8164 = vmatpush1.bf16.msra.mxu0 %v9387_v28  ;;  %v5961_v39 = vpop.f32.mrf.mxu0 }
 0x40c   :  { %v5998_v52 = vpop.f32.mrf.mxu1  ;;  %7925 = vmatmul.mubr.bf16.vlgmr.msra.gmra.mxu1 %v11108_v2  ;;  %8165 = vmatprep.subr.bf16.mxu0 %v9380_v26  ;;  %v6418_v26 = vld [vmem:[#allocation9 + $0x9e8] sm:$0xff] }
 0x40d   :  { %v11196_v31 = vadd.f32 %v5998_v52, %v5946_v57  ;;  %7934 = vmatprep.mubr.bf16.mxu1 %v11116_v42  ;;  %7999 = vmatpush1.bf16.msra.mxu1 %v9535_v37  ;;  %v5958_v37 = vadd.f32 %v5957_v58, %v11191_v12  ;;  %v9511_v57 = vcombine.low %v6422_v6, %v6426_v54  ;;  %v6406_v58 = vld [vmem:[#allocation9 + $0x928] sm:$0xff] }
 0x40e   :  { %v6000_v48 = vpop.f32.mrf.mxu1  ;;  %8000 = vmatprep.subr.bf16.mxu1 %v9528_v16 }
 0x40f   :  { %v6229_v15 = vmax.f32 %v11156_v24, %v11196_v31  ;;  %v11202_v14 = vadd.f32 %v6000_v48, %v5948_v59  ;;  %8166 = vmatpush1.bf16.msra.mxu0 %v9379_v43  ;;  %v6384_v43 = vld [vmem:[#allocation9 + $0x7b8] sm:$0xff]  ;;  %v5960_v59 = vadd.f32 %v5959_v63, %v11186_v44  ;;  %v6410_v48 = vld [vmem:[#allocation9 + $0x968] sm:$0xff]  ;;  %v9503_v44 = vcombine.low %v6414_v7, %v6418_v26 }
 0x410   :  { %v6002_v1 = vpop.f32.mrf.mxu1  ;;  %8167 = vmatprep.subr.bf16.mxu0 %v9372_v3  ;;  %v9504_v3 = vcombine.high %v6414_v7, %v6418_v26  ;;  %v9475_v63 = vcombine.low %v6384_v43, %v6388_v23  ;;  %v6368_v7 = vld [vmem:[#allocation9 + $0x6b8] sm:$0xff] }
 0x411   :  { %v6230_v18 = vmax.f32 %v11160_v32, %v11202_v14  ;;  %v11207_v4 = vadd.f32 %v6002_v1, %v5950_v53  ;;  %8001 = vmatpush1.bf16.msra.mxu1 %v9527_v10  ;;  %v9476_v53 = vcombine.high %v6384_v43, %v6388_v23  ;;  %v6376_v1 = vld [vmem:[#allocation9 + $0x738] sm:$0xff] }
 0x412   :  { %v6004_v50 = vpop.f32.mrf.mxu1  ;;  %8002 = vmatprep.subr.bf16.mxu1 %v9520_v27  ;;  %v6372_v26 = vld [vmem:[#allocation9 + $0x6f8] sm:$0xff] }
 0x413   :  { %v6231_v28 = vmax.f32 %v11163_v38, %v11207_v4  ;;  %v11212_v55 = vadd.f32 %v6004_v50, %v5952_v36  ;;  %8168 = vmatpush1.bf16.msra.mxu0 %v9371_v60  ;;  %v5962_v60 = vadd.f32 %v5961_v39, %v11191_v12  ;;  %v6398_v12 = vld [vmem:[#allocation9 + $0x8a8] sm:$0xff]  ;;  %v9460_v39 = vcombine.high %v6368_v7, %v6372_v26  ;;  %v6360_v23 = vld [vmem:[#allocation9 + $0x638] sm:$0xff] }
 0x414   :  { %v6008_v35 = vpop.f32.mrf.mxu1  ;;  %7935 = vmatmul.mubr.bf16.gmra.mxu1 %v11118_v40  ;;  %8169 = vmatprep.subr.bf16.mxu0 %v9364_v8  ;;  %v6380_v8 = vld [vmem:[#allocation9 + $0x778] sm:$0xff]  ;;  %v6402_v50 = vld [vmem:[#allocation9 + $0x8e8] sm:$0xff] }
 0x415   :  { %v6232_v16 = vmax.f32 %v11166_v21, %v11212_v55  ;;  %v11218_v20 = vadd.f32 %v6008_v35, %v5956_v25  ;;  %8003 = vmatpush1.bf16.msra.mxu1 %v9519_v0  ;;  %8030 = vmatprep.mubr.bf16.mxu1 %v11105_v29  ;;  %v9496_v0 = vcombine.high %v6406_v58, %v6410_v48  ;;  %v6411_v21 = vld [vmem:[#allocation9 + $0x970] sm:$0xff] }
 0x416   :  { %v6010_v52 = vpop.f32.mrf.mxu1  ;;  %8004 = vmatprep.subr.bf16.mxu1 %v9512_v47  ;;  %v9468_v47 = vcombine.high %v6376_v1, %v6380_v8  ;;  %v9467_v35 = vcombine.low %v6376_v1, %v6380_v8  ;;  %v9487_v43 = vcombine.low %v6398_v12, %v6402_v50  ;;  %v6502_v8 = vld [vmem:[#allocation9 + $0xf28] sm:$0xff] }
 0x417   :  { %v6233_v10 = vmax.f32 %v11170_v45, %v11218_v20  ;;  %v11224_v51 = vadd.f32 %v6010_v52, %v5958_v37  ;;  %8170 = vmatpush1.bf16.msra.mxu0 %v9363_v33  ;;  %v9495_v33 = vcombine.low %v6406_v58, %v6410_v48  ;;  %v9488_v37 = vcombine.high %v6398_v12, %v6402_v50  ;;  %v6364_v52 = vld [vmem:[#allocation9 + $0x678] sm:$0xff]  ;;  %v6514_v58 = vld [vmem:[#allocation9 + $0xfe8] sm:$0xff] }
 0x418   :  { %v6012_v27 = vpop.f32.mrf.mxu1  ;;  %8171 = vmatprep.subr.bf16.mxu0 %v9356_v13  ;;  %v6390_v13 = vld [vmem:[#allocation9 + $0x828] sm:$0xff]  ;;  %v9452_v48 = vcombine.high %v6360_v23, %v6364_v52  ;;  %v9451_v1 = vcombine.low %v6360_v23, %v6364_v52  ;;  %v6344_v12 = vld [vmem:[#allocation9 + $0x538] sm:$0xff] }
 0x419   :  { %v6234_v6 = vmax.f32 %v11174_v46, %v11224_v51  ;;  %v11229_v54 = vadd.f32 %v6012_v27, %v5960_v59  ;;  %8005 = vmatpush1.bf16.msra.mxu1 %v9511_v57  ;;  %v6394_v57 = vld [vmem:[#allocation9 + $0x868] sm:$0xff]  ;;  %v9459_v59 = vcombine.low %v6368_v7, %v6372_v26  ;;  %v6348_v50 = vld [vmem:[#allocation9 + $0x578] sm:$0xff] }
 0x41a   :  { %v6014_v36 = vpop.f32.mrf.mxu1  ;;  %8006 = vmatprep.subr.bf16.mxu1 %v9504_v3  ;;  %v9480_v3 = vcombine.high %v6390_v13, %v6394_v57  ;;  %v9479_v27 = vcombine.low %v6390_v13, %v6394_v57  ;;  %v6494_v7 = vld [vmem:[#allocation9 + $0xea8] sm:$0xff]  ;;  %v6336_v13 = vld [vmem:[#allocation9 + $0x4b8] sm:$0xff] }
 0x41b   :  { %v6235_v62 = vmax.f32 %v11177_v5, %v11229_v54  ;;  %v11233_v49 = vadd.f32 %v6014_v36, %v5962_v60  ;;  %8172 = vmatpush1.bf16.msra.mxu0 %v9355_v34  ;;  %v6510_v34 = vld [vmem:[#allocation9 + $0xfa8] sm:$0xff]  ;;  %v6356_v60 = vld [vmem:[#allocation9 + $0x5f8] sm:$0xff]  ;;  %v6511_v54 = vld [vmem:[#allocation9 + $0xfb0] sm:$0xff] }
 0x41c   :  { %8173 = vmatprep.subr.bf16.mxu0 %v9476_v53  ;;  %v6352_v53 = vld [vmem:[#allocation9 + $0x5b8] sm:$0xff]  ;;  %v6506_v36 = vld [vmem:[#allocation9 + $0xf68] sm:$0xff] }
 0x41d   :  { %v6236_v25 = vmax.f32 %v11179_v9, %v11233_v49  ;;  %8007 = vmatpush1.bf16.msra.mxu1 %v9503_v44  ;;  %v9600_v44 = vcombine.high %v6510_v34, %v6514_v58  ;;  %v6498_v26 = vld [vmem:[#allocation9 + $0xee8] sm:$0xff]  ;;  %v6340_v57 = vld [vmem:[#allocation9 + $0x4f8] sm:$0xff]  ;;  %v6507_v9 = vld [vmem:[#allocation9 + $0xf70] sm:$0xff] }
 0x41e   :  { %8008 = vmatprep.subr.bf16.mxu1 %v9496_v0  ;;  %v9444_v0 = vcombine.high %v6352_v53, %v6356_v60  ;;  %v6486_v23 = vld [vmem:[#allocation9 + $0xe28] sm:$0xff] }
 0x41f   :  { %8174 = vmatpush2.bf16.msra.mxu0 %v9475_v63  ;;  %v9599_v63 = vcombine.low %v6510_v34, %v6514_v58  ;;  %v6490_v52 = vld [vmem:[#allocation9 + $0xe68] sm:$0xff]  ;;  %v6328_v34 = vld [vmem:[#allocation9 + $0x438] sm:$0xff] }
 0x420   :  { %8175 = vmatprep.subr.bf16.mxu0 %v9468_v47  ;;  %v9592_v47 = vcombine.high %v6502_v8, %v6506_v36  ;;  %v6332_v58 = vld [vmem:[#allocation9 + $0x478] sm:$0xff] }
 0x421   :  { %8009 = vmatpush1.bf16.msra.mxu1 %v9495_v33  ;;  %v9443_v33 = vcombine.low %v6352_v53, %v6356_v60  ;;  %v6478_v53 = vld [vmem:[#allocation9 + $0xda8] sm:$0xff] }
 0x422   :  { %8010 = vmatprep.subr.bf16.mxu1 %v9488_v37  ;;  %v9436_v37 = vcombine.high %v6344_v12, %v6348_v50  ;;  %v6482_v60 = vld [vmem:[#allocation9 + $0xde8] sm:$0xff] }
 0x423   :  { %8176 = vmatpush2.bf16.msra.mxu0 %v9467_v35  ;;  %v9591_v35 = vcombine.low %v6502_v8, %v6506_v36  ;;  %v9568_v8 = vcombine.high %v6478_v53, %v6482_v60  ;;  %v9419_v36 = vcombine.low %v6328_v34, %v6332_v58 }
 0x424   :  { %8177 = vmatprep.subr.bf16.mxu0 %v9460_v39  ;;  %v9584_v39 = vcombine.high %v6494_v7, %v6498_v26 }
 0x425   :  { %8011 = vmatpush1.bf16.msra.mxu1 %v9487_v43  ;;  %v9435_v43 = vcombine.low %v6344_v12, %v6348_v50  ;;  %v9567_v12 = vcombine.low %v6478_v53, %v6482_v60  ;;  %v6051_v50 = vpop.f32.mrf.mxu0  ;;  %v6439_v53 = vld [vmem:[#allocation9 + $0xb30] sm:$0xff] }
 0x426   :  { %8012 = vmatprep.subr.bf16.mxu1 %v9480_v3  ;;  %v9428_v3 = vcombine.high %v6336_v13, %v6340_v57  ;;  %v6443_v60 = vld [vmem:[#allocation9 + $0xb70] sm:$0xff] }
 0x427   :  { %8178 = vmatpush2.bf16.msra.mxu0 %v9459_v59  ;;  %v9583_v59 = vcombine.low %v6494_v7, %v6498_v26  ;;  %v6466_v7 = vld [vmem:[#allocation9 + $0xce8] sm:$0xff] }
 0x428   :  { %8179 = vmatprep.subr.bf16.mxu0 %v9452_v48  ;;  %v9576_v48 = vcombine.high %v6486_v23, %v6490_v52 }
 0x429   :  { %8013 = vmatpush1.bf16.msra.mxu1 %v9479_v27  ;;  %v9427_v27 = vcombine.low %v6336_v13, %v6340_v57  ;;  %v6454_v13 = vld [vmem:[#allocation9 + $0xc28] sm:$0xff] }
 0x42a   :  { %8014 = vmatprep.subr.bf16.mxu1 %v9600_v44  ;;  %v9420_v44 = vcombine.high %v6328_v34, %v6332_v58  ;;  %v6458_v57 = vld [vmem:[#allocation9 + $0xc68] sm:$0xff]  ;;  %v6451_v34 = vld [vmem:[#allocation9 + $0xbf0] sm:$0xff] }
 0x42b   :  { %8180 = vmatpush2.bf16.msra.mxu0 %v9451_v1  ;;  %v9575_v1 = vcombine.low %v6486_v23, %v6490_v52  ;;  %v9544_v23 = vcombine.high %v6454_v13, %v6458_v57  ;;  %v11634_v52 = vld [vmem:[#allocation17_spill] sm:$0xff] }
 0x42c   :  { %8181 = vmatprep.subr.bf16.mxu0 %v9444_v0  ;;  %v6470_v0 = vld [vmem:[#allocation9 + $0xd28] sm:$0xff]  ;;  %v11614_v58 = vsub.s32 5, %v11634_v52 }
 0x42d   :  { %8015 = vmatpush2.bf16.msra.mxu1 %v9599_v63  ;;  %v6474_v63 = vld [vmem:[#allocation9 + $0xd68] sm:$0xff] }
 0x42e   :  { %8016 = vmatprep.subr.bf16.mxu1 %v9592_v47  ;;  %v9560_v47 = vcombine.high %v6470_v0, %v6474_v63  ;;  %v9559_v26 = vcombine.low %v6470_v0, %v6474_v63  ;;  %v6431_v63 = vld [vmem:[#allocation9 + $0xab0] sm:$0xff] }
 0x42f   :  { %8182 = vmatpush2.bf16.msra.mxu0 %v9443_v33  ;;  %v6462_v33 = vld [vmem:[#allocation9 + $0xca8] sm:$0xff] }
 0x430   :  { %8183 = vmatprep.subr.bf16.mxu0 %v9436_v37  ;;  %v6053_v37 = vpop.f32.mrf.mxu0 }
 0x431   :  { %8017 = vmatpush2.bf16.msra.mxu1 %v9591_v35  ;;  %v9552_v35 = vcombine.high %v6462_v33, %v6466_v7 }
 0x432   :  { %8018 = vmatprep.subr.bf16.mxu1 %v9584_v39  ;;  %v9551_v39 = vcombine.low %v6462_v33, %v6466_v7  ;;  %v9529_v7 = vcombine.low %v6439_v53, %v6443_v60 }
 0x433   :  { %8184 = vmatpush2.bf16.msra.mxu0 %v9435_v43  ;;  %v6055_v43 = vpop.f32.mrf.mxu0 }
 0x434   :  { %8185 = vmatprep.subr.bf16.mxu0 %v9428_v3  ;;  %v11615_v3 = vsub.s32 4, %v11634_v52 }
 0x435   :  { %8019 = vmatpush2.bf16.msra.mxu1 %v9583_v59  ;;  %v6447_v59 = vld [vmem:[#allocation9 + $0xbb0] sm:$0xff] }
 0x436   :  { %8020 = vmatprep.subr.bf16.mxu1 %v9576_v48  ;;  %v9543_v48 = vcombine.low %v6454_v13, %v6458_v57 }
 0x437   :  { %8186 = vmatpush2.bf16.msra.mxu0 %v9427_v27  ;;  %v4504_v27 = vrot.slane %v11141_v22, %v11615_v3 }
 0x438   :  { %8187 = vmatprep.subr.bf16.mxu0 %v9420_v44  ;;  %v4508_v44 = vrot.slane %v11141_v22, %v11614_v58 }
 0x439   :  { %8021 = vmatpush2.bf16.msra.mxu1 %v9575_v1  ;;  %v9537_v1 = vcombine.low %v6447_v59, %v6451_v34  ;;  %v6052_v0 = vadd.f32 %v6051_v50, %v4504_v27  ;;  %v6056_v13 = vadd.f32 %v6055_v43, %v4504_v27 }
 0x43a   :  { %8022 = vmatprep.subr.bf16.mxu1 %v9568_v8 }
 0x43b   :  { %8188 = vmatpush2.bf16.msra.mxu0 %v9419_v36  ;;  %v9530_v36 = vcombine.high %v6439_v53, %v6443_v60 }
 0x43d   :  { %8023 = vmatpush2.bf16.msra.mxu1 %v9567_v12 }
 0x43e   :  { %8190 = vmatmul.mubr.bf16.vlgmr.msra.gmra.mxu0 %v10887_v61  ;;  %8024 = vmatprep.subr.bf16.mxu1 %v9560_v47  ;;  %v6057_v61 = vpop.f32.mrf.mxu0  ;;  %v6054_v47 = vadd.f32 %v6053_v37, %v4508_v44 }
 0x43f   :  { %8199 = vmatprep.mubr.bf16.mxu0 %v10936_v56  ;;  %v9538_v56 = vcombine.high %v6447_v59, %v6451_v34  ;;  %v6058_v37 = vadd.f32 %v6057_v61, %v4508_v44  ;;  %v6415_v61 = vld [vmem:[#allocation9 + $0x9b0] sm:$0xff] }
 0x440   :  { %v6061_v8 = vpop.f32.mrf.mxu0 }
 0x441   :  { %8025 = vmatpush2.bf16.msra.mxu1 %v9559_v26  ;;  %v6062_v24 = vadd.f32 %v6061_v8, %v4504_v27 }
 0x442   :  { %8026 = vmatprep.subr.bf16.mxu1 %v9552_v35  ;;  %v6063_v26 = vpop.f32.mrf.mxu0 }
 0x444   :  { %v6065_v53 = vpop.f32.mrf.mxu0 }
 0x445   :  { %8027 = vmatpush2.bf16.msra.mxu1 %v9551_v39  ;;  %v6423_v39 = vld [vmem:[#allocation9 + $0xa30] sm:$0xff] }
 0x446   :  { %8200 = vmatmul.mubr.bf16.gmra.mxu0 %v10897_v17  ;;  %8028 = vmatprep.subr.bf16.mxu1 %v9544_v23  ;;  %v6435_v17 = vld [vmem:[#allocation9 + $0xaf0] sm:$0xff]  ;;  %v6067_v38 = vpop.f32.mrf.mxu0 }
 0x447   :  { %v9522_v22 = vcombine.high %v6431_v63, %v6435_v17  ;;  %v6427_v23 = vld [vmem:[#allocation9 + $0xa70] sm:$0xff] }
 0x448   :  { %v9514_v60 = vcombine.high %v6423_v39, %v6427_v23  ;;  %v9513_v8 = vcombine.low %v6423_v39, %v6427_v23  ;;  %v6503_v23 = vld [vmem:[#allocation9 + $0xf30] sm:$0xff] }
 0x449   :  { %8029 = vmatpush2.bf16.msra.mxu1 %v9543_v48 }
 0x44a   :  { %8104 = vmatprep.subr.bf16.mxu1 %v9538_v56  ;;  %v9521_v56 = vcombine.low %v6431_v63, %v6435_v17 }
 0x44c   :  { %v6104_v12 = vpop.f32.mrf.mxu1  ;;  %8031 = vmatmul.mubr.bf16.vlgmr.msra.gmra.mxu1 %v11108_v2 }
 0x44d   :  { %v6105_v33 = vadd.f32 %v6104_v12, %v6052_v0  ;;  %8040 = vmatprep.mubr.bf16.mxu1 %v11116_v42  ;;  %8105 = vmatpush1.bf16.msra.mxu1 %v9537_v1  ;;  %v6419_v1 = vld [vmem:[#allocation9 + $0x9f0] sm:$0xff]  ;;  %v6066_v0 = vadd.f32 %v6065_v53, %v4504_v27 }
 0x44e   :  { %v6106_v35 = vpop.f32.mrf.mxu1  ;;  %8106 = vmatprep.subr.bf16.mxu1 %v9530_v36  ;;  %v6064_v36 = vadd.f32 %v6063_v26, %v4508_v44  ;;  %v6407_v12 = vld [vmem:[#allocation9 + $0x930] sm:$0xff] }
 0x44f   :  { %v11253_v50 = vmax.f32 %v6229_v15, %v6105_v33  ;;  %v6107_v57 = vadd.f32 %v6106_v35, %v6054_v47  ;;  %v9498_v27 = vcombine.high %v6407_v12, %v6411_v21  ;;  %v6403_v35 = vld [vmem:[#allocation9 + $0x8f0] sm:$0xff]  ;;  %v9497_v51 = vcombine.low %v6407_v12, %v6411_v21 }
 0x450   :  { %v6108_v59 = vpop.f32.mrf.mxu1  ;;  %v6487_v53 = vld [vmem:[#allocation9 + $0xe30] sm:$0xff] }
 0x451   :  { %v11258_v34 = vmax.f32 %v6230_v18, %v6107_v57  ;;  %v6109_v48 = vadd.f32 %v6108_v59, %v6056_v13  ;;  %8107 = vmatpush1.bf16.msra.mxu1 %v9529_v7  ;;  %v9505_v7 = vcombine.low %v6415_v61, %v6419_v1  ;;  %v6495_v59 = vld [vmem:[#allocation9 + $0xeb0] sm:$0xff] }
 0x452   :  { %v6110_v43 = vpop.f32.mrf.mxu1  ;;  %8108 = vmatprep.subr.bf16.mxu1 %v9522_v22  ;;  %v6395_v22 = vld [vmem:[#allocation9 + $0x870] sm:$0xff] }
 0x453   :  { %v11263_v31 = vmax.f32 %v6231_v28, %v6109_v48  ;;  %v6111_v15 = vadd.f32 %v6110_v43, %v6058_v37  ;;  %v9506_v28 = vcombine.high %v6415_v61, %v6419_v1  ;;  %v6499_v37 = vld [vmem:[#allocation9 + $0xef0] sm:$0xff]  ;;  %v9593_v48 = vcombine.low %v6503_v23, %v6507_v9 }
 0x454   :  { %v6114_v32 = vpop.f32.mrf.mxu1  ;;  %8041 = vmatmul.mubr.bf16.gmra.mxu1 %v11118_v40  ;;  %v6491_v43 = vld [vmem:[#allocation9 + $0xe70] sm:$0xff] }
 0x455   :  { %v11269_v14 = vmax.f32 %v6232_v16, %v6111_v15  ;;  %v6115_v18 = vadd.f32 %v6114_v32, %v6062_v24  ;;  %8109 = vmatpush1.bf16.msra.mxu1 %v9521_v56  ;;  %8136 = vmatprep.mubr.bf16.mxu1 %v11105_v29  ;;  %v6068_v16 = vadd.f32 %v6067_v38, %v4508_v44  ;;  %v6391_v44 = vld [vmem:[#allocation9 + $0x830] sm:$0xff] }
 0x456   :  { %v6116_v4 = vpop.f32.mrf.mxu1  ;;  %8110 = vmatprep.subr.bf16.mxu1 %v9514_v60  ;;  %v9482_v5 = vcombine.high %v6391_v44, %v6395_v22  ;;  %v9481_v57 = vcombine.low %v6391_v44, %v6395_v22  ;;  %v9586_v56 = vcombine.high %v6495_v59, %v6499_v37  ;;  %v9585_v60 = vcombine.low %v6495_v59, %v6499_v37  ;;  %v6479_v15 = vld [vmem:[#allocation9 + $0xdb0] sm:$0xff]  ;;  %v6436_v44 = vld [vmem:[#allocation9 + $0xaf8] sm:$0xff] }
 0x457   :  { %v11275_v63 = vmax.f32 %v6233_v10, %v6115_v18  ;;  %v6117_v17 = vadd.f32 %v6116_v4, %v6064_v36  ;;  %v6399_v10 = vld [vmem:[#allocation9 + $0x8b0] sm:$0xff]  ;;  %v9578_v24 = vcombine.high %v6487_v53, %v6491_v43  ;;  %v9577_v1 = vcombine.low %v6487_v53, %v6491_v43  ;;  %v6412_v59 = vld [vmem:[#allocation9 + $0x978] sm:$0xff] }
 0x458   :  { %v6118_v55 = vpop.f32.mrf.mxu1  ;;  %v9489_v13 = vcombine.low %v6399_v10, %v6403_v35  ;;  %v6483_v61 = vld [vmem:[#allocation9 + $0xdf0] sm:$0xff]  ;;  %v6404_v53 = vld [vmem:[#allocation9 + $0x8f8] sm:$0xff] }
 0x459   :  { %v11280_v47 = vmax.f32 %v6234_v6, %v6117_v17  ;;  %v6119_v33 = vadd.f32 %v6118_v55, %v6066_v0  ;;  %8111 = vmatpush1.bf16.msra.mxu1 %v9513_v8  ;;  %v9490_v6 = vcombine.high %v6399_v10, %v6403_v35  ;;  %v9570_v36 = vcombine.high %v6479_v15, %v6483_v61  ;;  %v6471_v32 = vld [vmem:[#allocation9 + $0xd30] sm:$0xff]  ;;  %v6444_v10 = vld [vmem:[#allocation9 + $0xb78] sm:$0xff] }
 0x45a   :  { %v6120_v26 = vpop.f32.mrf.mxu1  ;;  %8112 = vmatprep.subr.bf16.mxu1 %v9506_v28  ;;  %v6475_v18 = vld [vmem:[#allocation9 + $0xd70] sm:$0xff]  ;;  %v9569_v8 = vcombine.low %v6479_v15, %v6483_v61  ;;  %v6396_v15 = vld [vmem:[#allocation9 + $0x878] sm:$0xff] }
 0x45b   :  { %v11285_v45 = vmax.f32 %v6235_v62, %v6119_v33  ;;  %v6121_v20 = vadd.f32 %v6120_v26, %v6068_v16  ;;  %v6515_v62 = vld [vmem:[#allocation9 + $0xff0] sm:$0xff]  ;;  %v9562_v38 = vcombine.high %v6471_v32, %v6475_v18  ;;  %v9561_v0 = vcombine.low %v6471_v32, %v6475_v18  ;;  %v6448_v33 = vld [vmem:[#allocation9 + $0xbb8] sm:$0xff] }
 0x45c   :  { %v9602_v39 = vcombine.high %v6511_v54, %v6515_v62  ;;  %v9601_v49 = vcombine.low %v6511_v54, %v6515_v62  ;;  %v6463_v4 = vld [vmem:[#allocation9 + $0xcb0] sm:$0xff]  ;;  %v6428_v54 = vld [vmem:[#allocation9 + $0xa78] sm:$0xff] }
 0x45d   :  { %11635 = vst [vmem:[#allocation25_spill] sm:$0xff] %v11285_v45  ;;  %v11290_v46 = vmax.f32 %v6236_v25, %v6121_v20  ;;  %8113 = vmatpush1.bf16.msra.mxu1 %v9505_v7  ;;  %v9594_v25 = vcombine.high %v6503_v23, %v6507_v9  ;;  %v6467_v28 = vld [vmem:[#allocation9 + $0xcf0] sm:$0xff]  ;;  %v6452_v7 = vld [vmem:[#allocation9 + $0xbf8] sm:$0xff] }
 0x45e   :  { %8114 = vmatprep.subr.bf16.mxu1 %v9498_v27  ;;  %v9554_v17 = vcombine.high %v6463_v4, %v6467_v28  ;;  %v6455_v12 = vld [vmem:[#allocation9 + $0xc30] sm:$0xff]  ;;  %v9553_v55 = vcombine.low %v6463_v4, %v6467_v28  ;;  %v9540_v27 = vcombine.high %v6448_v33, %v6452_v7  ;;  %v6440_v20 = vld [vmem:[#allocation9 + $0xb38] sm:$0xff]  ;;  %v9539_v35 = vcombine.low %v6448_v33, %v6452_v7 }
 0x45f   :  { %v6459_v21 = vld [vmem:[#allocation9 + $0xc70] sm:$0xff]  ;;  %v9531_v22 = vcombine.low %v6440_v20, %v6444_v10  ;;  %v6420_v23 = vld [vmem:[#allocation9 + $0x9f8] sm:$0xff] }
 0x460   :  { %v9546_v16 = vcombine.high %v6455_v12, %v6459_v21  ;;  %v9545_v26 = vcombine.low %v6455_v12, %v6459_v21 }
 0x461   :  { %8115 = vmatpush1.bf16.msra.mxu1 %v9497_v51  ;;  %v9532_v51 = vcombine.high %v6440_v20, %v6444_v10 }
 0x462   :  { %8116 = vmatprep.subr.bf16.mxu1 %v9490_v6  ;;  %v6432_v6 = vld [vmem:[#allocation9 + $0xab8] sm:$0xff] }
 0x463   :  { %v9523_v62 = vcombine.low %v6432_v6, %v6436_v44 }
 0x465   :  { %8117 = vmatpush1.bf16.msra.mxu1 %v9489_v13  ;;  %v9524_v13 = vcombine.high %v6432_v6, %v6436_v44 }
 0x466   :  { %8118 = vmatprep.subr.bf16.mxu1 %v9482_v5  ;;  %v6424_v5 = vld [vmem:[#allocation9 + $0xa38] sm:$0xff] }
 0x467   :  { %v9515_v9 = vcombine.low %v6424_v5, %v6428_v54 }
 0x469   :  { %8119 = vmatpush1.bf16.msra.mxu1 %v9481_v57  ;;  %v9516_v57 = vcombine.high %v6424_v5, %v6428_v54 }
 0x46a   :  { %8120 = vmatprep.subr.bf16.mxu1 %v9602_v39  ;;  %v6416_v39 = vld [vmem:[#allocation9 + $0x9b8] sm:$0xff] }
 0x46b   :  { %v9507_v37 = vcombine.low %v6416_v39, %v6420_v23 }
 0x46d   :  { %8121 = vmatpush2.bf16.msra.mxu1 %v9601_v49  ;;  %v9508_v49 = vcombine.high %v6416_v39, %v6420_v23 }
 0x46e   :  { %8122 = vmatprep.subr.bf16.mxu1 %v9594_v25  ;;  %v6408_v25 = vld [vmem:[#allocation9 + $0x938] sm:$0xff] }
 0x46f   :  { %v9499_v43 = vcombine.low %v6408_v25, %v6412_v59 }
 0x471   :  { %8123 = vmatpush2.bf16.msra.mxu1 %v9593_v48  ;;  %v9500_v48 = vcombine.high %v6408_v25, %v6412_v59 }
 0x472   :  { %8124 = vmatprep.subr.bf16.mxu1 %v9586_v56  ;;  %v6400_v56 = vld [vmem:[#allocation9 + $0x8b8] sm:$0xff] }
 0x473   :  { %v9491_v61 = vcombine.low %v6400_v56, %v6404_v53 }
 0x475   :  { %8125 = vmatpush2.bf16.msra.mxu1 %v9585_v60  ;;  %v9492_v60 = vcombine.high %v6400_v56, %v6404_v53 }
 0x476   :  { %8126 = vmatprep.subr.bf16.mxu1 %v9578_v24  ;;  %v6392_v24 = vld [vmem:[#allocation9 + $0x838] sm:$0xff] }
 0x477   :  { %v9483_v32 = vcombine.low %v6392_v24, %v6396_v15 }
 0x479   :  { %8127 = vmatpush2.bf16.msra.mxu1 %v9577_v1  ;;  %v6512_v1 = vld [vmem:[#allocation9 + $0xfb8] sm:$0xff] }
 0x47a   :  { %8128 = vmatprep.subr.bf16.mxu1 %v9570_v36  ;;  %v6516_v36 = vld [vmem:[#allocation9 + $0xff8] sm:$0xff] }
 0x47b   :  { %v9604_v18 = vcombine.high %v6512_v1, %v6516_v36  ;;  %v9603_v4 = vcombine.low %v6512_v1, %v6516_v36 }
 0x47d   :  { %8129 = vmatpush2.bf16.msra.mxu1 %v9569_v8  ;;  %v6504_v8 = vld [vmem:[#allocation9 + $0xf38] sm:$0xff] }
 0x47e   :  { %8130 = vmatprep.subr.bf16.mxu1 %v9562_v38  ;;  %v6508_v38 = vld [vmem:[#allocation9 + $0xf78] sm:$0xff] }
 0x47f   :  { %v9596_v28 = vcombine.high %v6504_v8, %v6508_v38  ;;  %v9595_v12 = vcombine.low %v6504_v8, %v6508_v38 }
 0x481   :  { %8131 = vmatpush2.bf16.msra.mxu1 %v9561_v0  ;;  %v6496_v0 = vld [vmem:[#allocation9 + $0xeb8] sm:$0xff] }
 0x482   :  { %8132 = vmatprep.subr.bf16.mxu1 %v9554_v17  ;;  %v6500_v17 = vld [vmem:[#allocation9 + $0xef8] sm:$0xff] }
 0x483   :  { %v9588_v21 = vcombine.high %v6496_v0, %v6500_v17  ;;  %v9587_v33 = vcombine.low %v6496_v0, %v6500_v17 }
 0x485   :  { %8133 = vmatpush2.bf16.msra.mxu1 %v9553_v55  ;;  %v6488_v55 = vld [vmem:[#allocation9 + $0xe38] sm:$0xff] }
 0x486   :  { %8134 = vmatprep.subr.bf16.mxu1 %v9546_v16  ;;  %v6492_v16 = vld [vmem:[#allocation9 + $0xe78] sm:$0xff] }
 0x487   :  { %v9580_v7 = vcombine.high %v6488_v55, %v6492_v16  ;;  %v9579_v20 = vcombine.low %v6488_v55, %v6492_v16 }
 0x489   :  { %8135 = vmatpush2.bf16.msra.mxu1 %v9545_v26  ;;  %v6480_v26 = vld [vmem:[#allocation9 + $0xdb8] sm:$0xff] }
 0x48a   :  { %8210 = vmatprep.subr.bf16.mxu1 %v9540_v27  ;;  %v6484_v27 = vld [vmem:[#allocation9 + $0xdf8] sm:$0xff] }
 0x48b   :  { %v9572_v10 = vcombine.high %v6480_v26, %v6484_v27  ;;  %v9571_v6 = vcombine.low %v6480_v26, %v6484_v27 }
 0x48c   :  { %8137 = vmatmul.mubr.bf16.vlgmr.msra.gmra.mxu1 %v11108_v2  ;;  %v11309_v56 = vpop.f32.mrf.mxu1 }
 0x48d   :  { %8146 = vmatprep.mubr.bf16.mxu1 %v11116_v42  ;;  %8211 = vmatpush1.bf16.msra.mxu1 %v9539_v35  ;;  %v6472_v35 = vld [vmem:[#allocation9 + $0xd38] sm:$0xff] }
 0x48e   :  { %8212 = vmatprep.subr.bf16.mxu1 %v9532_v51  ;;  %v6476_v51 = vld [vmem:[#allocation9 + $0xd78] sm:$0xff] }
 0x48f   :  { %v9564_v44 = vcombine.high %v6472_v35, %v6476_v51  ;;  %v9563_v5 = vcombine.low %v6472_v35, %v6476_v51 }
 0x491   :  { %8213 = vmatpush1.bf16.msra.mxu1 %v9531_v22  ;;  %v6464_v22 = vld [vmem:[#allocation9 + $0xcb8] sm:$0xff] }
 0x492   :  { %8214 = vmatprep.subr.bf16.mxu1 %v9524_v13  ;;  %v6468_v13 = vld [vmem:[#allocation9 + $0xcf8] sm:$0xff] }
 0x493   :  { %v9556_v54 = vcombine.high %v6464_v22, %v6468_v13  ;;  %v9555_v39 = vcombine.low %v6464_v22, %v6468_v13 }
 0x494   :  { %8147 = vmatmul.mubr.bf16.gmra.mxu1 %v11118_v40 }
 0x495   :  { %8215 = vmatpush1.bf16.msra.mxu1 %v9523_v62  ;;  %8242 = vmatprep.mubr.bf16.mxu1 %v11105_v29  ;;  %v9484_v29 = vcombine.high %v6392_v24, %v6396_v15  ;;  %v6456_v62 = vld [vmem:[#allocation9 + $0xc38] sm:$0xff] }
 0x496   :  { %8216 = vmatprep.subr.bf16.mxu1 %v9516_v57  ;;  %v6460_v57 = vld [vmem:[#allocation9 + $0xc78] sm:$0xff] }
 0x497   :  { %v9548_v23 = vcombine.high %v6456_v62, %v6460_v57 }
 0x499   :  { %8217 = vmatpush1.bf16.msra.mxu1 %v9515_v9  ;;  %v9547_v9 = vcombine.low %v6456_v62, %v6460_v57 }
 0x49a   :  { %8218 = vmatprep.subr.bf16.mxu1 %v9508_v49  ;;  %v11299_v49 = vpop.f32.mrf.mxu0 }
 0x49c   :  { %v11301_v25 = vpop.f32.mrf.mxu0 }
 0x49d   :  { %8219 = vmatpush1.bf16.msra.mxu1 %v9507_v37 }
 0x49e   :  { %8220 = vmatprep.subr.bf16.mxu1 %v9500_v48  ;;  %v11303_v59 = vpop.f32.mrf.mxu0 }
 0x4a0   :  { %v11305_v37 = vpop.f32.mrf.mxu0 }
 0x4a1   :  { %8221 = vmatpush1.bf16.msra.mxu1 %v9499_v43  ;;  %v11313_v43 = vpop.f32.mrf.mxu1 }
 0x4a2   :  { %8222 = vmatprep.subr.bf16.mxu1 %v9492_v60  ;;  %v11307_v48 = vpop.f32.mrf.mxu0 }
 0x4a4   :  { %v11311_v53 = vpop.f32.mrf.mxu0 }
 0x4a5   :  { %8223 = vmatpush1.bf16.msra.mxu1 %v9491_v61 }
 0x4a6   :  { %8224 = vmatprep.subr.bf16.mxu1 %v9484_v29 }
 0x4a9   :  { %8225 = vmatpush1.bf16.msra.mxu1 %v9483_v32 }
 0x4aa   :  { %8226 = vmatprep.subr.bf16.mxu1 %v9604_v18 }
 0x4ad   :  { %8227 = vmatpush2.bf16.msra.mxu1 %v9603_v4 }
 0x4ae   :  { %8228 = vmatprep.subr.bf16.mxu1 %v9596_v28 }
 0x4b1   :  { %8229 = vmatpush2.bf16.msra.mxu1 %v9595_v12 }
 0x4b2   :  { %8230 = vmatprep.subr.bf16.mxu1 %v9588_v21 }
 0x4b5   :  { %8231 = vmatpush2.bf16.msra.mxu1 %v9587_v33 }
 0x4b6   :  { %8232 = vmatprep.subr.bf16.mxu1 %v9580_v7 }
 0x4b9   :  { %8233 = vmatpush2.bf16.msra.mxu1 %v9579_v20 }
 0x4ba   :  { %8234 = vmatprep.subr.bf16.mxu1 %v9572_v10 }
 0x4bd   :  { %8235 = vmatpush2.bf16.msra.mxu1 %v9571_v6 }
 0x4be   :  { %8236 = vmatprep.subr.bf16.mxu1 %v9564_v44 }
 0x4c1   :  { %8237 = vmatpush2.bf16.msra.mxu1 %v9563_v5 }
 0x4c2   :  { %8238 = vmatprep.subr.bf16.mxu1 %v9556_v54 }
 0x4c5   :  { %8239 = vmatpush2.bf16.msra.mxu1 %v9555_v39 }
 0x4c6   :  { %8240 = vmatprep.subr.bf16.mxu1 %v9548_v23 }
 0x4c9   :  { %8241 = vmatpush2.bf16.msra.mxu1 %v9547_v9 }
 0x4cc   :  { %8243 = vmatmul.mubr.bf16.vlgmr.msra.gmra.mxu1 %v11108_v2  ;;  %v11315_v2 = vpop.f32.mrf.mxu0 }
 0x4cd   :  { %8252 = vmatprep.mubr.bf16.mxu1 %v11116_v42  ;;  %v11317_v42 = vpop.f32.mrf.mxu1 }
 0x4cf   :  { %v11323_v24 = vpop.f32.mrf.mxu1 }
 0x4d1   :  { %v11327_v61 = vpop.f32.mrf.mxu1 }
 0x4d3   :  { %v11331_v1 = vpop.f32.mrf.mxu1 }
 0x4d4   :  { %8253 = vmatmul.mubr.bf16.gmra.mxu1 %v11118_v40  ;;  %v11319_v40 = vpop.f32.mrf.mxu0 }
 0x4d5   :  { %v11335_v32 = vpop.f32.mrf.mxu1 }
 0x4d6   :  { %v11321_v60 = vpop.f32.mrf.mxu0 }
 0x4d7   :  { %v11339_v8 = vpop.f32.mrf.mxu1 }
 0x4d8   :  { %v11325_v15 = vpop.f32.mrf.mxu0 }
 0x4d9   :  { %v11341_v38 = vpop.f32.mrf.mxu1 }
 0x4da   :  { %v11329_v29 = vpop.f32.mrf.mxu0  ;;  %11636 = vst [vmem:[#allocation24_spill] sm:$0xff] %v11341_v38 }
 0x4db   :  { %v11345_v28 = vpop.f32.mrf.mxu1 }
 0x4dc   :  { %v11333_v36 = vpop.f32.mrf.mxu0  ;;  %11637 = vst [vmem:[#allocation20_spill] sm:$0xff] %v11345_v28 }
 0x4dd   :  { %v11349_v17 = vpop.f32.mrf.mxu1 }
 0x4de   :  { %v11337_v18 = vpop.f32.mrf.mxu0  ;;  %11638 = vst [vmem:[#allocation21_spill] sm:$0xff] %v11349_v17  ;;  %v6517_v17 = vld [vmem:[#allocation11 + $0x8] sm:$0xff] }
 0x4df   :  { %v11355_v55 = vpop.f32.mrf.mxu1 }
 0x4e0   :  { %v11343_v4 = vpop.f32.mrf.mxu0  ;;  %11639 = vst [vmem:[#allocation18_spill] sm:$0xff] %v11355_v55 }
 0x4e1   :  { %v11359_v33 = vpop.f32.mrf.mxu1 }
 0x4e2   :  { %v11347_v0 = vpop.f32.mrf.mxu0  ;;  %11640 = vst [vmem:[#allocation19_spill] sm:$0xff] %v11359_v33 }
 0x4e3   :  { %v11363_v26 = vpop.f32.mrf.mxu1 }
 0x4e4   :  { %v11351_v12 = vpop.f32.mrf.mxu0  ;;  %11641 = vst [vmem:[#allocation23_spill] sm:$0xff] %v11363_v26 }
 0x4e5   :  { %v11367_v20 = vpop.f32.mrf.mxu1 }
 0x4e6   :  { %v11353_v21 = vpop.f32.mrf.mxu0  ;;  %11642 = vst [vmem:[#allocation22_spill] sm:$0xff] %v11367_v20 }
 0x4e7   :  { %v11371_v35 = vpop.f32.mrf.mxu1 }
 0x4e8   :  { %v11357_v16 = vpop.f32.mrf.mxu0  ;;  %11643 = vst [vmem:[#allocation17_spill] sm:$0xff] %v11371_v35 }
 0x4ea   :  { %v11361_v7 = vpop.f32.mrf.mxu0 }
 0x4ec   :  { %v11365_v27 = vpop.f32.mrf.mxu0 }
 0x4ee   :  { %v11369_v10 = vpop.f32.mrf.mxu0 }
 0x4f0   :  { %v11375_v6 = vpop.f32.mrf.mxu0 }
 0x4f2   :  { %v11379_v22 = vpop.f32.mrf.mxu0 }
 0x4f4   :  { %v11383_v5 = vpop.f32.mrf.mxu0 }
 0x4f6   :  { %v11385_v54 = vpop.f32.mrf.mxu0 }
 0x4f8   :  { %v11389_v57 = vpop.f32.mrf.mxu0 }
 0x4fa   :  { %v11393_v23 = vpop.f32.mrf.mxu0 }
 0x4fc   :  { %v11397_v58 = vpop.f32.mrf.mxu0 }
 0x4fd   :  { %11649 = vst [vmem:[#allocation31_spill] sm:$0xff] %v11397_v58 }
 0x4fe   :  { %v11401_v45 = vpop.f32.mrf.mxu0 }
 0x4ff   :  { %11651 = vst [vmem:[#allocation33_spill] sm:$0xff] %v11401_v45 }
 0x500   :  { %v11407_v26 = vpop.f32.mrf.mxu0 }
 0x501   :  { %11654 = vst [vmem:[#allocation36_spill] sm:$0xff] %v11407_v26  ;;  %v6530_v26 = vrot.slane %v6517_v17, %v11632_v30 }
 0x502   :  { %v11412_v33 = vpop.f32.mrf.mxu0 }
 0x503   :  { %11656 = vst [vmem:[#allocation38_spill] sm:$0xff] %v11412_v33  ;;  %v6526_v33 = vrot.slane %v6517_v17, %v11631_v19  ;;  %v11661_v19 = vsub.s32 4, %v11634_v52 }
 0x504   :  { %v11417_v28 = vpop.f32.mrf.mxu0 }
 0x505   :  { %11658 = vst [vmem:[#allocation40_spill] sm:$0xff] %v11417_v28  ;;  %v6538_v28 = vrot.slane %v6517_v17, %v11661_v19 }
 0x50c   :  { %v11373_v51 = vpop.f32.mrf.mxu1 }
 0x50e   :  { %v11377_v44 = vpop.f32.mrf.mxu1 }
 0x50f   :  { %11644 = vst [vmem:[#allocation26_spill] sm:$0xff] %v11377_v44  ;;  %v11419_v44 = vpop.f32.mrf.mxu0 }
 0x510   :  { %v11381_v13 = vpop.f32.mrf.mxu1  ;;  %11659 = vst [vmem:[#allocation41_spill] sm:$0xff] %v11419_v44 }
 0x511   :  { %11645 = vst [vmem:[#allocation27_spill] sm:$0xff] %v11381_v13  ;;  %v10425_v13 = vld [vmem:[#allocation11] sm:$0xff]  ;;  %v11437_v30 = vpop.f32.mrf.mxu0 }
 0x512   :  { %v11387_v62 = vpop.f32.mrf.mxu1 }
 0x513   :  { %11646 = vst [vmem:[#allocation28_spill] sm:$0xff] %v11387_v62 }
 0x514   :  { %v11391_v39 = vpop.f32.mrf.mxu1 }
 0x515   :  { %11647 = vst [vmem:[#allocation29_spill] sm:$0xff] %v11391_v39  ;;  %v4511_v39 = vsub.s32 6, %v11634_v52 }
 0x516   :  { %v11395_v9 = vpop.f32.mrf.mxu1 }
 0x517   :  { %11648 = vst [vmem:[#allocation30_spill] sm:$0xff] %v11395_v9  ;;  %v4515_v9 = vsub.s32 7, %v11634_v52 }
 0x518   :  { %v11399_v3 = vpop.f32.mrf.mxu1 }
 0x519   :  { %11650 = vst [vmem:[#allocation32_spill] sm:$0xff] %v11399_v3  ;;  %v4512_v3 = vrot.slane %v10425_v13, %v4511_v39 }
 0x51a   :  { %v11403_v35 = vpop.f32.mrf.mxu1 }
 0x51b   :  { %11652 = vst [vmem:[#allocation34_spill] sm:$0xff] %v11403_v35  ;;  %v4516_v35 = vrot.slane %v10425_v13, %v4515_v9  ;;  %v6162_v58 = vadd.f32 %v11303_v59, %v4512_v3 }
 0x51d   :  { %v6160_v45 = vadd.f32 %v11301_v25, %v4516_v35  ;;  %v6164_v13 = vadd.f32 %v11305_v37, %v4516_v35  ;;  %v6170_v44 = vadd.f32 %v11311_v53, %v4516_v35 }
 0x51f   :  { %v6213_v25 = vadd.f32 %v11313_v43, %v6160_v45  ;;  %v6217_v59 = vadd.f32 %v11323_v24, %v6164_v13  ;;  %v6223_v37 = vadd.f32 %v11331_v1, %v6170_v44  ;;  %v6215_v45 = vadd.f32 %v11317_v42, %v6162_v58  ;;  %v11666_v13 = vld [vmem:[#allocation38_spill] sm:$0xff] }
 0x520   :  { %v7886_v24 = vadd.f32 %v11343_v4, %v6526_v33  ;;  %v7980_v44 = vadd.f32 %v11353_v21, %v6530_v26  ;;  %v7984_v4 = vadd.f32 %v11361_v7, %v6530_v26  ;;  %v7994_v7 = vadd.f32 %v11379_v22, %v6530_v26 }
 0x521   :  { %v11469_v58 = vmax.f32 %v11280_v47, %v6223_v37 }
 0x54c   :  { %v11405_v20 = vpop.f32.mrf.mxu1 }
 0x54d   :  { %11653 = vst [vmem:[#allocation35_spill] sm:$0xff] %v11405_v20  ;;  %v6522_v20 = vrot.slane %v6517_v17, %v11630_v11  ;;  %v6168_v11 = vadd.f32 %v11307_v48, %v4512_v3  ;;  %v7876_v48 = vadd.f32 %v11325_v15, %v6526_v33  ;;  %v11457_v15 = vadd.f32 %v11351_v12, %v6526_v33 }
 0x54e   :  { %v11409_v62 = vpop.f32.mrf.mxu1  ;;  %v11476_v12 = vrot.slane %v6517_v17, %v4515_v9 }
 0x54f   :  { %11655 = vst [vmem:[#allocation37_spill] sm:$0xff] %v11409_v62  ;;  %v6158_v62 = vadd.f32 %v11299_v49, %v4512_v3  ;;  %v6174_v49 = vadd.f32 %v11319_v40, %v4516_v35  ;;  %v11662_v40 = vsub.s32 5, %v11634_v52  ;;  %v7884_v19 = vadd.f32 %v11337_v18, %v6522_v20 }
 0x550   :  { %v11415_v55 = vpop.f32.mrf.mxu1  ;;  %v6221_v43 = vadd.f32 %v11327_v61, %v6168_v11  ;;  %v7888_v1 = vadd.f32 %v11347_v0, %v6522_v20  ;;  %v11463_v18 = vmax.f32 %v11258_v34, %v6213_v25  ;;  %v8100_v11 = vadd.f32 %v11666_v13, %v6538_v28 }
 0x551   :  { %11657 = vst [vmem:[#allocation39_spill] sm:$0xff] %v11415_v55  ;;  %v6534_v55 = vrot.slane %v6517_v17, %v11633_v41  ;;  %v7874_v41 = vadd.f32 %v11321_v60, %v6522_v20  ;;  %v6542_v35 = vrot.slane %v6517_v17, %v11662_v40  ;;  %v6211_v60 = vadd.f32 %v11309_v56, %v6158_v62 }
 0x552   :  { %v11422_v38 = vpop.f32.mrf.mxu1  ;;  %v11466_v56 = vmax.f32 %v11269_v14, %v6217_v59  ;;  %v6227_v0 = vadd.f32 %v11339_v8, %v6174_v49  ;;  %v11483_v14 = vmax.f32 %v11263_v31, %v6215_v45  ;;  %v11486_v47 = vmax.f32 %v11275_v63, %v6221_v43  ;;  %v11667_v49 = vld [vmem:[#allocation24_spill] sm:$0xff]  ;;  %v11668_v59 = vld [vmem:[#allocation26_spill] sm:$0xff]  ;;  %v11672_v45 = vld [vmem:[#allocation21_spill] sm:$0xff] }
 0x553   :  { %11660 = vst [vmem:[#allocation42_spill] sm:$0xff] %v11422_v38  ;;  %v6172_v38 = vadd.f32 %v11315_v2, %v4512_v3  ;;  %v7878_v3 = vadd.f32 %v11329_v29, %v6522_v20  ;;  %v7880_v2 = vadd.f32 %v11333_v36, %v6526_v33  ;;  %v11459_v29 = vrot.slane %v6517_v17, %v4511_v39  ;;  %v8195_v36 = vpop.f32.mrf.mxu0  ;;  %v11665_v39 = vld [vmem:[#allocation36_spill] sm:$0xff] }
 0x554   :  { %v11443_v53 = vpop.f32.mrf.mxu1  ;;  %v7982_v61 = vadd.f32 %v11357_v16, %v6534_v55  ;;  %v7986_v21 = vadd.f32 %v11365_v27, %v6534_v55  ;;  %v11480_v34 = vmax.f32 %v11253_v50, %v6211_v60  ;;  %v7990_v33 = vadd.f32 %v11369_v10, %v6530_v26 }
 0x555   :  { %v7992_v16 = vadd.f32 %v11375_v6, %v6534_v55  ;;  %v11492_v8 = vadd.f32 %v11383_v5, %v6534_v55  ;;  %v8197_v17 = vpop.f32.mrf.mxu0  ;;  %v11497_v27 = vadd.f32 %v11335_v32, %v6172_v38  ;;  %v11506_v26 = vmax.f32 %v11290_v46, %v6227_v0  ;;  %v11663_v38 = vld [vmem:[#allocation31_spill] sm:$0xff]  ;;  %v11664_v5 = vld [vmem:[#allocation33_spill] sm:$0xff] }
 0x556   :  { %v11471_v42 = vpop.f32.mrf.mxu1  ;;  %v8311_v63 = vmax.f32 %v11480_v34, %v11463_v18  ;;  %v8086_v55 = vadd.f32 %v11385_v54, %v6538_v28  ;;  %v8088_v10 = vadd.f32 %v11389_v57, %v6542_v35  ;;  %v8033_v6 = vadd.f32 %v11373_v51, %v7980_v44  ;;  %v11669_v54 = vld [vmem:[#allocation35_spill] sm:$0xff]  ;;  %v11670_v57 = vld [vmem:[#allocation40_spill] sm:$0xff] }
 0x557   :  { %v8090_v32 = vadd.f32 %v11393_v23, %v6538_v28  ;;  %v8092_v22 = vadd.f32 %v11663_v38, %v6542_v35  ;;  %v8096_v62 = vadd.f32 %v11664_v5, %v6538_v28  ;;  %v8098_v9 = vadd.f32 %v11665_v39, %v6542_v35  ;;  %v8201_v46 = vpop.f32.mrf.mxu0  ;;  %v11671_v51 = vld [vmem:[#allocation20_spill] sm:$0xff]  ;;  %v11673_v44 = vld [vmem:[#allocation27_spill] sm:$0xff]  ;;  %v11674_v5 = vld [vmem:[#allocation18_spill] sm:$0xff] }
 0x558   :  { %v11499_v31 = vpop.f32.mrf.mxu1  ;;  %v7927_v25 = vadd.f32 %v11667_v49, %v7874_v41  ;;  %v8035_v37 = vadd.f32 %v11668_v59, %v7982_v61  ;;  %v8139_v40 = vadd.f32 %v11669_v54, %v8086_v55  ;;  %v11520_v60 = vadd.f32 %v11670_v57, %v6542_v35  ;;  %v11675_v28 = vld [vmem:[#allocation41_spill] sm:$0xff]  ;;  %v11677_v59 = vld [vmem:[#allocation19_spill] sm:$0xff]  ;;  %v11679_v57 = vld [vmem:[#allocation28_spill] sm:$0xff] }
 0x559   :  { %v7929_v23 = vadd.f32 %v11671_v51, %v7876_v48  ;;  %v7931_v43 = vadd.f32 %v11672_v45, %v7878_v3  ;;  %v8037_v0 = vadd.f32 %v11673_v44, %v7984_v4  ;;  %v7933_v39 = vadd.f32 %v11674_v5, %v7880_v2  ;;  %v11676_v49 = vld [vmem:[#allocation37_spill] sm:$0xff]  ;;  %v11678_v54 = vld [vmem:[#allocation23_spill] sm:$0xff]  ;;  %v8203_v4 = vpop.f32.mrf.mxu0 }
 0x55a   :  { %v8154_v38 = vpop.f32.mrf.mxu1  ;;  %v8192_v41 = vadd.f32 %v11675_v28, %v11459_v29  ;;  %v8263_v13 = vmax.f32 %v7927_v25, %v8033_v6  ;;  %v8141_v61 = vadd.f32 %v11676_v49, %v8088_v10  ;;  %v7937_v55 = vadd.f32 %v11677_v59, %v7884_v19  ;;  %v11680_v2 = vld [vmem:[#allocation39_spill] sm:$0xff]  ;;  %v11681_v28 = vld [vmem:[#allocation22_spill] sm:$0xff]  ;;  %v11682_v19 = vld [vmem:[#allocation29_spill] sm:$0xff] }
 0x55b   :  { %v7939_v35 = vadd.f32 %v11678_v54, %v7886_v24  ;;  %v8194_v48 = vadd.f32 %v11437_v30, %v11476_v12  ;;  %v8039_v3 = vadd.f32 %v11679_v57, %v7986_v21  ;;  %v8264_v45 = vmax.f32 %v7929_v23, %v8035_v37  ;;  %v11683_v54 = vld [vmem:[#allocation42_spill] sm:$0xff] }
 0x55c   :  { %v8271_v44 = vmax.f32 %v8263_v13, %v8139_v40  ;;  %v8143_v5 = vadd.f32 %v11680_v2, %v8090_v32  ;;  %v7941_v6 = vadd.f32 %v11681_v28, %v7888_v1  ;;  %v8196_v10 = vadd.f32 %v8195_v36, %v11459_v29  ;;  %v11684_v23 = vld [vmem:[#allocation30_spill] sm:$0xff]  ;;  %v8205_v13 = vpop.f32.mrf.mxu0 }
 0x55d   :  { %v8265_v25 = vmax.f32 %v7931_v43, %v8037_v0  ;;  %v8043_v49 = vadd.f32 %v11682_v19, %v7990_v33  ;;  %v8272_v59 = vmax.f32 %v8264_v45, %v8141_v61  ;;  %v8145_v30 = vadd.f32 %v11683_v54, %v8092_v22  ;;  %v11685_v61 = vld [vmem:[#allocation32_spill] sm:$0xff]  ;;  %v11686_v45 = vld [vmem:[#allocation34_spill] sm:$0xff] }
 0x55e   :  { %v8198_v37 = vadd.f32 %v8197_v17, %v11476_v12  ;;  %v8266_v40 = vmax.f32 %v7933_v39, %v8039_v3  ;;  %v8045_v32 = vadd.f32 %v11684_v23, %v7992_v16  ;;  %v8202_v22 = vadd.f32 %v8201_v46, %v11459_v29 }
 0x55f   :  { %v8273_v36 = vmax.f32 %v8265_v25, %v8143_v5  ;;  %v8151_v17 = vadd.f32 %v11471_v42, %v8098_v9  ;;  %v8204_v3 = vadd.f32 %v8203_v4, %v11476_v12  ;;  %v11687_v9 = vmax.f32 %v11483_v14, %v11466_v56  ;;  %v11688_v4 = vld [vmem:[#allocation17_spill] sm:$0xff] }
 0x560   :  { %v8274_v57 = vmax.f32 %v8266_v40, %v8145_v30  ;;  %v8206_v28 = vadd.f32 %v8205_v13, %v11459_v29  ;;  %v8155_v19 = vadd.f32 %v8154_v38, %v11520_v60 }
 0x58c   :  { %v8244_v51 = vpop.f32.mrf.mxu1 }
 0x58d   :  { %v8245_v20 = vadd.f32 %v8244_v51, %v8192_v41  ;;  %v8149_v41 = vadd.f32 %v11443_v53, %v8096_v62  ;;  %v8268_v51 = vmax.f32 %v7939_v35, %v8045_v32  ;;  %v7943_v35 = vadd.f32 %v11688_v4, %v11457_v15 }
 0x58e   :  { %v8246_v24 = vpop.f32.mrf.mxu1 }
 0x58f   :  { %v11539_v50 = vmax.f32 %v8271_v44, %v8245_v20  ;;  %v8247_v21 = vadd.f32 %v8246_v24, %v8194_v48  ;;  %v8267_v20 = vmax.f32 %v7937_v55, %v8043_v49  ;;  %v8047_v48 = vadd.f32 %v11685_v61, %v7994_v7  ;;  %v8207_v55 = vpop.f32.mrf.mxu0  ;;  %v11689_v24 = vld [vmem:[#allocation25_spill] sm:$0xff] }
 0x590   :  { %v8248_v1 = vpop.f32.mrf.mxu1  ;;  %v8153_v7 = vadd.f32 %v11499_v31, %v8100_v11  ;;  %v8208_v54 = vadd.f32 %v8207_v55, %v11476_v12 }
 0x591   :  { %v8249_v43 = vadd.f32 %v8248_v1, %v8196_v10  ;;  %v11544_v0 = vmax.f32 %v8272_v59, %v8247_v21  ;;  %v8312_v33 = vmax.f32 %v8311_v63, %v11539_v50  ;;  %v8049_v63 = vadd.f32 %v11686_v45, %v11492_v8 }
 0x592   :  { %v8250_v39 = vpop.f32.mrf.mxu1  ;;  %v8275_v44 = vmax.f32 %v8267_v20, %v8149_v41  ;;  %v8269_v8 = vmax.f32 %v7941_v6, %v8047_v48  ;;  %v8276_v10 = vmax.f32 %v8268_v51, %v8151_v17  ;;  %v6251_v59 = vmax.f32 %v11689_v24, %v11497_v27 }
 0x593   :  { %v11550_v16 = vmax.f32 %v8273_v36, %v8249_v43  ;;  %v8251_v53 = vadd.f32 %v8250_v39, %v8198_v37  ;;  %v8313_v62 = vmax.f32 %v8312_v33, %v11544_v0  ;;  %v8270_v30 = vmax.f32 %v7943_v35, %v8049_v63 }
 0x594   :  { %v8254_v46 = vpop.f32.mrf.mxu1  ;;  %v8277_v37 = vmax.f32 %v8269_v8, %v8153_v7  ;;  %v11690_v6 = vmax.f32 %v11486_v47, %v11469_v58  ;;  %v8326_v60 = vmax.f32 %v6251_v59, %v11506_v26 }
 0x595   :  { %v11557_v2 = vmax.f32 %v8274_v57, %v8251_v53  ;;  %v8255_v42 = vadd.f32 %v8254_v46, %v8202_v22  ;;  %8314 = vmax.xlane.f32.xlu1 %v8313_v62  ;;  %v8317_v5 = vmax.f32 %v11687_v9, %v11550_v16  ;;  %v8278_v23 = vmax.f32 %v8270_v30, %v8155_v19 }
 0x596   :  { %v8256_v25 = vpop.f32.mrf.mxu1 }
 0x597   :  { %v8283_v31 = vmax.f32 %v8275_v44, %v8255_v42  ;;  %v8257_v11 = vadd.f32 %v8256_v25, %v8204_v3  ;;  %v8318_v49 = vmax.f32 %v8317_v5, %v11557_v2 }
 0x598   :  { %v8258_v21 = vpop.f32.mrf.mxu1 }
 0x599   :  { %v8259_v15 = vadd.f32 %v8258_v21, %v8206_v28  ;;  %8319 = vmax.xlane.f32.xlu1 %v8318_v49  ;;  %v8284_v29 = vmax.f32 %v8276_v10, %v8257_v11  ;;  %v8322_v40 = vmax.f32 %v11690_v6, %v8283_v31 }
 0x59a   :  { %v8260_v38 = vpop.f32.mrf.mxu1 }
 0x59b   :  { %v8285_v32 = vmax.f32 %v8277_v37, %v8259_v15  ;;  %v8261_v41 = vadd.f32 %v8260_v38, %v8208_v54  ;;  %v8323_v1 = vmax.f32 %v8322_v40, %v8284_v29 }
 0x59d   :  { %v8286_v27 = vmax.f32 %v8278_v23, %v8261_v41  ;;  %8324 = vmax.xlane.f32.xlu0 %v8323_v1  ;;  %v8327_v12 = vmax.f32 %v8326_v60, %v8285_v32 }
 0x59f   :  { %v8328_v13 = vmax.f32 %v8327_v12, %v8286_v27 }
 0x5a1   :  { %8329 = vmax.xlane.f32.xlu0 %v8328_v13 }
 0x61e   :  { %v8315_v36 = vpop.xlane.xlu1 %8314 }
 0x61f   :  { %v8331_v43 = vsub.f32 %v11480_v34, %v8315_v36  ;;  %v8332_v33 = vsub.f32 %v11463_v18, %v8315_v36  ;;  %v8333_v22 = vsub.f32 %v11539_v50, %v8315_v36  ;;  %v8334_v50 = vsub.f32 %v11544_v0, %v8315_v36 }
 0x621   :  { %v8347_v20 = vmul.f32 1.442695, %v8331_v43  ;;  %v8349_v48 = vmul.f32 1.442695, %v8332_v33  ;;  %v8351_v57 = vmul.f32 1.442695, %v8333_v22 }
 0x622   :  { %v8320_v61 = vpop.xlane.xlu1 %8319  ;;  %v8353_v9 = vmul.f32 1.442695, %v8334_v50 }
 0x623   :  { %v8335_v17 = vsub.f32 %v11483_v14, %v8320_v61  ;;  %v8336_v39 = vsub.f32 %v11466_v56, %v8320_v61  ;;  %10384 = vpow2.f32 %v8347_v20  ;;  %v8337_v56 = vsub.f32 %v11550_v16, %v8320_v61 }
 0x624   :  { %10386 = vpow2.f32 %v8349_v48  ;;  %v8338_v16 = vsub.f32 %v11557_v2, %v8320_v61  ;;  %v10563_v61 = vmov 1983009808  }
 0x625   :  { %v8355_v53 = vmul.f32 1.442695, %v8335_v17  ;;  %v8357_v62 = vmul.f32 1.442695, %v8336_v39  ;;  %10388 = vpow2.f32 %v8351_v57  ;;  %v8359_v35 = vmul.f32 1.442695, %v8337_v56 }
 0x626   :  { %v8325_v3 = vpop.xlane.xlu0 %8324  ;;  %v8361_v10 = vmul.f32 1.442695, %v8338_v16  ;;  %v8486_v48 = vunpack.c.l.s4 %v10563_v61 }
 0x627   :  { %v8339_v51 = vsub.f32 %v11486_v47, %v8325_v3  ;;  %v8340_v34 = vsub.f32 %v11469_v58, %v8325_v3  ;;  %v8341_v18 = vsub.f32 %v8283_v31, %v8325_v3  ;;  %v8342_v45 = vsub.f32 %v8284_v29, %v8325_v3 }
 0x628   :  { %10390 = vpow2.f32 %v8355_v53  ;;  %v8487_v17 = vunpack.c.0.s8 %v8486_v48 }
 0x629   :  { %v8363_v63 = vmul.f32 1.442695, %v8339_v51  ;;  %v8365_v14 = vmul.f32 1.442695, %v8340_v34  ;;  %v8367_v44 = vmul.f32 1.442695, %v8341_v18  ;;  %10392 = vpow2.f32 %v8357_v62 }
 0x62a   :  { %v8369_v46 = vmul.f32 1.442695, %v8342_v45  ;;  %v8330_v55 = vpop.xlane.xlu0 %8329  ;;  %v11587_v53 = vsub.s32 %v8487_v17, %v11634_v52 }
 0x62b   :  { %10394 = vpow2.f32 %v8363_v63  ;;  %v8343_v7 = vsub.f32 %v6251_v59, %v8330_v55  ;;  %v8344_v47 = vsub.f32 %v11506_v26, %v8330_v55  ;;  %v8345_v42 = vsub.f32 %v8285_v32, %v8330_v55 }
 0x62c   :  { %10396 = vpow2.f32 %v8365_v14  ;;  %v8346_v58 = vsub.f32 %v8286_v27, %v8330_v55 }
 0x62d   :  { %10398 = vpow2.f32 %v8367_v44  ;;  %v8371_v0 = vmul.f32 1.442695, %v8343_v7  ;;  %v8373_v5 = vmul.f32 1.442695, %v8344_v47  ;;  %v8375_v4 = vmul.f32 1.442695, %v8345_v42 }
 0x62e   :  { %10400 = vpow2.f32 %v8369_v46  ;;  %v8377_v28 = vmul.f32 1.442695, %v8346_v58 }
 0x62f   :  { %10402 = vpow2.f32 %v8371_v0 }
 0x630   :  { %10404 = vpow2.f32 %v8373_v5  ;;  %v10385_v8 = vpop.eup %10384 }
 0x631   :  { %10406 = vpow2.f32 %v8353_v9  ;;  %v10387_v26 = vpop.eup %10386 }
 0x632   :  { %10408 = vpow2.f32 %v8375_v4  ;;  %v10389_v25 = vpop.eup %10388  ;;  %v8379_v54 = vadd.f32 %v10387_v26, %v10385_v8 }
 0x633   :  { %10410 = vpow2.f32 %v8359_v35 }
 0x634   :  { %10412 = vpow2.f32 %v8377_v28  ;;  %v8380_v40 = vadd.f32 %v10389_v25, %v8379_v54 }
 0x635   :  { %v10391_v19 = vpop.eup %10390  ;;  %10414 = vpow2.f32 %v8361_v10 }
 0x636   :  { %v10393_v31 = vpop.eup %10392 }
 0x637   :  { %v8384_v60 = vadd.f32 %v10393_v31, %v10391_v19 }
 0x638   :  { %v10395_v11 = vpop.eup %10394 }
 0x639   :  { %v10397_v49 = vpop.eup %10396 }
 0x63a   :  { %v10399_v24 = vpop.eup %10398  ;;  %v8389_v59 = vadd.f32 %v10397_v49, %v10395_v11 }
 0x63b   :  { %v10401_v30 = vpop.eup %10400 }
 0x63c   :  { %v10403_v2 = vpop.eup %10402  ;;  %v8390_v21 = vadd.f32 %v10399_v24, %v8389_v59 }
 0x63d   :  { %v10405_v37 = vpop.eup %10404 }
 0x63e   :  { %v10407_v15 = vpop.eup %10406  ;;  %v8391_v29 = vadd.f32 %v10401_v30, %v8390_v21  ;;  %v8394_v6 = vadd.f32 %v10405_v37, %v10403_v2 }
 0x63f   :  { %v10409_v38 = vpop.eup %10408  ;;  %v8381_v27 = vadd.f32 %v10407_v15, %v8380_v40 }
 0x640   :  { %v10411_v23 = vpop.eup %10410  ;;  %8392 = vadd.xlane.f32.xlu0 %v8391_v29  ;;  %v8395_v32 = vadd.f32 %v10409_v38, %v8394_v6 }
 0x641   :  { %v10413_v41 = vpop.eup %10412  ;;  %v8385_v12 = vadd.f32 %v10411_v23, %v8384_v60 }
 0x642   :  { %v8396_v1 = vadd.f32 %v10413_v41, %v8395_v32  ;;  %v10415_v13 = vpop.eup %10414 }
 0x643   :  { %v8386_v36 = vadd.f32 %v10415_v13, %v8385_v12 }
 0x644   :  { %8397 = vadd.xlane.f32.xlu1 %v8396_v1  ;;  %8382 = vadd.xlane.f32.xlu0 %v8381_v27 }
 0x648   :  { %8387 = vadd.xlane.f32.xlu1 %v8386_v36 }
 0x6c9   :  { %v8393_v43 = vpop.xlane.xlu0 %8392 }
 0x6ca   :  { %10416 = vrcp.f32 %v8393_v43 }
 0x6cd   :  { %v8383_v33 = vpop.xlane.xlu0 %8382  ;;  %v8398_v22 = vpop.xlane.xlu1 %8397 }
 0x6ce   :  { %10418 = vrcp.f32 %v8383_v33 }
 0x6cf   :  { %10420 = vrcp.f32 %v8398_v22 }
 0x6d1   :  { %v8388_v20 = vpop.xlane.xlu1 %8387 }
 0x6d2   :  { %10422 = vrcp.f32 %v8388_v20 }
 0x6d7   :  { %v10417_v39 = vpop.eup %10416 }
 0x6d8   :  { %v8411_v3 = vmul.f32 %v10417_v39, %v10395_v11  ;;  %v8412_v51 = vmul.f32 %v10417_v39, %v10397_v49  ;;  %v8413_v34 = vmul.f32 %v10417_v39, %v10399_v24  ;;  %v8414_v18 = vmul.f32 %v10417_v39, %v10401_v30 }
 0x6db   :  { %v10419_v57 = vpop.eup %10418 }
 0x6dc   :  { %v10421_v62 = vpop.eup %10420  ;;  %v8403_v44 = vmul.f32 %v10419_v57, %v10385_v8  ;;  %v8404_v56 = vmul.f32 %v10419_v57, %v10387_v26  ;;  %v8405_v46 = vmul.f32 %v10419_v57, %v10389_v25  ;;  %v8406_v55 = vmul.f32 %v10419_v57, %v10407_v15 }
 0x6dd   :  { %v8415_v50 = vmul.f32 %v10421_v62, %v10403_v2  ;;  %v8416_v45 = vmul.f32 %v10421_v62, %v10405_v37  ;;  %v8417_v63 = vmul.f32 %v10421_v62, %v10409_v38  ;;  %v8418_v14 = vmul.f32 %v10421_v62, %v10413_v41 }
 0x6df   :  { %v10423_v7 = vpop.eup %10422  ;;  %v8447_v47 = vmax.f32 %v8411_v3, %v8415_v50  ;;  %v8454_v42 = vmax.f32 %v8412_v51, %v8416_v45  ;;  %v8461_v58 = vmax.f32 %v8413_v34, %v8417_v63  ;;  %v8468_v9 = vmax.f32 %v8414_v18, %v8418_v14 }
 0x6e0   :  { %v8407_v52 = vmul.f32 %v10423_v7, %v10391_v19  ;;  %v8408_v0 = vmul.f32 %v10423_v7, %v10393_v31  ;;  %v8409_v5 = vmul.f32 %v10423_v7, %v10411_v23  ;;  %v8410_v4 = vmul.f32 %v10423_v7, %v10415_v13 }
 0x6e1   :  { %v8448_v35 = vrot.slane %v8447_v47, 4  ;;  %v8455_v16 = vrot.slane %v8454_v42, 4  ;;  %v8462_v28 = vrot.slane %v8461_v58, 4  ;;  %v8469_v10 = vrot.slane %v8468_v9, 4 }
 0x6e2   :  { %v8419_v11 = vmax.f32 %v8403_v44, %v8407_v52  ;;  %v8426_v49 = vmax.f32 %v8404_v56, %v8408_v0  ;;  %v8433_v24 = vmax.f32 %v8405_v46, %v8409_v5  ;;  %v8440_v8 = vmax.f32 %v8406_v55, %v8410_v4 }
 0x6e3   :  { %v8449_v26 = vmax.f32 %v8447_v47, %v8448_v35  ;;  %v8456_v25 = vmax.f32 %v8454_v42, %v8455_v16  ;;  %v8463_v59 = vmax.f32 %v8461_v58, %v8462_v28  ;;  %v8470_v54 = vmax.f32 %v8468_v9, %v8469_v10 }
 0x6e4   :  { %v8420_v30 = vrot.slane %v8419_v11, 4  ;;  %v8427_v2 = vrot.slane %v8426_v49, 4  ;;  %v8434_v21 = vrot.slane %v8433_v24, 4  ;;  %v8441_v37 = vrot.slane %v8440_v8, 4 }
 0x6e5   :  { %v8450_v19 = vrot.slane %v8449_v26, 2  ;;  %v8457_v31 = vrot.slane %v8456_v25, 2  ;;  %v8464_v15 = vrot.slane %v8463_v59, 2  ;;  %v8471_v29 = vrot.slane %v8470_v54, 2 }
 0x6e6   :  { %v8421_v6 = vmax.f32 %v8419_v11, %v8420_v30  ;;  %v8428_v40 = vmax.f32 %v8426_v49, %v8427_v2  ;;  %v8435_v60 = vmax.f32 %v8433_v24, %v8434_v21  ;;  %v8442_v38 = vmax.f32 %v8440_v8, %v8441_v37 }
 0x6e7   :  { %v8451_v23 = vmax.f32 %v8449_v26, %v8450_v19  ;;  %v8458_v32 = vmax.f32 %v8456_v25, %v8457_v31  ;;  %v8465_v41 = vmax.f32 %v8463_v59, %v8464_v15  ;;  %v8472_v1 = vmax.f32 %v8470_v54, %v8471_v29 }
 0x6e8   :  { %v8422_v27 = vrot.slane %v8421_v6, 2  ;;  %v8429_v12 = vrot.slane %v8428_v40, 2  ;;  %v8436_v13 = vrot.slane %v8435_v60, 2  ;;  %v8443_v36 = vrot.slane %v8442_v38, 2 }
 0x6e9   :  { %v8452_v43 = vrot.slane %v8451_v23, 1  ;;  %v8459_v33 = vrot.slane %v8458_v32, 1  ;;  %v8466_v22 = vrot.slane %v8465_v41, 1  ;;  %v8473_v20 = vrot.slane %v8472_v1, 1 }
 0x6ea   :  { %v8423_v61 = vmax.f32 %v8421_v6, %v8422_v27  ;;  %v8430_v48 = vmax.f32 %v8428_v40, %v8429_v12  ;;  %v8437_v17 = vmax.f32 %v8435_v60, %v8436_v13  ;;  %v8444_v39 = vmax.f32 %v8442_v38, %v8443_v36 }
 0x6eb   :  { %v8453_v57 = vmax.f32 %v8451_v23, %v8452_v43  ;;  %v8460_v62 = vmax.f32 %v8458_v32, %v8459_v33  ;;  %v8467_v3 = vmax.f32 %v8465_v41, %v8466_v22  ;;  %v8474_v51 = vmax.f32 %v8472_v1, %v8473_v20 }
 0x6ec   :  { %v8424_v34 = vrot.slane %v8423_v61, 1  ;;  %v8431_v18 = vrot.slane %v8430_v48, 1  ;;  %v8438_v50 = vrot.slane %v8437_v17, 1  ;;  %v8445_v45 = vrot.slane %v8444_v39, 1 }
 0x6ed   :  { %v8500_v63 = vcombine.low %v8453_v57, %v8460_v62  ;;  %v8501_v14 = vcombine.low %v8467_v3, %v8474_v51 }
 0x6ee   :  { %v8425_v44 = vmax.f32 %v8423_v61, %v8424_v34  ;;  %v8432_v56 = vmax.f32 %v8430_v48, %v8431_v18  ;;  %v8439_v46 = vmax.f32 %v8437_v17, %v8438_v50  ;;  %v8446_v55 = vmax.f32 %v8444_v39, %v8445_v45 }
 0x6ef   :  { %v8508_v7 = vrot.slane %v8500_v63, %v11587_v53  ;;  %v8515_v47 = vrot.slane %v8501_v14, %v11587_v53 }
 0x6f0   :  { %v8483_v42 = vcombine.low %v8425_v44, %v8432_v56  ;;  %v8484_v58 = vcombine.low %v8439_v46, %v8446_v55 }
 0x6f1   :  { %v8516_v9 = vcombine.low %v8508_v7, %v8515_v47 }
 0x6f2   :  { %v8491_v52 = vrot.slane %v8483_v42, %v11587_v53  ;;  %v8498_v0 = vrot.slane %v8484_v58, %v11587_v53 }
 0x6f3   :  { %v8521_v4 = vrot.slane %v8516_v9, 7 }
 0x6f4   :  { %v8499_v5 = vcombine.low %v8491_v52, %v8498_v0 }
 0x6f6   :  { %v8523_v35 = vsel %vm8522_vm0, %v8521_v4, %v8499_v5 }
 0x6f7   :  { %v8525_v16 = vsel %vm8524_vm1, %v8521_v4, %v8523_v35 }
 0x6f8   :  { %v8527_v28 = vsel %vm8526_vm2, %v8521_v4, %v8525_v16 }
 0x6f9   :  { %v8529_v10 = vsel %vm8528_vm3, %v8521_v4, %v8527_v28 }
 0x6fa   :  { %8531 = vst [vmem:[#allocation12] sm:$0xff] %v8529_v10 }
 0x6fb   :  { %10537 = shalt.err (!%p10534_p1)
}
 0x6fc   :  { %8541 = dma.vmem_to_hbm [thread:$0]  %s8539_s4, 128, %s11601_s5, [#allocation5]  }
 0x6fd   :  { %10552 = dma.done.wait [#allocation5], 128  }
 0x6fe   :  { %10553 = vsyncadd [#allocation5], 4294967168 }
 0x6ff   :  { %8545 = vsyncpa [#allocation4], 1 }
 0x700   :  { %8546 = vsyncpa [#allocation7], 1 }
 0x701   :  { %8547 = vsyncpa [#allocation10], 1 }
 0x702   :  { %8548 = vsyncpa [#allocation5], 1 }

</bundles_post_ra>
